<compile_context>
chip_gen: v5e
topology: v5e:2x2
jax: 0.10.0
libtpu: 0.0.40
codegen_flags: <defaults>
</compile_context>

<pallas_src>
import functools

import jax
import jax.numpy as jnp
from jax import lax
from jax.experimental import pallas as pl
from jax.experimental.pallas import tpu as pltpu

EPS = 1e-5
_VMEM_LIMIT = 32 * 1024 * 1024   # explicit scoped-VMEM budget, safe on v5e / v6e / v7x


def _round_up(v, m):
    return ((v + m - 1) // m) * m


def _smish(x):
    # smish(x) = x * tanh(log(1 + sigmoid(x)))
    #          = x * (3 + 2e) / (2e^2 + 6e + 5),  e = exp(-x)   (algebraic identity)
    # -> one exp (EUP) + one approx reciprocal (EUP); no divide on the VALU path.
    e = jnp.exp(-jnp.maximum(x, -30.0))          # clamp avoids inf/inf for very negative x
    den = 2.0 * e * e + 6.0 * e + 5.0
    return x * (3.0 + 2.0 * e) * pl.reciprocal(den, approx=True)


def _bn_fold(gamma, beta, mean, var):
    scale = gamma / jnp.sqrt(var + EPS)
    bias = beta - mean * scale
    return scale, bias


# ----------------------------------------------------------------------------
# Kernel 1: fused (X @ W_scaled) + bias -> Smish     (conv1 1x1 + BN1 + Smish)
# ----------------------------------------------------------------------------
def _matmul_bias_smish_kernel(x_ref, w_ref, b_ref, o_ref):
    y = jnp.dot(x_ref[...], w_ref[...], preferred_element_type=jnp.float32)
    o_ref[...] = _smish(y + b_ref[...]).astype(o_ref.dtype)


def matmul_bias_smish(x2d, w, bias, *, out_dtype, tm=512):
    M, K = x2d.shape
    Nc = w.shape[1]
    tm = min(tm, _round_up(M, 8))
    return pl.pallas_call(
        _matmul_bias_smish_kernel,
        out_shape=jax.ShapeDtypeStruct((M, Nc), out_dtype),
        grid=(pl.cdiv(M, tm),),
        in_specs=[
            pl.BlockSpec((tm, K), lambda i: (i, 0)),
            pl.BlockSpec((K, Nc), lambda i: (0, 0)),
            pl.BlockSpec((1, Nc), lambda i: (0, 0)),
        ],
        out_specs=pl.BlockSpec((tm, Nc), lambda i: (i, 0)),
        compiler_params=pltpu.CompilerParams(
            dimension_semantics=("parallel",), vmem_limit_bytes=_VMEM_LIMIT),
        cost_estimate=pl.CostEstimate(
            flops=2 * M * K * Nc,
            transcendentals=2 * M * Nc,
            bytes_accessed=2 * M * K + 2 * K * Nc + 4 * Nc + 2 * M * Nc),
    )(x2d, w, bias)


# ----------------------------------------------------------------------------
# Kernel 2: 3x3 conv (pad=1, stride) + bias + Smish, row-tiled, in-kernel tap accumulation
# (no HBM im2col).  Input is the zero-padded activation split into stride^2 spatial "phases"
# and haloed output-row tiles so every in-kernel tap slice is a static contiguous window.
# ----------------------------------------------------------------------------
def _conv3x3_bias_smish_kernel(pt_ref, w_ref, b_ref, o_ref, *, stride, th, Wo, merge_kx):
    s = stride
    C = pt_ref.shape[-1]
    Cout = w_ref.shape[-1]
    acc = jnp.zeros((th * Wo, Cout), jnp.float32)
    if merge_kx:
        # 3 MXU matmuls of K = 3*C: concat the 3 kx taps along the channel (lane) axis.
        for ky in range(3):
            oy = ky // s
            parts = [pt_ref[(ky % s) * s + (kx % s), oy:oy + th, kx // s:kx // s + Wo, :]
                     for kx in range(3)]
            band = jnp.concatenate(parts, axis=-1).reshape(th * Wo, 3 * C)
            acc = acc + jnp.dot(band, w_ref[ky], preferred_element_type=jnp.float32)
    else:
        # fallback: 9 matmuls of K = C, direct ref slices (no whole-phase value load).
        for ky in range(3):
            for kx in range(3):
                p = (ky % s) * s + (kx % s)
                tap = pt_ref[p, ky // s:ky // s + th, kx // s:kx // s + Wo, :]
                acc = acc + jnp.dot(tap.reshape(th * Wo, C),
                                    w_ref[ky, kx * C:(kx + 1) * C, :],
                                    preferred_element_type=jnp.float32)
    o_ref[0] = _smish(acc + b_ref[...]).astype(o_ref.dtype)


def conv3x3_bias_smish(x_nhwc, w3k, bias, stride):
    """x_nhwc: (N,H,W,C) bf16; w3k: (3, 3*C, Cout) bf16 (BN scale folded, kx-major along K);
    bias: (1, Cout) f32."""
    N, H, W, C = x_nhwc.shape
    Cout = w3k.shape[-1]
    s = stride
    Ho = (H + 2 - 3) // s + 1
    Wo = (W + 2 - 3) // s + 1
    halo = 2 // s                 # extra phase rows / cols needed: 2 (stride 1), 1 (stride 2)
    # output-row tile: the largest divisor of Ho that is <= 8 (so no output-row padding needed)
    th = 1
    for cand in range(min(Ho, 8), 0, -1):
        if Ho % cand == 0:
            th = cand
            break
    T = Ho // th
    P = s * s
    R = Ho + halo                 # phase rows
    Rw = Wo + halo                # phase cols
    # zero-pad by 1 (conv padding) plus up to a stride multiple so the phase reshape is exact
    xp = jnp.pad(x_nhwc, ((0, 0), (1, R * s - H - 1), (1, Rw * s - W - 1), (0, 0)))
    # phase split: xp[n, q*s+py, r*s+px, c] -> ph[n, py*s+px, q, r, c]
    ph = (xp.reshape(N, R, s, Rw, s, C)
            .transpose(0, 2, 4, 1, 3, 5)
            .reshape(N, P, R, Rw, C))
    # haloed output-row tiles: tile t uses phase rows [t*th, t*th + th + halo)
    pt = jnp.stack([ph[:, :, t * th:t * th + th + halo] for t in range(T)], axis=1)
    pt = pt.reshape(N * T * P, th + halo, Rw, C)

    merge_kx = (C % 64 == 0)      # lane-friendly -> K=3C merged matmuls (all real ResNet blocks)
    out = pl.pallas_call(
        functools.partial(_conv3x3_bias_smish_kernel,
                          stride=s, th=th, Wo=Wo, merge_kx=merge_kx),
        out_shape=jax.ShapeDtypeStruct((N * T, th * Wo, Cout), jnp.bfloat16),
        grid=(N * T,),
        in_specs=[
            pl.BlockSpec((P, th + halo, Rw, C), lambda i: (i, 0, 0, 0)),
            pl.BlockSpec((3, 3 * C, Cout), lambda i: (0, 0, 0)),
            pl.BlockSpec((1, Cout), lambda i: (0, 0)),
        ],
        out_specs=pl.BlockSpec((1, th * Wo, Cout), lambda i: (i, 0, 0)),
        compiler_params=pltpu.CompilerParams(
            dimension_semantics=("parallel",), vmem_limit_bytes=_VMEM_LIMIT),
        cost_estimate=pl.CostEstimate(
            flops=2 * N * Ho * Wo * 9 * C * Cout,
            transcendentals=2 * N * Ho * Wo * Cout,
            bytes_accessed=2 * pt.size + 2 * w3k.size + 4 * Cout + 2 * N * Ho * Wo * Cout),
    )(pt, w3k, bias)
    return out.reshape(N * Ho * Wo, Cout), Ho, Wo


# ----------------------------------------------------------------------------
# Kernel 3: conv3 (1x1) + shortcut (projection conv or identity) + bias -> Smish  (bf16 out)
# ----------------------------------------------------------------------------
def _residual_proj_kernel(x3_ref, w3_ref, xs_ref, ws_ref, b_ref, o_ref):
    y = jnp.dot(x3_ref[...], w3_ref[...], preferred_element_type=jnp.float32)
    y = y + jnp.dot(xs_ref[...], ws_ref[...], preferred_element_type=jnp.float32)
    o_ref[...] = _smish(y + b_ref[...]).astype(o_ref.dtype)


def _residual_identity_kernel(x3_ref, w3_ref, xs_ref, b_ref, o_ref):
    y = jnp.dot(x3_ref[...], w3_ref[...], preferred_element_type=jnp.float32)
    y = y + xs_ref[...].astype(jnp.float32)
    o_ref[...] = _smish(y + b_ref[...]).astype(o_ref.dtype)


def residual_proj_smish(x3, w3, xs, ws, bias, *, tm=512):
    M, K3 = x3.shape
    Ks = xs.shape[1]
    Nc = w3.shape[1]
    tm = min(tm, _round_up(M, 8))
    return pl.pallas_call(
        _residual_proj_kernel,
        out_shape=jax.ShapeDtypeStruct((M, Nc), jnp.bfloat16),
        grid=(pl.cdiv(M, tm),),
        in_specs=[
            pl.BlockSpec((tm, K3), lambda i: (i, 0)),
            pl.BlockSpec((K3, Nc), lambda i: (0, 0)),
            pl.BlockSpec((tm, Ks), lambda i: (i, 0)),
            pl.BlockSpec((Ks, Nc), lambda i: (0, 0)),
            pl.BlockSpec((1, Nc), lambda i: (0, 0)),
        ],
        out_specs=pl.BlockSpec((tm, Nc), lambda i: (i, 0)),
        compiler_params=pltpu.CompilerParams(
            dimension_semantics=("parallel",), vmem_limit_bytes=_VMEM_LIMIT),
        cost_estimate=pl.CostEstimate(
            flops=2 * M * (K3 + Ks) * Nc,
            transcendentals=2 * M * Nc,
            bytes_accessed=2 * M * (K3 + Ks) + 2 * (K3 + Ks) * Nc + 4 * Nc + 2 * M * Nc),
    )(x3, w3, xs, ws, bias)


def residual_identity_smish(x3, w3, xs, bias, *, tm=512):
    M, K3 = x3.shape
    Ks = xs.shape[1]
    Nc = w3.shape[1]
    tm = min(tm, _round_up(M, 8))
    return pl.pallas_call(
        _residual_identity_kernel,
        out_shape=jax.ShapeDtypeStruct((M, Nc), jnp.bfloat16),
        grid=(pl.cdiv(M, tm),),
        in_specs=[
            pl.BlockSpec((tm, K3), lambda i: (i, 0)),
            pl.BlockSpec((K3, Nc), lambda i: (0, 0)),
            pl.BlockSpec((tm, Ks), lambda i: (i, 0)),
            pl.BlockSpec((1, Nc), lambda i: (0, 0)),
        ],
        out_specs=pl.BlockSpec((tm, Nc), lambda i: (i, 0)),
        compiler_params=pltpu.CompilerParams(
            dimension_semantics=("parallel",), vmem_limit_bytes=_VMEM_LIMIT),
        cost_estimate=pl.CostEstimate(
            flops=2 * M * K3 * Nc,
            transcendentals=2 * M * Nc,
            bytes_accessed=2 * M * (K3 + Ks) + 2 * K3 * Nc + 4 * Nc + 2 * M * Nc),
    )(x3, w3, xs, bias)


# ----------------------------------------------------------------------------
# Parameter helpers
# ----------------------------------------------------------------------------
def init_params(key, in_planes, planes, stride):
    exp = 4
    ks = jax.random.split(key, 8)

    def w_init(k, shape):
        fan_in = shape[1] * shape[2] * shape[3]
        return jax.random.normal(k, shape, jnp.float32) / (fan_in ** 0.5)

    def bn_init(k, c):
        k1, k2, k3, k4 = jax.random.split(k, 4)
        gamma = jax.random.uniform(k1, (c,), jnp.float32, 0.8, 1.2)
        beta = 0.1 * jax.random.normal(k2, (c,), jnp.float32)
        mean = 0.1 * jax.random.normal(k3, (c,), jnp.float32)
        var = jax.random.uniform(k4, (c,), jnp.float32, 0.8, 1.2)
        return (gamma, beta, mean, var)

    p = {
        "w1": w_init(ks[0], (planes, in_planes, 1, 1)),
        "bn1": bn_init(ks[1], planes),
        "w2": w_init(ks[2], (planes, planes, 3, 3)),
        "bn2": bn_init(ks[3], planes),
        "w3": w_init(ks[4], (exp * planes, planes, 1, 1)),
        "bn3": bn_init(ks[5], exp * planes),
    }
    if stride != 1 or in_planes != exp * planes:
        p["ws"] = w_init(ks[6], (exp * planes, in_planes, 1, 1))
        p["bns"] = bn_init(ks[7], exp * planes)
    return p


# ----------------------------------------------------------------------------
# Forward pass (Pallas path).  Glue (transpose / pad / phase & tile reshape) in plain JAX.
# ----------------------------------------------------------------------------
def bottleneck_smish_forward(x_nchw, p, stride):
    N, Cin, H, W = x_nchw.shape
    planes = p["w1"].shape[0]
    exp_planes = p["w3"].shape[0]
    s = stride

    x = jnp.transpose(x_nchw, (0, 2, 3, 1)).astype(jnp.bfloat16)   # NHWC, bf16 once

    # Fold BN (inference) into per-output-channel weight scales (+ f32 biases).
    s1, b1 = _bn_fold(*p["bn1"])
    s2, b2 = _bn_fold(*p["bn2"])
    s3, b3 = _bn_fold(*p["bn3"])

    w1 = (p["w1"][:, :, 0, 0].T * s1).astype(jnp.bfloat16)                        # (Cin, planes)
    # (O,I,3,3) -> (ky,kx,I,O), BN-scaled, reshape to (3, 3*I, O)  (kx-major along K)
    w2 = (jnp.transpose(p["w2"], (2, 3, 1, 0)) * s2).astype(jnp.bfloat16)
    w2 = w2.reshape(3, 3 * planes, planes)
    w3 = (p["w3"][:, :, 0, 0].T * s3).astype(jnp.bfloat16)                        # (planes, 4p)

    # conv1 (1x1) + BN1 + Smish
    out1 = matmul_bias_smish(x.reshape(N * H * W, Cin), w1, b1.reshape(1, -1),
                             out_dtype=jnp.bfloat16)
    out1 = out1.reshape(N, H, W, planes)

    # conv2 (3x3, stride, pad=1) + BN2 + Smish  (row-tiled, in-kernel tap accumulation)
    out2, Ho, Wo = conv3x3_bias_smish(out1, w2, b2.reshape(1, -1), s)

    # conv3 (1x1) + BN3, shortcut, residual add, Smish (fused, bf16 out)
    xs = x[:, ::s, ::s, :].reshape(N * Ho * Wo, Cin)
    if "ws" in p:
        ss, bs = _bn_fold(*p["bns"])
        ws = (p["ws"][:, :, 0, 0].T * ss).astype(jnp.bfloat16)                    # (Cin, 4p)
        out = residual_proj_smish(out2, w3, xs, ws, (b3 + bs).reshape(1, -1))
    else:
        out = residual_identity_smish(out2, w3, xs, b3.reshape(1, -1))

    out = out.reshape(N, Ho, Wo, exp_planes)
    return jnp.transpose(out, (0, 3, 1, 2))   # back to NCHW (bf16)


# ----------------------------------------------------------------------------
# References for correctness checks
# ----------------------------------------------------------------------------
def _smish_ref(x):
    return x * jnp.tanh(jnp.log1p(jax.nn.sigmoid(x)))


def _bn_ref(x, gamma, beta, mean, var):
    return (x - mean) / jnp.sqrt(var + EPS) * gamma + beta


def reference_forward_f32(x_nchw, p, stride):
    """Original PyTorch module semantics in full f32 (inference-mode BN)."""
    x = jnp.transpose(x_nchw, (0, 2, 3, 1))

    def conv(xv, w_oihw, s, pad):
        w = jnp.transpose(w_oihw, (2, 3, 1, 0))
        return lax.conv_general_dilated(
            xv, w, (s, s), [(pad, pad), (pad, pad)],
            dimension_numbers=("NHWC", "HWIO", "NHWC"),
            precision=lax.Precision.HIGHEST)

    out = _smish_ref(_bn_ref(conv(x, p["w1"], 1, 0), *p["bn1"]))
    out = _smish_ref(_bn_ref(conv(out, p["w2"], stride, 1), *p["bn2"]))
    out = _bn_ref(conv(out, p["w3"], 1, 0), *p["bn3"])
    if "ws" in p:
        sc = _bn_ref(conv(x, p["ws"], stride, 0), *p["bns"])
    else:
        sc = x[:, ::stride, ::stride, :]
    out = _smish_ref(out + sc)
    return jnp.transpose(out, (0, 3, 1, 2))


def reference_forward_bf16(x_nchw, p, stride):
    """Same precision recipe as the Pallas path: BN folded into bf16 weights, bf16
    activations, f32 accumulation, f32 bias + smish, bf16 intermediates."""
    x = jnp.transpose(x_nchw, (0, 2, 3, 1)).astype(jnp.bfloat16)

    def conv(xb, w_oihw, scale, s, pad):
        w = (jnp.transpose(w_oihw, (2, 3, 1, 0)) * scale).astype(jnp.bfloat16)
        return lax.conv_general_dilated(
            xb, w, (s, s), [(pad, pad), (pad, pad)],
            dimension_numbers=("NHWC", "HWIO", "NHWC"),
            preferred_element_type=jnp.float32)

    s1, b1 = _bn_fold(*p["bn1"])
    s2, b2 = _bn_fold(*p["bn2"])
    s3, b3 = _bn_fold(*p["bn3"])
    out = _smish_ref(conv(x, p["w1"], s1, 1, 0) + b1).astype(jnp.bfloat16)
    out = _smish_ref(conv(out, p["w2"], s2, stride, 1) + b2).astype(jnp.bfloat16)
    main = conv(out, p["w3"], s3, 1, 0) + b3
    if "ws" in p:
        ss, bs = _bn_fold(*p["bns"])
        sc = conv(x, p["ws"], ss, stride, 0) + bs
    else:
        sc = x[:, ::stride, ::stride, :].astype(jnp.float32)
    out = _smish_ref(main + sc)
    return jnp.transpose(out, (0, 3, 1, 2))


def _run_case(key, N, in_planes, planes, H, W, stride):
    kx, kp = jax.random.split(key)
    x = jax.random.normal(kx, (N, in_planes, H, W), jnp.float32)   # NCHW input
    params = init_params(kp, in_planes, planes, stride)

    fwd = jax.jit(bottleneck_smish_forward, static_argnums=2)
    out = jax.block_until_ready(fwd(x, params, stride))

    Ho = (H + 2 - 3) // stride + 1
    Wo = (W + 2 - 3) // stride + 1
    assert out.shape == (N, 4 * planes, Ho, Wo), out.shape

    ref16 = reference_forward_bf16(x, params, stride)
    err16 = float(jnp.max(jnp.abs(out - ref16)))
    assert jnp.allclose(out, ref16, rtol=3e-2, atol=3e-2), ("bf16-matched mismatch", err16)

    ref32 = reference_forward_f32(x, params, stride)
    err32 = float(jnp.max(jnp.abs(out - ref32)))
    assert jnp.allclose(out, ref32, rtol=1e-1, atol=1e-1), ("f32 reference mismatch", err32)
    return out


if __name__ == "__main__":
    key = jax.random.PRNGKey(0)
    k1, k2, k3 = jax.random.split(key, 3)
    # projection-shortcut case (stride 2), small channels -> 9-tap conv2 path
    _run_case(k1, N=2, in_planes=16, planes=8, H=16, W=16, stride=2)
    # identity-shortcut case (stride 1), small channels -> 9-tap conv2 path
    _run_case(k2, N=2, in_planes=32, planes=8, H=16, W=16, stride=1)
    # lane-friendly channels (C=64) -> merged K=3C conv2 path, projection shortcut
    _run_case(k3, N=2, in_planes=64, planes=64, H=8, W=8, stride=1)
    print("KERNEL_OK")
</pallas_src>

<mosaic_0001>
module attributes {stable_mosaic.version = 11 : i64} {
  func.func @_matmul_bias_smish_kernel(%arg0: i32, %arg1: memref<512x16xbf16, #tpu.memory_space<vmem>>, %arg2: memref<16x8xbf16, #tpu.memory_space<vmem>>, %arg3: memref<1x8xf32, #tpu.memory_space<vmem>>, %arg4: memref<512x8xbf16, #tpu.memory_space<vmem>>) attributes {dimension_semantics = [#tpu.dimension_semantics<parallel>], iteration_bounds = array<i64: 1>, scalar_prefetch = 0 : i64, scratch_operands = 0 : i64, tpu.core_type = #tpu.core_type<tc>, window_params = [{transform_indices = @transform_0, window_bounds = array<i64: 512, 16>}, {pipeline_mode = #tpu.pipeline_mode<synchronous>, transform_indices = @transform_1, window_bounds = array<i64: 16, 8>}, {pipeline_mode = #tpu.pipeline_mode<synchronous>, transform_indices = @transform_2, window_bounds = array<i64: 1, 8>}, {transform_indices = @transform_3, window_bounds = array<i64: 512, 8>}]} {
    %c0 = arith.constant 0 : index
    %c0_0 = arith.constant 0 : index
    %0 = vector.load %arg1[%c0, %c0_0] : memref<512x16xbf16, #tpu.memory_space<vmem>>, vector<512x16xbf16>
    %c0_1 = arith.constant 0 : index
    %c0_2 = arith.constant 0 : index
    %1 = vector.load %arg2[%c0_1, %c0_2] : memref<16x8xbf16, #tpu.memory_space<vmem>>, vector<16x8xbf16>
    %cst = arith.constant dense<0.000000e+00> : vector<512x8xf32>
    %2 = tpu.matmul %0, %1, %cst {dimension_numbers = #tpu.dot_dimension_numbers<[1], [0], [0], [1], [0, 0, 1, 1], [], []>} : vector<512x16xbf16>, vector<16x8xbf16>, vector<512x8xf32> -> vector<512x8xf32>
    %c0_3 = arith.constant 0 : index
    %c0_4 = arith.constant 0 : index
    %3 = vector.load %arg3[%c0_3, %c0_4] : memref<1x8xf32, #tpu.memory_space<vmem>>, vector<1x8xf32>
    %4 = vector.broadcast %3 : vector<1x8xf32> to vector<512x8xf32>
    %5 = arith.addf %2, %4 : vector<512x8xf32>
    %cst_5 = arith.constant -3.000000e+01 : f32
    %6 = vector.broadcast %cst_5 : f32 to vector<512x8xf32>
    %7 = arith.maximumf %5, %6 : vector<512x8xf32>
    %cst_6 = arith.constant 0.000000e+00 : f32
    %8 = vector.broadcast %cst_6 : f32 to vector<512x8xf32>
    %9 = arith.subf %8, %7 : vector<512x8xf32>
    %10 = math.exp %9 : vector<512x8xf32>
    %cst_7 = arith.constant 2.000000e+00 : f32
    %11 = vector.broadcast %cst_7 : f32 to vector<512x8xf32>
    %12 = arith.mulf %11, %10 : vector<512x8xf32>
    %13 = arith.mulf %12, %10 : vector<512x8xf32>
    %cst_8 = arith.constant 6.000000e+00 : f32
    %14 = vector.broadcast %cst_8 : f32 to vector<512x8xf32>
    %15 = arith.mulf %14, %10 : vector<512x8xf32>
    %16 = arith.addf %13, %15 : vector<512x8xf32>
    %cst_9 = arith.constant 5.000000e+00 : f32
    %17 = vector.broadcast %cst_9 : f32 to vector<512x8xf32>
    %18 = arith.addf %16, %17 : vector<512x8xf32>
    %cst_10 = arith.constant 2.000000e+00 : f32
    %19 = vector.broadcast %cst_10 : f32 to vector<512x8xf32>
    %20 = arith.mulf %19, %10 : vector<512x8xf32>
    %cst_11 = arith.constant 3.000000e+00 : f32
    %21 = vector.broadcast %cst_11 : f32 to vector<512x8xf32>
    %22 = arith.addf %21, %20 : vector<512x8xf32>
    %23 = arith.mulf %5, %22 : vector<512x8xf32>
    %24 = tpu.reciprocal %18 {approx = true} : vector<512x8xf32> -> vector<512x8xf32>
    %25 = arith.mulf %23, %24 : vector<512x8xf32>
    %26 = arith.truncf %25 : vector<512x8xf32> to vector<512x8xbf16>
    %c0_12 = arith.constant 0 : index
    %c0_13 = arith.constant 0 : index
    %27 = vector.load %arg4[%c0_12, %c0_13] : memref<512x8xbf16, #tpu.memory_space<vmem>>, vector<512x8xbf16>
    tpu.vector_store %arg4[%c0_12, %c0_13], %26 {strides = array<i32>} : memref<512x8xbf16, #tpu.memory_space<vmem>>, vector<512x8xbf16>,
    return
  }
  func.func @transform_0(%arg0: i32) -> (i32, i32) {
    %c0_i32 = arith.constant 0 : i32
    %c0_i32_0 = arith.constant 0 : i32
    return %arg0, %c0_i32 : i32, i32
  }
  func.func @transform_1(%arg0: i32) -> (i32, i32) {
    %c0_i32 = arith.constant 0 : i32
    %c0_i32_0 = arith.constant 0 : i32
    %c0_i32_1 = arith.constant 0 : i32
    return %c0_i32, %c0_i32_0 : i32, i32
  }
  func.func @transform_2(%arg0: i32) -> (i32, i32) {
    %c0_i32 = arith.constant 0 : i32
    %c0_i32_0 = arith.constant 0 : i32
    %c0_i32_1 = arith.constant 0 : i32
    return %c0_i32, %c0_i32_0 : i32, i32
  }
  func.func @transform_3(%arg0: i32) -> (i32, i32) {
    %c0_i32 = arith.constant 0 : i32
    %c0_i32_0 = arith.constant 0 : i32
    return %arg0, %c0_i32 : i32, i32
  }
}

module attributes {stable_mosaic.version = 11 : i64} {
  func.func @_conv3x3_bias_smish_kernel(%arg0: i32, %arg1: memref<4x9x9x8xbf16, #tpu.memory_space<vmem>>, %arg2: memref<3x24x8xbf16, #tpu.memory_space<vmem>>, %arg3: memref<1x8xf32, #tpu.memory_space<vmem>>, %arg4: memref<1x64x8xbf16, #tpu.memory_space<vmem>>) attributes {dimension_semantics = [#tpu.dimension_semantics<parallel>], iteration_bounds = array<i64: 2>, scalar_prefetch = 0 : i64, scratch_operands = 0 : i64, tpu.core_type = #tpu.core_type<tc>, window_params = [{transform_indices = @transform_0, window_bounds = array<i64: 4, 9, 9, 8>}, {pipeline_mode = #tpu.pipeline_mode<synchronous>, transform_indices = @transform_1, window_bounds = array<i64: 3, 24, 8>}, {pipeline_mode = #tpu.pipeline_mode<synchronous>, transform_indices = @transform_2, window_bounds = array<i64: 1, 8>}, {transform_indices = @transform_3, window_bounds = array<i64: 1, 64, 8>}]} {
    %cst = arith.constant 0.000000e+00 : f32
    %0 = vector.broadcast %cst : f32 to vector<64x8xf32>
    %c0 = arith.constant 0 : index
    %c0_0 = arith.constant 0 : index
    %c0_1 = arith.constant 0 : index
    %c0_2 = arith.constant 0 : index
    %1 = vector.load %arg1[%c0, %c0_0, %c0_1, %c0_2] : memref<4x9x9x8xbf16, #tpu.memory_space<vmem>>, vector<1x8x8x8xbf16>
    %2 = vector.shape_cast %1 : vector<1x8x8x8xbf16> to vector<8x8x8xbf16>
    %3 = vector.shape_cast %2 : vector<8x8x8xbf16> to vector<64x8xbf16>
    %c0_3 = arith.constant 0 : index
    %c0_4 = arith.constant 0 : index
    %c0_5 = arith.constant 0 : index
    %4 = vector.load %arg2[%c0_3, %c0_4, %c0_5] : memref<3x24x8xbf16, #tpu.memory_space<vmem>>, vector<1x8x8xbf16>
    %5 = vector.shape_cast %4 : vector<1x8x8xbf16> to vector<8x8xbf16>
    %cst_6 = arith.constant dense<0.000000e+00> : vector<64x8xf32>
    %6 = tpu.matmul %3, %5, %cst_6 {dimension_numbers = #tpu.dot_dimension_numbers<[1], [0], [0], [1], [0, 0, 1, 1], [], []>} : vector<64x8xbf16>, vector<8x8xbf16>, vector<64x8xf32> -> vector<64x8xf32>
    %7 = arith.addf %0, %6 : vector<64x8xf32>
    %c1 = arith.constant 1 : index
    %c0_7 = arith.constant 0 : index
    %c0_8 = arith.constant 0 : index
    %c0_9 = arith.constant 0 : index
    %8 = vector.load %arg1[%c1, %c0_7, %c0_8, %c0_9] : memref<4x9x9x8xbf16, #tpu.memory_space<vmem>>, vector<1x8x8x8xbf16>
    %9 = vector.shape_cast %8 : vector<1x8x8x8xbf16> to vector<8x8x8xbf16>
    %10 = vector.shape_cast %9 : vector<8x8x8xbf16> to vector<64x8xbf16>
    %c0_10 = arith.constant 0 : index
    %c8 = arith.constant 8 : index
    %c0_11 = arith.constant 0 : index
    %11 = vector.load %arg2[%c0_10, %c8, %c0_11] : memref<3x24x8xbf16, #tpu.memory_space<vmem>>, vector<1x8x8xbf16>
    %12 = vector.shape_cast %11 : vector<1x8x8xbf16> to vector<8x8xbf16>
    %cst_12 = arith.constant dense<0.000000e+00> : vector<64x8xf32>
    %13 = tpu.matmul %10, %12, %cst_12 {dimension_numbers = #tpu.dot_dimension_numbers<[1], [0], [0], [1], [0, 0, 1, 1], [], []>} : vector<64x8xbf16>, vector<8x8xbf16>, vector<64x8xf32> -> vector<64x8xf32>
    %14 = arith.addf %7, %13 : vector<64x8xf32>
    %c0_13 = arith.constant 0 : index
    %c0_14 = arith.constant 0 : index
    %c1_15 = arith.constant 1 : index
    %c0_16 = arith.constant 0 : index
    %15 = vector.load %arg1[%c0_13, %c0_14, %c1_15, %c0_16] : memref<4x9x9x8xbf16, #tpu.memory_space<vmem>>, vector<1x8x8x8xbf16>
    %16 = vector.shape_cast %15 : vector<1x8x8x8xbf16> to vector<8x8x8xbf16>
    %17 = vector.shape_cast %16 : vector<8x8x8xbf16> to vector<64x8xbf16>
    %c0_17 = arith.constant 0 : index
    %c16 = arith.constant 16 : index
    %c0_18 = arith.constant 0 : index
    %18 = vector.load %arg2[%c0_17, %c16, %c0_18] : memref<3x24x8xbf16, #tpu.memory_space<vmem>>, vector<1x8x8xbf16>
    %19 = vector.shape_cast %18 : vector<1x8x8xbf16> to vector<8x8xbf16>
    %cst_19 = arith.constant dense<0.000000e+00> : vector<64x8xf32>
    %20 = tpu.matmul %17, %19, %cst_19 {dimension_numbers = #tpu.dot_dimension_numbers<[1], [0], [0], [1], [0, 0, 1, 1], [], []>} : vector<64x8xbf16>, vector<8x8xbf16>, vector<64x8xf32> -> vector<64x8xf32>
    %21 = arith.addf %14, %20 : vector<64x8xf32>
    %c2 = arith.constant 2 : index
    %c0_20 = arith.constant 0 : index
    %c0_21 = arith.constant 0 : index
    %c0_22 = arith.constant 0 : index
    %22 = vector.load %arg1[%c2, %c0_20, %c0_21, %c0_22] : memref<4x9x9x8xbf16, #tpu.memory_space<vmem>>, vector<1x8x8x8xbf16>
    %23 = vector.shape_cast %22 : vector<1x8x8x8xbf16> to vector<8x8x8xbf16>
    %24 = vector.shape_cast %23 : vector<8x8x8xbf16> to vector<64x8xbf16>
    %c1_23 = arith.constant 1 : index
    %c0_24 = arith.constant 0 : index
    %c0_25 = arith.constant 0 : index
    %25 = vector.load %arg2[%c1_23, %c0_24, %c0_25] : memref<3x24x8xbf16, #tpu.memory_space<vmem>>, vector<1x8x8xbf16>
    %26 = vector.shape_cast %25 : vector<1x8x8xbf16> to vector<8x8xbf16>
    %cst_26 = arith.constant dense<0.000000e+00> : vector<64x8xf32>
    %27 = tpu.matmul %24, %26, %cst_26 {dimension_numbers = #tpu.dot_dimension_numbers<[1], [0], [0], [1], [0, 0, 1, 1], [], []>} : vector<64x8xbf16>, vector<8x8xbf16>, vector<64x8xf32> -> vector<64x8xf32>
    %28 = arith.addf %21, %27 : vector<64x8xf32>
    %c3 = arith.constant 3 : index
    %c0_27 = arith.constant 0 : index
    %c0_28 = arith.constant 0 : index
    %c0_29 = arith.constant 0 : index
    %29 = vector.load %arg1[%c3, %c0_27, %c0_28, %c0_29] : memref<4x9x9x8xbf16, #tpu.memory_space<vmem>>, vector<1x8x8x8xbf16>
    %30 = vector.shape_cast %29 : vector<1x8x8x8xbf16> to vector<8x8x8xbf16>
    %31 = vector.shape_cast %30 : vector<8x8x8xbf16> to vector<64x8xbf16>
    %c1_30 = arith.constant 1 : index
    %c8_31 = arith.constant 8 : index
    %c0_32 = arith.constant 0 : index
    %32 = vector.load %arg2[%c1_30, %c8_31, %c0_32] : memref<3x24x8xbf16, #tpu.memory_space<vmem>>, vector<1x8x8xbf16>
    %33 = vector.shape_cast %32 : vector<1x8x8xbf16> to vector<8x8xbf16>
    %cst_33 = arith.constant dense<0.000000e+00> : vector<64x8xf32>
    %34 = tpu.matmul %31, %33, %cst_33 {dimension_numbers = #tpu.dot_dimension_numbers<[1], [0], [0], [1], [0, 0, 1, 1], [], []>} : vector<64x8xbf16>, vector<8x8xbf16>, vector<64x8xf32> -> vector<64x8xf32>
    %35 = arith.addf %28, %34 : vector<64x8xf32>
    %c2_34 = arith.constant 2 : index
    %c0_35 = arith.constant 0 : index
    %c1_36 = arith.constant 1 : index
    %c0_37 = arith.constant 0 : index
    %36 = vector.load %arg1[%c2_34, %c0_35, %c1_36, %c0_37] : memref<4x9x9x8xbf16, #tpu.memory_space<vmem>>, vector<1x8x8x8xbf16>
    %37 = vector.shape_cast %36 : vector<1x8x8x8xbf16> to vector<8x8x8xbf16>
    %38 = vector.shape_cast %37 : vector<8x8x8xbf16> to vector<64x8xbf16>
    %c1_38 = arith.constant 1 : index
    %c16_39 = arith.constant 16 : index
    %c0_40 = arith.constant 0 : index
    %39 = vector.load %arg2[%c1_38, %c16_39, %c0_40] : memref<3x24x8xbf16, #tpu.memory_space<vmem>>, vector<1x8x8xbf16>
    %40 = vector.shape_cast %39 : vector<1x8x8xbf16> to vector<8x8xbf16>
    %cst_41 = arith.constant dense<0.000000e+00> : vector<64x8xf32>
    %41 = tpu.matmul %38, %40, %cst_41 {dimension_numbers = #tpu.dot_dimension_numbers<[1], [0], [0], [1], [0, 0, 1, 1], [], []>} : vector<64x8xbf16>, vector<8x8xbf16>, vector<64x8xf32> -> vector<64x8xf32>
    %42 = arith.addf %35, %41 : vector<64x8xf32>
    %c0_42 = arith.constant 0 : index
    %c1_43 = arith.constant 1 : index
    %c0_44 = arith.constant 0 : index
    %c0_45 = arith.constant 0 : index
    %43 = vector.load %arg1[%c0_42, %c1_43, %c0_44, %c0_45] : memref<4x9x9x8xbf16, #tpu.memory_space<vmem>>, vector<1x8x8x8xbf16>
    %44 = vector.shape_cast %43 : vector<1x8x8x8xbf16> to vector<8x8x8xbf16>
    %45 = vector.shape_cast %44 : vector<8x8x8xbf16> to vector<64x8xbf16>
    %c2_46 = arith.constant 2 : index
    %c0_47 = arith.constant 0 : index
    %c0_48 = arith.constant 0 : index
    %46 = vector.load %arg2[%c2_46, %c0_47, %c0_48] : memref<3x24x8xbf16, #tpu.memory_space<vmem>>, vector<1x8x8xbf16>
    %47 = vector.shape_cast %46 : vector<1x8x8xbf16> to vector<8x8xbf16>
    %cst_49 = arith.constant dense<0.000000e+00> : vector<64x8xf32>
    %48 = tpu.matmul %45, %47, %cst_49 {dimension_numbers = #tpu.dot_dimension_numbers<[1], [0], [0], [1], [0, 0, 1, 1], [], []>} : vector<64x8xbf16>, vector<8x8xbf16>, vector<64x8xf32> -> vector<64x8xf32>
    %49 = arith.addf %42, %48 : vector<64x8xf32>
    %c1_50 = arith.constant 1 : index
    %c1_51 = arith.constant 1 : index
    %c0_52 = arith.constant 0 : index
    %c0_53 = arith.constant 0 : index
    %50 = vector.load %arg1[%c1_50, %c1_51, %c0_52, %c0_53] : memref<4x9x9x8xbf16, #tpu.memory_space<vmem>>, vector<1x8x8x8xbf16>
    %51 = vector.shape_cast %50 : vector<1x8x8x8xbf16> to vector<8x8x8xbf16>
    %52 = vector.shape_cast %51 : vector<8x8x8xbf16> to vector<64x8xbf16>
    %c2_54 = arith.constant 2 : index
    %c8_55 = arith.constant 8 : index
    %c0_56 = arith.constant 0 : index
    %53 = vector.load %arg2[%c2_54, %c8_55, %c0_56] : memref<3x24x8xbf16, #tpu.memory_space<vmem>>, vector<1x8x8xbf16>
    %54 = vector.shape_cast %53 : vector<1x8x8xbf16> to vector<8x8xbf16>
    %cst_57 = arith.constant dense<0.000000e+00> : vector<64x8xf32>
    %55 = tpu.matmul %52, %54, %cst_57 {dimension_numbers = #tpu.dot_dimension_numbers<[1], [0], [0], [1], [0, 0, 1, 1], [], []>} : vector<64x8xbf16>, vector<8x8xbf16>, vector<64x8xf32> -> vector<64x8xf32>
    %56 = arith.addf %49, %55 : vector<64x8xf32>
    %c0_58 = arith.constant 0 : index
    %c1_59 = arith.constant 1 : index
    %c1_60 = arith.constant 1 : index
    %c0_61 = arith.constant 0 : index
    %57 = vector.load %arg1[%c0_58, %c1_59, %c1_60, %c0_61] : memref<4x9x9x8xbf16, #tpu.memory_space<vmem>>, vector<1x8x8x8xbf16>
    %58 = vector.shape_cast %57 : vector<1x8x8x8xbf16> to vector<8x8x8xbf16>
    %59 = vector.shape_cast %58 : vector<8x8x8xbf16> to vector<64x8xbf16>
    %c2_62 = arith.constant 2 : index
    %c16_63 = arith.constant 16 : index
    %c0_64 = arith.constant 0 : index
    %60 = vector.load %arg2[%c2_62, %c16_63, %c0_64] : memref<3x24x8xbf16, #tpu.memory_space<vmem>>, vector<1x8x8xbf16>
    %61 = vector.shape_cast %60 : vector<1x8x8xbf16> to vector<8x8xbf16>
    %cst_65 = arith.constant dense<0.000000e+00> : vector<64x8xf32>
    %62 = tpu.matmul %59, %61, %cst_65 {dimension_numbers = #tpu.dot_dimension_numbers<[1], [0], [0], [1], [0, 0, 1, 1], [], []>} : vector<64x8xbf16>, vector<8x8xbf16>, vector<64x8xf32> -> vector<64x8xf32>
    %63 = arith.addf %56, %62 : vector<64x8xf32>
    %c0_66 = arith.constant 0 : index
    %c0_67 = arith.constant 0 : index
    %64 = vector.load %arg3[%c0_66, %c0_67] : memref<1x8xf32, #tpu.memory_space<vmem>>, vector<1x8xf32>
    %65 = vector.broadcast %64 : vector<1x8xf32> to vector<64x8xf32>
    %66 = arith.addf %63, %65 : vector<64x8xf32>
    %cst_68 = arith.constant -3.000000e+01 : f32
    %67 = vector.broadcast %cst_68 : f32 to vector<64x8xf32>
    %68 = arith.maximumf %66, %67 : vector<64x8xf32>
    %cst_69 = arith.constant 0.000000e+00 : f32
    %69 = vector.broadcast %cst_69 : f32 to vector<64x8xf32>
    %70 = arith.subf %69, %68 : vector<64x8xf32>
    %71 = math.exp %70 : vector<64x8xf32>
    %cst_70 = arith.constant 2.000000e+00 : f32
    %72 = vector.broadcast %cst_70 : f32 to vector<64x8xf32>
    %73 = arith.mulf %72, %71 : vector<64x8xf32>
    %74 = arith.mulf %73, %71 : vector<64x8xf32>
    %cst_71 = arith.constant 6.000000e+00 : f32
    %75 = vector.broadcast %cst_71 : f32 to vector<64x8xf32>
    %76 = arith.mulf %75, %71 : vector<64x8xf32>
    %77 = arith.addf %74, %76 : vector<64x8xf32>
    %cst_72 = arith.constant 5.000000e+00 : f32
    %78 = vector.broadcast %cst_72 : f32 to vector<64x8xf32>
    %79 = arith.addf %77, %78 : vector<64x8xf32>
    %cst_73 = arith.constant 2.000000e+00 : f32
    %80 = vector.broadcast %cst_73 : f32 to vector<64x8xf32>
    %81 = arith.mulf %80, %71 : vector<64x8xf32>
    %cst_74 = arith.constant 3.000000e+00 : f32
    %82 = vector.broadcast %cst_74 : f32 to vector<64x8xf32>
    %83 = arith.addf %82, %81 : vector<64x8xf32>
    %84 = arith.mulf %66, %83 : vector<64x8xf32>
    %85 = tpu.reciprocal %79 {approx = true} : vector<64x8xf32> -> vector<64x8xf32>
    %86 = arith.mulf %84, %85 : vector<64x8xf32>
    %87 = arith.truncf %86 : vector<64x8xf32> to vector<64x8xbf16>
    %c0_75 = arith.constant 0 : index
    %c0_76 = arith.constant 0 : index
    %c0_77 = arith.constant 0 : index
    %88 = vector.load %arg4[%c0_75, %c0_76, %c0_77] : memref<1x64x8xbf16, #tpu.memory_space<vmem>>, vector<1x64x8xbf16>
    %89 = vector.shape_cast %88 : vector<1x64x8xbf16> to vector<64x8xbf16>
    %90 = vector.shape_cast %87 : vector<64x8xbf16> to vector<1x64x8xbf16>
    tpu.vector_store %arg4[%c0_75, %c0_76, %c0_77], %90 {strides = array<i32>} : memref<1x64x8xbf16, #tpu.memory_space<vmem>>, vector<1x64x8xbf16>,
    return
  }
  func.func @transform_0(%arg0: i32) -> (i32, i32, i32, i32) {
    %c0_i32 = arith.constant 0 : i32
    %c0_i32_0 = arith.constant 0 : i32
    %c0_i32_1 = arith.constant 0 : i32
    %c0_i32_2 = arith.constant 0 : i32
    return %arg0, %c0_i32, %c0_i32_0, %c0_i32_1 : i32, i32, i32, i32
  }
  func.func @transform_1(%arg0: i32) -> (i32, i32, i32) {
    %c0_i32 = arith.constant 0 : i32
    %c0_i32_0 = arith.constant 0 : i32
    %c0_i32_1 = arith.constant 0 : i32
    %c0_i32_2 = arith.constant 0 : i32
    return %c0_i32, %c0_i32_0, %c0_i32_1 : i32, i32, i32
  }
  func.func @transform_2(%arg0: i32) -> (i32, i32) {
    %c0_i32 = arith.constant 0 : i32
    %c0_i32_0 = arith.constant 0 : i32
    %c0_i32_1 = arith.constant 0 : i32
    return %c0_i32, %c0_i32_0 : i32, i32
  }
  func.func @transform_3(%arg0: i32) -> (i32, i32, i32) {
    %c0_i32 = arith.constant 0 : i32
    %c0_i32_0 = arith.constant 0 : i32
    %c0_i32_1 = arith.constant 0 : i32
    return %arg0, %c0_i32, %c0_i32_0 : i32, i32, i32
  }
}

module attributes {stable_mosaic.version = 11 : i64} {
  func.func @_residual_proj_kernel(%arg0: i32, %arg1: memref<128x8xbf16, #tpu.memory_space<vmem>>, %arg2: memref<8x32xbf16, #tpu.memory_space<vmem>>, %arg3: memref<128x16xbf16, #tpu.memory_space<vmem>>, %arg4: memref<16x32xbf16, #tpu.memory_space<vmem>>, %arg5: memref<1x32xf32, #tpu.memory_space<vmem>>, %arg6: memref<128x32xbf16, #tpu.memory_space<vmem>>) attributes {dimension_semantics = [#tpu.dimension_semantics<parallel>], iteration_bounds = array<i64: 1>, scalar_prefetch = 0 : i64, scratch_operands = 0 : i64, tpu.core_type = #tpu.core_type<tc>, window_params = [{transform_indices = @transform_0, window_bounds = array<i64: 128, 8>}, {pipeline_mode = #tpu.pipeline_mode<synchronous>, transform_indices = @transform_1, window_bounds = array<i64: 8, 32>}, {transform_indices = @transform_2, window_bounds = array<i64: 128, 16>}, {pipeline_mode = #tpu.pipeline_mode<synchronous>, transform_indices = @transform_3, window_bounds = array<i64: 16, 32>}, {pipeline_mode = #tpu.pipeline_mode<synchronous>, transform_indices = @transform_4, window_bounds = array<i64: 1, 32>}, {transform_indices = @transform_5, window_bounds = array<i64: 128, 32>}]} {
    %c0 = arith.constant 0 : index
    %c0_0 = arith.constant 0 : index
    %0 = vector.load %arg1[%c0, %c0_0] : memref<128x8xbf16, #tpu.memory_space<vmem>>, vector<128x8xbf16>
    %c0_1 = arith.constant 0 : index
    %c0_2 = arith.constant 0 : index
    %1 = vector.load %arg2[%c0_1, %c0_2] : memref<8x32xbf16, #tpu.memory_space<vmem>>, vector<8x32xbf16>
    %cst = arith.constant dense<0.000000e+00> : vector<128x32xf32>
    %2 = tpu.matmul %0, %1, %cst {dimension_numbers = #tpu.dot_dimension_numbers<[1], [0], [0], [1], [0, 0, 1, 1], [], []>} : vector<128x8xbf16>, vector<8x32xbf16>, vector<128x32xf32> -> vector<128x32xf32>
    %c0_3 = arith.constant 0 : index
    %c0_4 = arith.constant 0 : index
    %3 = vector.load %arg3[%c0_3, %c0_4] : memref<128x16xbf16, #tpu.memory_space<vmem>>, vector<128x16xbf16>
    %c0_5 = arith.constant 0 : index
    %c0_6 = arith.constant 0 : index
    %4 = vector.load %arg4[%c0_5, %c0_6] : memref<16x32xbf16, #tpu.memory_space<vmem>>, vector<16x32xbf16>
    %cst_7 = arith.constant dense<0.000000e+00> : vector<128x32xf32>
    %5 = tpu.matmul %3, %4, %cst_7 {dimension_numbers = #tpu.dot_dimension_numbers<[1], [0], [0], [1], [0, 0, 1, 1], [], []>} : vector<128x16xbf16>, vector<16x32xbf16>, vector<128x32xf32> -> vector<128x32xf32>
    %6 = arith.addf %2, %5 : vector<128x32xf32>
    %c0_8 = arith.constant 0 : index
    %c0_9 = arith.constant 0 : index
    %7 = vector.load %arg5[%c0_8, %c0_9] : memref<1x32xf32, #tpu.memory_space<vmem>>, vector<1x32xf32>
    %8 = vector.broadcast %7 : vector<1x32xf32> to vector<128x32xf32>
    %9 = arith.addf %6, %8 : vector<128x32xf32>
    %cst_10 = arith.constant -3.000000e+01 : f32
    %10 = vector.broadcast %cst_10 : f32 to vector<128x32xf32>
    %11 = arith.maximumf %9, %10 : vector<128x32xf32>
    %cst_11 = arith.constant 0.000000e+00 : f32
    %12 = vector.broadcast %cst_11 : f32 to vector<128x32xf32>
    %13 = arith.subf %12, %11 : vector<128x32xf32>
    %14 = math.exp %13 : vector<128x32xf32>
    %cst_12 = arith.constant 2.000000e+00 : f32
    %15 = vector.broadcast %cst_12 : f32 to vector<128x32xf32>
    %16 = arith.mulf %15, %14 : vector<128x32xf32>
    %17 = arith.mulf %16, %14 : vector<128x32xf32>
    %cst_13 = arith.constant 6.000000e+00 : f32
    %18 = vector.broadcast %cst_13 : f32 to vector<128x32xf32>
    %19 = arith.mulf %18, %14 : vector<128x32xf32>
    %20 = arith.addf %17, %19 : vector<128x32xf32>
    %cst_14 = arith.constant 5.000000e+00 : f32
    %21 = vector.broadcast %cst_14 : f32 to vector<128x32xf32>
    %22 = arith.addf %20, %21 : vector<128x32xf32>
    %cst_15 = arith.constant 2.000000e+00 : f32
    %23 = vector.broadcast %cst_15 : f32 to vector<128x32xf32>
    %24 = arith.mulf %23, %14 : vector<128x32xf32>
    %cst_16 = arith.constant 3.000000e+00 : f32
    %25 = vector.broadcast %cst_16 : f32 to vector<128x32xf32>
    %26 = arith.addf %25, %24 : vector<128x32xf32>
    %27 = arith.mulf %9, %26 : vector<128x32xf32>
    %28 = tpu.reciprocal %22 {approx = true} : vector<128x32xf32> -> vector<128x32xf32>
    %29 = arith.mulf %27, %28 : vector<128x32xf32>
    %30 = arith.truncf %29 : vector<128x32xf32> to vector<128x32xbf16>
    %c0_17 = arith.constant 0 : index
    %c0_18 = arith.constant 0 : index
    %31 = vector.load %arg6[%c0_17, %c0_18] : memref<128x32xbf16, #tpu.memory_space<vmem>>, vector<128x32xbf16>
    tpu.vector_store %arg6[%c0_17, %c0_18], %30 {strides = array<i32>} : memref<128x32xbf16, #tpu.memory_space<vmem>>, vector<128x32xbf16>,
    return
  }
  func.func @transform_0(%arg0: i32) -> (i32, i32) {
    %c0_i32 = arith.constant 0 : i32
    %c0_i32_0 = arith.constant 0 : i32
    return %arg0, %c0_i32 : i32, i32
  }
  func.func @transform_1(%arg0: i32) -> (i32, i32) {
    %c0_i32 = arith.constant 0 : i32
    %c0_i32_0 = arith.constant 0 : i32
    %c0_i32_1 = arith.constant 0 : i32
    return %c0_i32, %c0_i32_0 : i32, i32
  }
  func.func @transform_2(%arg0: i32) -> (i32, i32) {
    %c0_i32 = arith.constant 0 : i32
    %c0_i32_0 = arith.constant 0 : i32
    return %arg0, %c0_i32 : i32, i32
  }
  func.func @transform_3(%arg0: i32) -> (i32, i32) {
    %c0_i32 = arith.constant 0 : i32
    %c0_i32_0 = arith.constant 0 : i32
    %c0_i32_1 = arith.constant 0 : i32
    return %c0_i32, %c0_i32_0 : i32, i32
  }
  func.func @transform_4(%arg0: i32) -> (i32, i32) {
    %c0_i32 = arith.constant 0 : i32
    %c0_i32_0 = arith.constant 0 : i32
    %c0_i32_1 = arith.constant 0 : i32
    return %c0_i32, %c0_i32_0 : i32, i32
  }
  func.func @transform_5(%arg0: i32) -> (i32, i32) {
    %c0_i32 = arith.constant 0 : i32
    %c0_i32_0 = arith.constant 0 : i32
    return %arg0, %c0_i32 : i32, i32
  }
}

</mosaic_0001>

<bundles_post_ra>
// kernel: bottleneck_smish_forward.3
= control target key start
LH: loop header
LB: loop body
LE: loop exit
PB: predicated region body
PF: predicated region fallthrough
CT: control target
= control target key end

     0   :  { %vm251_vm0 = vcmask 130048   ;;  %vm1413_vm1 = vcmask 60416   ;;  %s2670_s1 = inlined_call_operand.vmem [shape: bf16[16,8], index: 1, kind: input, shape index: {}]   ;;  %s2671_s0 = inlined_call_operand.vmem [shape: bf16[512,16], index: 0, kind: input, shape index: {}]   ;;  %s2672_s2 = inlined_call_operand.vmem [shape: f32[1,8], index: 2, kind: input, shape index: {}]   ;;  %s2673_s3 = inlined_call_operand.vmem [shape: bf16[512,8], index: 3, kind: output, shape index: {}]  }
   0x1   :  { %v1678_v0 = vld [vmem:[%s2670_s1] sm:$0xff]  ;;  %v1647_v5 = vld [vmem:[%s2671_s0 + $0x8] sm:$0xff]  ;;  %v1648_v9 = vld [vmem:[%s2671_s0 + $0x10] sm:$0xff] }
   0x2   :  { %v1646_v1 = vld [vmem:[%s2671_s0] sm:$0xff]  ;;  %355 = vmatpush.bf16.msra.mxu0 %v1678_v0  ;;  %1679 = vmatpush.bf16.msra.mxu1 %v1678_v0  ;;  %v1655_v6 = vld [vmem:[%s2671_s0 + $0x48] sm:$0xff]  ;;  %v1656_v10 = vld [vmem:[%s2671_s0 + $0x50] sm:$0xff] }
   0x3   :  { %v1654_v2 = vld [vmem:[%s2671_s0 + $0x40] sm:$0xff]  ;;  %1680 = vmatpush.bf16.msra.mxu2 %v1678_v0  ;;  %1681 = vmatpush.bf16.msra.mxu3 %v1678_v0  ;;  %v1663_v7 = vld [vmem:[%s2671_s0 + $0x88] sm:$0xff]  ;;  %v1664_v11 = vld [vmem:[%s2671_s0 + $0x90] sm:$0xff] }
   0x4   :  { %v1662_v3 = vld [vmem:[%s2671_s0 + $0x80] sm:$0xff]  ;;  %v1671_v8 = vld [vmem:[%s2671_s0 + $0xc8] sm:$0xff]  ;;  %v1672_v12 = vld [vmem:[%s2671_s0 + $0xd0] sm:$0xff] }
   0x5   :  { %v1670_v4 = vld [vmem:[%s2671_s0 + $0xc0] sm:$0xff]  ;;  %1614 = vmatmul.msk.bf16.vlgmr.msra.gmra.mxu0 %vm251_vm0, %v1646_v1  ;;  %1622 = vmatmul.msk.bf16.vlgmr.msra.gmra.mxu1 %vm251_vm0, %v1654_v2  ;;  %v1649_v13 = vld [vmem:[%s2671_s0 + $0x18] sm:$0xff]  ;;  %v1651_v21 = vld [vmem:[%s2671_s0 + $0x28] sm:$0xff] }
   0x6   :  { %1630 = vmatmul.msk.bf16.vlgmr.msra.gmra.mxu2 %vm251_vm0, %v1662_v3  ;;  %1638 = vmatmul.msk.bf16.vlgmr.msra.gmra.mxu3 %vm251_vm0, %v1670_v4  ;;  %v1657_v14 = vld [vmem:[%s2671_s0 + $0x58] sm:$0xff]  ;;  %v1650_v17 = vld [vmem:[%s2671_s0 + $0x20] sm:$0xff]  ;;  %v1659_v22 = vld [vmem:[%s2671_s0 + $0x68] sm:$0xff] }
   0x7   :  { %v1665_v15 = vld [vmem:[%s2671_s0 + $0x98] sm:$0xff]  ;;  %v1658_v18 = vld [vmem:[%s2671_s0 + $0x60] sm:$0xff]  ;;  %v1667_v23 = vld [vmem:[%s2671_s0 + $0xa8] sm:$0xff] }
   0x8   :  { %v1673_v16 = vld [vmem:[%s2671_s0 + $0xd8] sm:$0xff]  ;;  %v1666_v19 = vld [vmem:[%s2671_s0 + $0xa0] sm:$0xff]  ;;  %v1675_v24 = vld [vmem:[%s2671_s0 + $0xe8] sm:$0xff] }
   0x9   :  { %v1674_v20 = vld [vmem:[%s2671_s0 + $0xe0] sm:$0xff]  ;;  %v1652_v25 = vld [vmem:[%s2671_s0 + $0x30] sm:$0xff]  ;;  %v1653_v29 = vld [vmem:[%s2671_s0 + $0x38] sm:$0xff] }
   0xa   :  { %v1660_v26 = vld [vmem:[%s2671_s0 + $0x70] sm:$0xff]  ;;  %v1661_v30 = vld [vmem:[%s2671_s0 + $0x78] sm:$0xff]  ;;  %v2095_v33 = vld [vmem:[%s2672_s2] ss:$0 sm:$0xff] }
   0xb   :  { %v1668_v27 = vld [vmem:[%s2671_s0 + $0xb0] sm:$0xff]  ;;  %v1669_v31 = vld [vmem:[%s2671_s0 + $0xb8] sm:$0xff] }
   0xc   :  { %v1676_v28 = vld [vmem:[%s2671_s0 + $0xf0] sm:$0xff]  ;;  %v1677_v32 = vld [vmem:[%s2671_s0 + $0xf8] sm:$0xff] }
  0x15   :  { %1615 = vmatmul.msk.bf16.gmra.mxu0 %vm251_vm0, %v1647_v5  ;;  %1623 = vmatmul.msk.bf16.gmra.mxu1 %vm251_vm0, %v1655_v6 }
  0x16   :  { %1631 = vmatmul.msk.bf16.gmra.mxu2 %vm251_vm0, %v1663_v7  ;;  %1639 = vmatmul.msk.bf16.gmra.mxu3 %vm251_vm0, %v1671_v8 }
  0x25   :  { %1616 = vmatmul.msk.bf16.gmra.mxu0 %vm251_vm0, %v1648_v9  ;;  %1624 = vmatmul.msk.bf16.gmra.mxu1 %vm251_vm0, %v1656_v10 }
  0x26   :  { %1632 = vmatmul.msk.bf16.gmra.mxu2 %vm251_vm0, %v1664_v11  ;;  %1640 = vmatmul.msk.bf16.gmra.mxu3 %vm251_vm0, %v1672_v12 }
  0x35   :  { %1617 = vmatmul.msk.bf16.gmra.mxu0 %vm251_vm0, %v1649_v13  ;;  %1625 = vmatmul.msk.bf16.gmra.mxu1 %vm251_vm0, %v1657_v14 }
  0x36   :  { %1633 = vmatmul.msk.bf16.gmra.mxu2 %vm251_vm0, %v1665_v15  ;;  %1641 = vmatmul.msk.bf16.gmra.mxu3 %vm251_vm0, %v1673_v16 }
  0x45   :  { %1618 = vmatmul.msk.bf16.gmra.mxu0 %vm251_vm0, %v1650_v17  ;;  %1626 = vmatmul.msk.bf16.gmra.mxu1 %vm251_vm0, %v1658_v18 }
  0x46   :  { %1634 = vmatmul.msk.bf16.gmra.mxu2 %vm251_vm0, %v1666_v19  ;;  %1642 = vmatmul.msk.bf16.gmra.mxu3 %vm251_vm0, %v1674_v20 }
  0x55   :  { %1619 = vmatmul.msk.bf16.gmra.mxu0 %vm251_vm0, %v1651_v21  ;;  %1627 = vmatmul.msk.bf16.gmra.mxu1 %vm251_vm0, %v1659_v22 }
  0x56   :  { %1635 = vmatmul.msk.bf16.gmra.mxu2 %vm251_vm0, %v1667_v23  ;;  %1643 = vmatmul.msk.bf16.gmra.mxu3 %vm251_vm0, %v1675_v24 }
  0x65   :  { %1620 = vmatmul.msk.bf16.gmra.mxu0 %vm251_vm0, %v1652_v25  ;;  %1628 = vmatmul.msk.bf16.gmra.mxu1 %vm251_vm0, %v1660_v26 }
  0x66   :  { %1636 = vmatmul.msk.bf16.gmra.mxu2 %vm251_vm0, %v1668_v27  ;;  %1644 = vmatmul.msk.bf16.gmra.mxu3 %vm251_vm0, %v1676_v28 }
  0x75   :  { %1621 = vmatmul.msk.bf16.gmra.mxu0 %vm251_vm0, %v1653_v29  ;;  %1629 = vmatmul.msk.bf16.gmra.mxu1 %vm251_vm0, %v1661_v30 }
  0x76   :  { %1637 = vmatmul.msk.bf16.gmra.mxu2 %vm251_vm0, %v1669_v31  ;;  %1645 = vmatmul.msk.bf16.gmra.mxu3 %vm251_vm0, %v1677_v32 }
  0x82   :  { %v357_v34 = vpop.f32.mrf.mxu0  ;;  %v397_v35 = vpop.f32.mrf.mxu1 }
  0x83   :  { %v358_v36 = vadd.f32 %v2095_v33, %v357_v34  ;;  %v398_v37 = vadd.f32 %v2095_v33, %v397_v35 }
  0x85   :  { %v517_v38 = vmax.f32 %v358_v36, -30.0  ;;  %v533_v39 = vmax.f32 %v398_v37, -30.0 }
  0x87   :  { %v581_v40 = vsub.f32 0.0, %v517_v38  ;;  %v597_v41 = vsub.f32 0.0, %v533_v39 }
  0x89   :  { %v645_v42 = vmul.f32 1.442695, %v581_v40  ;;  %v677_v43 = vmul.f32 1.442695, %v597_v41  ;;  %v437_v44 = vpop.f32.mrf.mxu2  ;;  %v477_v45 = vpop.f32.mrf.mxu3 }
  0x8a   :  { %v2100_v46 = vadd.f32 %v2095_v33, %v437_v44  ;;  %v2103_v47 = vadd.f32 %v2095_v33, %v477_v45  ;;  %v359_v48 = vpop.f32.mrf.mxu0  ;;  %v399_v49 = vpop.f32.mrf.mxu1 }
  0x8b   :  { %1683 = vpow2.f32 %v645_v42  ;;  %v2106_v50 = vadd.f32 %v2095_v33, %v359_v48  ;;  %v2109_v51 = vadd.f32 %v2095_v33, %v399_v49 }
  0x8c   :  { %1685 = vpow2.f32 %v677_v43  ;;  %v549_v52 = vmax.f32 %v2100_v46, -30.0  ;;  %v565_v53 = vmax.f32 %v2103_v47, -30.0 }
  0x8d   :  { %v518_v54 = vmax.f32 %v2106_v50, -30.0  ;;  %v534_v55 = vmax.f32 %v2109_v51, -30.0 }
  0x8e   :  { %v613_v56 = vsub.f32 0.0, %v549_v52  ;;  %v629_v57 = vsub.f32 0.0, %v565_v53 }
  0x8f   :  { %v582_v58 = vsub.f32 0.0, %v518_v54  ;;  %v598_v59 = vsub.f32 0.0, %v534_v55 }
  0x90   :  { %v709_v60 = vmul.f32 1.442695, %v613_v56  ;;  %v741_v61 = vmul.f32 1.442695, %v629_v57 }
  0x91   :  { %v1684_v62 = vpop.eup %1683  ;;  %v647_v63 = vmul.f32 1.442695, %v582_v58  ;;  %v679_v0 = vmul.f32 1.442695, %v598_v59  ;;  %v439_v1 = vpop.f32.mrf.mxu2 }
  0x92   :  { %v479_v2 = vpop.f32.mrf.mxu3  ;;  %v1686_v3 = vpop.eup %1685  ;;  %v773_v4 = vmul.f32 2.0, %v1684_v62  ;;  %v901_v5 = vmul.f32 6.0, %v1684_v62  ;;  %1687 = vpow2.f32 %v709_v60  ;;  %v2116_v6 = vadd.f32 %v2095_v33, %v439_v1 }
  0x93   :  { %v789_v7 = vmul.f32 2.0, %v1686_v3  ;;  %v917_v8 = vmul.f32 6.0, %v1686_v3  ;;  %1689 = vpow2.f32 %v741_v61  ;;  %v2119_v9 = vadd.f32 %v2095_v33, %v479_v2  ;;  %v362_v10 = vpop.f32.mrf.mxu0  ;;  %v402_v17 = vpop.f32.mrf.mxu1 }
  0x94   :  { %v837_v11 = vmul.f32 %v1684_v62, %v773_v4  ;;  %v1093_v12 = vadd.f32 3.0, %v773_v4  ;;  %1691 = vpow2.f32 %v647_v63  ;;  %v550_v13 = vmax.f32 %v2116_v6, -30.0 }
  0x95   :  { %v853_v14 = vmul.f32 %v1686_v3, %v789_v7  ;;  %v1109_v15 = vadd.f32 3.0, %v789_v7  ;;  %1693 = vpow2.f32 %v679_v0  ;;  %v566_v16 = vmax.f32 %v2119_v9, -30.0 }
  0x96   :  { %v965_v18 = vadd.f32 %v901_v5, %v837_v11  ;;  %v614_v19 = vsub.f32 0.0, %v550_v13  ;;  %v2124_v20 = vadd.f32 %v2095_v33, %v362_v10  ;;  %v1157_v21 = vmul.f32 %v1093_v12, %v358_v36 }
  0x97   :  { %v981_v22 = vadd.f32 %v917_v8, %v853_v14  ;;  %v630_v23 = vsub.f32 0.0, %v566_v16  ;;  %v1173_v26 = vmul.f32 %v1109_v15, %v398_v37  ;;  %v2128_v28 = vadd.f32 %v2095_v33, %v402_v17 }
  0x98   :  { %v1688_v24 = vpop.eup %1687  ;;  %v1029_v25 = vadd.f32 5.0, %v965_v18  ;;  %v519_v27 = vmax.f32 %v2124_v20, -30.0  ;;  %v711_v34 = vmul.f32 1.442695, %v614_v19 }
  0x99   :  { %v1690_v29 = vpop.eup %1689  ;;  %v1045_v30 = vadd.f32 5.0, %v981_v22  ;;  %v805_v31 = vmul.f32 2.0, %v1688_v24  ;;  %v933_v32 = vmul.f32 6.0, %v1688_v24  ;;  %v743_v39 = vmul.f32 1.442695, %v630_v23  ;;  %v442_v40 = vpop.f32.mrf.mxu2 }
  0x9a   :  { %v1692_v35 = vpop.eup %1691  ;;  %1695 = vrcp.f32 %v1029_v25  ;;  %v821_v38 = vmul.f32 2.0, %v1690_v29  ;;  %v949_v36 = vmul.f32 6.0, %v1690_v29  ;;  %v583_v49 = vsub.f32 0.0, %v519_v27  ;;  %v482_v4 = vpop.f32.mrf.mxu3 }
  0x9b   :  { %v1694_v41 = vpop.eup %1693  ;;  %1697 = vrcp.f32 %v1045_v30  ;;  %v869_v37 = vmul.f32 %v1688_v24, %v805_v31  ;;  %v1125_v42 = vadd.f32 3.0, %v805_v31  ;;  %v774_v43 = vmul.f32 2.0, %v1692_v35  ;;  %v364_v10 = vpop.f32.mrf.mxu0 }
  0x9c   :  { %v885_v44 = vmul.f32 %v1690_v29, %v821_v38  ;;  %v1141_v45 = vadd.f32 3.0, %v821_v38  ;;  %v790_v48 = vmul.f32 2.0, %v1694_v41  ;;  %v902_v54 = vmul.f32 6.0, %v1692_v35  ;;  %v404_v13 = vpop.f32.mrf.mxu1 }
  0x9d   :  { %v997_v52 = vadd.f32 %v933_v32, %v869_v37  ;;  %v838_v53 = vmul.f32 %v1692_v35, %v774_v43  ;;  %v1094_v55 = vadd.f32 3.0, %v774_v43  ;;  %v1189_v56 = vmul.f32 %v1125_v42, %v2100_v46 }
  0x9e   :  { %v1013_v57 = vadd.f32 %v949_v36, %v885_v44  ;;  %v854_v58 = vmul.f32 %v1694_v41, %v790_v48  ;;  %v918_v59 = vmul.f32 6.0, %v1694_v41  ;;  %v1205_v61 = vmul.f32 %v1141_v45, %v2103_v47 }
  0x9f   :  { %v1061_v60 = vadd.f32 5.0, %v997_v52  ;;  %v966_v62 = vadd.f32 %v902_v54, %v838_v53  ;;  %v1158_v63 = vmul.f32 %v1094_v55, %v2106_v50  ;;  %v1110_v3 = vadd.f32 3.0, %v790_v48 }
  0xa0   :  { %v1696_v0 = vpop.eup %1695  ;;  %v1077_v1 = vadd.f32 5.0, %v1013_v57  ;;  %v982_v2 = vadd.f32 %v918_v59, %v854_v58  ;;  %1699 = vpow2.f32 %v711_v34  ;;  %v649_v46 = vmul.f32 1.442695, %v583_v49 }
  0xa1   :  { %v1698_v5 = vpop.eup %1697  ;;  %v1285_v7 = vmul.f32 %v1696_v0, %v1157_v21  ;;  %1701 = vrcp.f32 %v1061_v60  ;;  %v1030_v8 = vadd.f32 5.0, %v966_v62  ;;  %v535_v47 = vmax.f32 %v2128_v28, -30.0  ;;  %v444_v19 = vpop.f32.mrf.mxu2 }
  0xa2   :  { %v1301_v11 = vmul.f32 %v1698_v5, %v1173_v26  ;;  %1703 = vrcp.f32 %v1077_v1  ;;  %v1046_v12 = vadd.f32 5.0, %v982_v2  ;;  %v2135_v50 = vadd.f32 %v2095_v33, %v442_v40 }
  0xa3   :  { %v1349_v14 = vpack.c.bf16 %v1285_v7, %v1285_v7  ;;  %1705 = vrcp.f32 %v1030_v8  ;;  %v2138_v15 = vadd.f32 %v2095_v33, %v482_v4  ;;  %v599_v17 = vsub.f32 0.0, %v535_v47 }
  0xa4   :  { %v1365_v16 = vpack.c.bf16 %v1301_v11, %v1301_v11  ;;  %1707 = vrcp.f32 %v1046_v12  ;;  %v2141_v18 = vadd.f32 %v2095_v33, %v364_v10  ;;  %v551_v21 = vmax.f32 %v2135_v50, -30.0 }
  0xa5   :  { %1414 = vst.msk [vmem:[%s2673_s3] sm:$0xf] %vm1413_vm1, %v1349_v14  ;;  %1709 = vpow2.f32 %v743_v39  ;;  %v567_v22 = vmax.f32 %v2138_v15, -30.0  ;;  %v2150_v23 = vadd.f32 %v2095_v33, %v404_v13  ;;  %v1174_v25 = vmul.f32 %v1110_v3, %v2109_v51 }
  0xa6   :  { %v1700_v24 = vpop.eup %1699  ;;  %1430 = vst.msk [vmem:[%s2673_s3 + $0x40] sm:$0xf] %vm1413_vm1, %v1365_v16  ;;  %1711 = vpow2.f32 %v649_v46  ;;  %v681_v26 = vmul.f32 1.442695, %v599_v17  ;;  %v520_v27 = vmax.f32 %v2141_v18, -30.0  ;;  %v615_v31 = vsub.f32 0.0, %v551_v21  ;;  %v484_v46 = vpop.f32.mrf.mxu3 }
  0xa7   :  { %v1702_v29 = vpop.eup %1701  ;;  %v806_v30 = vmul.f32 2.0, %v1700_v24  ;;  %v631_v32 = vsub.f32 0.0, %v567_v22  ;;  %v2159_v34 = vadd.f32 %v2095_v33, %v444_v19  ;;  %v934_v36 = vmul.f32 6.0, %v1700_v24 }
  0xa8   :  { %v1704_v35 = vpop.eup %1703  ;;  %v1317_v38 = vmul.f32 %v1702_v29, %v1189_v56  ;;  %1713 = vpow2.f32 %v681_v26  ;;  %v584_v39 = vsub.f32 0.0, %v520_v27  ;;  %v713_v51 = vmul.f32 1.442695, %v615_v31 }
  0xa9   :  { %v1706_v40 = vpop.eup %1705  ;;  %v1333_v41 = vmul.f32 %v1704_v35, %v1205_v61  ;;  %v870_v37 = vmul.f32 %v1700_v24, %v806_v30  ;;  %v536_v42 = vmax.f32 %v2150_v23, -30.0  ;;  %v1126_v48 = vadd.f32 3.0, %v806_v30 }
  0xaa   :  { %v1708_v43 = vpop.eup %1707  ;;  %v1381_v44 = vpack.c.bf16 %v1317_v38, %v1317_v38  ;;  %v1286_v45 = vmul.f32 %v1706_v40, %v1158_v63  ;;  %v745_v49 = vmul.f32 1.442695, %v631_v32  ;;  %v651_v57 = vmul.f32 1.442695, %v584_v39 }
  0xab   :  { %v1710_v52 = vpop.eup %1709  ;;  %v1397_v53 = vpack.c.bf16 %v1333_v41, %v1333_v41  ;;  %v1302_v54 = vmul.f32 %v1708_v43, %v1174_v25  ;;  %v998_v55 = vadd.f32 %v934_v36, %v870_v37  ;;  %1715 = vpow2.f32 %v713_v51 }
  0xac   :  { %v1712_v56 = vpop.eup %1711  ;;  %1446 = vst.msk [vmem:[%s2673_s3 + $0x80] sm:$0xf] %vm1413_vm1, %v1381_v44  ;;  %v1350_v58 = vpack.c.bf16 %v1286_v45, %v1286_v45  ;;  %v822_v59 = vmul.f32 2.0, %v1710_v52  ;;  %v950_v60 = vmul.f32 6.0, %v1710_v52  ;;  %1717 = vpow2.f32 %v745_v49 }
  0xad   :  { %1462 = vst.msk [vmem:[%s2673_s3 + $0xc0] sm:$0xf] %vm1413_vm1, %v1397_v53  ;;  %v1366_v61 = vpack.c.bf16 %v1302_v54, %v1302_v54  ;;  %v1062_v62 = vadd.f32 5.0, %v998_v55  ;;  %v775_v63 = vmul.f32 2.0, %v1712_v56  ;;  %v903_v0 = vmul.f32 6.0, %v1712_v56  ;;  %v407_v55 = vpop.f32.mrf.mxu1 }
  0xae   :  { %v1714_v1 = vpop.eup %1713  ;;  %1415 = vst.msk [vmem:[%s2673_s3 + $0x4] sm:$0xf] %vm1413_vm1, %v1350_v58  ;;  %v886_v2 = vmul.f32 %v1710_v52, %v822_v59  ;;  %v1142_v3 = vadd.f32 3.0, %v822_v59  ;;  %v600_v4 = vsub.f32 0.0, %v536_v42  ;;  %v1190_v10 = vmul.f32 %v1126_v48, %v2116_v6 }
  0xaf   :  { %1431 = vst.msk [vmem:[%s2673_s3 + $0x44] sm:$0xf] %vm1413_vm1, %v1366_v61  ;;  %1719 = vrcp.f32 %v1062_v62  ;;  %v839_v5 = vmul.f32 %v1712_v56, %v775_v63  ;;  %v1095_v7 = vadd.f32 3.0, %v775_v63  ;;  %v791_v8 = vmul.f32 2.0, %v1714_v1 }
  0xb0   :  { %v1014_v11 = vadd.f32 %v950_v60, %v886_v2  ;;  %v919_v12 = vmul.f32 6.0, %v1714_v1  ;;  %1721 = vpow2.f32 %v651_v57  ;;  %v1206_v47 = vmul.f32 %v1142_v3, %v2119_v9 }
  0xb1   :  { %v967_v13 = vadd.f32 %v903_v0, %v839_v5  ;;  %v855_v14 = vmul.f32 %v1714_v1, %v791_v8  ;;  %v1111_v16 = vadd.f32 3.0, %v791_v8  ;;  %v1716_v17 = vpop.eup %1715  ;;  %v683_v21 = vmul.f32 1.442695, %v600_v4 }
  0xb2   :  { %v1078_v19 = vadd.f32 5.0, %v1014_v11  ;;  %v552_v22 = vmax.f32 %v2159_v34, -30.0  ;;  %v2182_v24 = vadd.f32 %v2095_v33, %v484_v46  ;;  %v1159_v26 = vmul.f32 %v1095_v7, %v2124_v20  ;;  %v1718_v29 = vpop.eup %1717  ;;  %v367_v20 = vpop.f32.mrf.mxu0 }
  0xb3   :  { %v1031_v25 = vadd.f32 5.0, %v967_v13  ;;  %v983_v6 = vadd.f32 %v919_v12, %v855_v14  ;;  %v807_v27 = vmul.f32 2.0, %v1716_v17  ;;  %v1175_v9 = vmul.f32 %v1111_v16, %v2128_v28  ;;  %v487_v13 = vpop.f32.mrf.mxu3 }
  0xb4   :  { %1723 = vrcp.f32 %v1078_v19  ;;  %v935_v30 = vmul.f32 6.0, %v1716_v17  ;;  %v616_v31 = vsub.f32 0.0, %v552_v22  ;;  %v823_v41 = vmul.f32 2.0, %v1718_v29 }
  0xb5   :  { %v1720_v32 = vpop.eup %1719  ;;  %1725 = vrcp.f32 %v1031_v25  ;;  %v1047_v35 = vadd.f32 5.0, %v983_v6  ;;  %v871_v38 = vmul.f32 %v1716_v17, %v807_v27  ;;  %v1127_v36 = vadd.f32 3.0, %v807_v27 }
  0xb6   :  { %v1722_v39 = vpop.eup %1721  ;;  %v1318_v40 = vmul.f32 %v1720_v32, %v1190_v10  ;;  %1727 = vpow2.f32 %v683_v21  ;;  %v568_v37 = vmax.f32 %v2182_v24, -30.0  ;;  %v951_v42 = vmul.f32 6.0, %v1718_v29  ;;  %v447_v10 = vpop.f32.mrf.mxu2 }
  0xb7   :  { %1729 = vrcp.f32 %v1047_v35  ;;  %v999_v51 = vadd.f32 %v935_v30, %v871_v38  ;;  %v776_v43 = vmul.f32 2.0, %v1722_v39  ;;  %v1191_v28 = vmul.f32 %v1127_v36, %v2135_v50 }
  0xb8   :  { %v1382_v44 = vpack.c.bf16 %v1318_v40, %v1318_v40  ;;  %v887_v45 = vmul.f32 %v1718_v29, %v823_v41  ;;  %v1143_v48 = vadd.f32 3.0, %v823_v41  ;;  %v904_v53 = vmul.f32 6.0, %v1722_v39  ;;  %v409_v40 = vpop.f32.mrf.mxu1 }
  0xb9   :  { %v1063_v49 = vadd.f32 5.0, %v999_v51  ;;  %v840_v52 = vmul.f32 %v1722_v39, %v776_v43  ;;  %v715_v54 = vmul.f32 1.442695, %v616_v31  ;;  %v1096_v58 = vadd.f32 3.0, %v776_v43 }
  0xba   :  { %v1724_v57 = vpop.eup %1723  ;;  %1447 = vst.msk [vmem:[%s2673_s3 + $0x84] sm:$0xf] %vm1413_vm1, %v1382_v44  ;;  %v1015_v56 = vadd.f32 %v951_v42, %v887_v45  ;;  %v632_v59 = vsub.f32 0.0, %v568_v37  ;;  %v2193_v60 = vadd.f32 %v2095_v33, %v367_v20  ;;  %v1207_v62 = vmul.f32 %v1143_v48, %v2138_v15  ;;  %v369_v22 = vpop.f32.mrf.mxu0 }
  0xbb   :  { %v1726_v50 = vpop.eup %1725  ;;  %v1334_v61 = vmul.f32 %v1724_v57, %v1206_v47  ;;  %1731 = vrcp.f32 %v1063_v49  ;;  %v968_v63 = vadd.f32 %v904_v53, %v840_v52  ;;  %v2202_v16 = vadd.f32 %v2095_v33, %v407_v55 }
  0xbc   :  { %v1728_v0 = vpop.eup %1727  ;;  %v1287_v1 = vmul.f32 %v1726_v50, %v1159_v26  ;;  %v1079_v2 = vadd.f32 5.0, %v1015_v56  ;;  %1733 = vpow2.f32 %v715_v54  ;;  %v747_v3 = vmul.f32 1.442695, %v632_v59 }
  0xbd   :  { %v1730_v4 = vpop.eup %1729  ;;  %v1398_v5 = vpack.c.bf16 %v1334_v61, %v1334_v61  ;;  %v1032_v7 = vadd.f32 5.0, %v968_v63  ;;  %v792_v8 = vmul.f32 2.0, %v1728_v0  ;;  %v920_v46 = vmul.f32 6.0, %v1728_v0 }
  0xbe   :  { %v1351_v11 = vpack.c.bf16 %v1287_v1, %v1287_v1  ;;  %v1303_v12 = vmul.f32 %v1730_v4, %v1175_v9  ;;  %1735 = vrcp.f32 %v1079_v2  ;;  %v521_v47 = vmax.f32 %v2193_v60, -30.0  ;;  %v449_v56 = vpop.f32.mrf.mxu2 }
  0xbf   :  { %1463 = vst.msk [vmem:[%s2673_s3 + $0xc4] sm:$0xf] %vm1413_vm1, %v1398_v5  ;;  %1737 = vrcp.f32 %v1032_v7  ;;  %v856_v15 = vmul.f32 %v1728_v0, %v792_v8  ;;  %v1112_v14 = vadd.f32 3.0, %v792_v8  ;;  %v2209_v21 = vadd.f32 %v2095_v33, %v447_v10 }
  0xc0   :  { %1416 = vst.msk [vmem:[%s2673_s3 + $0x8] sm:$0xf] %vm1413_vm1, %v1351_v11  ;;  %v1367_v17 = vpack.c.bf16 %v1303_v12, %v1303_v12  ;;  %1739 = vpow2.f32 %v747_v3  ;;  %v585_v19 = vsub.f32 0.0, %v521_v47  ;;  %v1160_v26 = vmul.f32 %v1096_v58, %v2141_v18 }
  0xc1   :  { %v1732_v25 = vpop.eup %1731  ;;  %v984_v6 = vadd.f32 %v920_v46, %v856_v15  ;;  %v537_v27 = vmax.f32 %v2202_v16, -30.0  ;;  %v2214_v29 = vadd.f32 %v2095_v33, %v487_v13  ;;  %v1176_v31 = vmul.f32 %v1112_v14, %v2150_v23  ;;  %v489_v14 = vpop.f32.mrf.mxu3 }
  0xc2   :  { %v1734_v9 = vpop.eup %1733  ;;  %1432 = vst.msk [vmem:[%s2673_s3 + $0x48] sm:$0xf] %vm1413_vm1, %v1367_v17  ;;  %v1319_v30 = vmul.f32 %v1732_v25, %v1191_v28  ;;  %v653_v32 = vmul.f32 1.442695, %v585_v19  ;;  %v553_v35 = vmax.f32 %v2209_v21, -30.0  ;;  %v2223_v39 = vadd.f32 %v2095_v33, %v369_v22 }
  0xc3   :  { %v1048_v38 = vadd.f32 5.0, %v984_v6  ;;  %v808_v18 = vmul.f32 2.0, %v1734_v9  ;;  %v601_v36 = vsub.f32 0.0, %v537_v27  ;;  %v569_v51 = vmax.f32 %v2214_v29, -30.0 }
  0xc4   :  { %v1736_v41 = vpop.eup %1735  ;;  %v1383_v37 = vpack.c.bf16 %v1319_v30, %v1319_v30  ;;  %1741 = vpow2.f32 %v653_v32  ;;  %v617_v20 = vsub.f32 0.0, %v553_v35  ;;  %v936_v44 = vmul.f32 6.0, %v1734_v9 }
  0xc5   :  { %v1738_v42 = vpop.eup %1737  ;;  %v1335_v43 = vmul.f32 %v1736_v41, %v1207_v62  ;;  %1743 = vrcp.f32 %v1048_v38  ;;  %v872_v23 = vmul.f32 %v1734_v9, %v808_v18  ;;  %v685_v48 = vmul.f32 1.442695, %v601_v36 }
  0xc6   :  { %v1740_v28 = vpop.eup %1739  ;;  %1448 = vst.msk [vmem:[%s2673_s3 + $0x88] sm:$0xf] %vm1413_vm1, %v1383_v37  ;;  %v1288_v45 = vmul.f32 %v1738_v42, %v1160_v26  ;;  %v717_v49 = vmul.f32 1.442695, %v617_v20  ;;  %v2231_v52 = vadd.f32 %v2095_v33, %v409_v40  ;;  %v1128_v55 = vadd.f32 3.0, %v808_v18 }
  0xc7   :  { %v1399_v53 = vpack.c.bf16 %v1335_v43, %v1335_v43  ;;  %v1000_v54 = vadd.f32 %v936_v44, %v872_v23  ;;  %v824_v57 = vmul.f32 2.0, %v1740_v28  ;;  %v952_v59 = vmul.f32 6.0, %v1740_v28 }
  0xc8   :  { %v1352_v58 = vpack.c.bf16 %v1288_v45, %v1288_v45  ;;  %1745 = vpow2.f32 %v685_v48  ;;  %v633_v50 = vsub.f32 0.0, %v569_v51  ;;  %v522_v2 = vmax.f32 %v2223_v39, -30.0 }
  0xc9   :  { %1464 = vst.msk [vmem:[%s2673_s3 + $0xc8] sm:$0xf] %vm1413_vm1, %v1399_v53  ;;  %v1064_v61 = vadd.f32 5.0, %v1000_v54  ;;  %v888_v62 = vmul.f32 %v1740_v28, %v824_v57  ;;  %v1144_v63 = vadd.f32 3.0, %v824_v57  ;;  %1747 = vpow2.f32 %v717_v49 }
  0xca   :  { %v1742_v0 = vpop.eup %1741  ;;  %1417 = vst.msk [vmem:[%s2673_s3 + $0xc] sm:$0xf] %vm1413_vm1, %v1352_v58  ;;  %v749_v1 = vmul.f32 1.442695, %v633_v50  ;;  %v538_v3 = vmax.f32 %v2231_v52, -30.0  ;;  %v2244_v4 = vadd.f32 %v2095_v33, %v449_v56  ;;  %v586_v11 = vsub.f32 0.0, %v522_v2 }
  0xcb   :  { %v1744_v5 = vpop.eup %1743  ;;  %1749 = vrcp.f32 %v1064_v61  ;;  %v1016_v7 = vadd.f32 %v952_v59, %v888_v62  ;;  %v777_v8 = vmul.f32 2.0, %v1742_v0  ;;  %v905_v10 = vmul.f32 6.0, %v1742_v0  ;;  %v372_v62 = vpop.f32.mrf.mxu0 }
  0xcc   :  { %v1304_v46 = vmul.f32 %v1744_v5, %v1176_v31  ;;  %1751 = vpow2.f32 %v749_v1  ;;  %v1192_v12 = vmul.f32 %v1128_v55, %v2159_v34  ;;  %v602_v15 = vsub.f32 0.0, %v538_v3  ;;  %v452_v3 = vpop.f32.mrf.mxu2 }
  0xcd   :  { %v1080_v47 = vadd.f32 5.0, %v1016_v7  ;;  %v841_v13 = vmul.f32 %v1742_v0, %v777_v8  ;;  %v1208_v22 = vmul.f32 %v1144_v63, %v2182_v24  ;;  %v655_v25 = vmul.f32 1.442695, %v586_v11  ;;  %v412_v63 = vpop.f32.mrf.mxu1 }
  0xce   :  { %v1746_v17 = vpop.eup %1745  ;;  %v1368_v19 = vpack.c.bf16 %v1304_v46, %v1304_v46  ;;  %v554_v26 = vmax.f32 %v2244_v4, -30.0  ;;  %v1097_v9 = vadd.f32 3.0, %v777_v8  ;;  %v2254_v32 = vadd.f32 %v2095_v33, %v489_v14 }
  0xcf   :  { %v1748_v6 = vpop.eup %1747  ;;  %1753 = vrcp.f32 %v1080_v47  ;;  %v969_v27 = vadd.f32 %v905_v10, %v841_v13  ;;  %v793_v30 = vmul.f32 2.0, %v1746_v17  ;;  %v921_v34 = vmul.f32 6.0, %v1746_v17 }
  0xd0   :  { %1433 = vst.msk [vmem:[%s2673_s3 + $0x4c] sm:$0xf] %vm1413_vm1, %v1368_v19  ;;  %v809_v31 = vmul.f32 2.0, %v1748_v6  ;;  %1755 = vpow2.f32 %v655_v25  ;;  %v687_v36 = vmul.f32 1.442695, %v602_v15  ;;  %v937_v20 = vmul.f32 6.0, %v1748_v6 }
  0xd1   :  { %v1750_v24 = vpop.eup %1749  ;;  %v1033_v35 = vadd.f32 5.0, %v969_v27  ;;  %v857_v38 = vmul.f32 %v1746_v17, %v793_v30  ;;  %v1113_v18 = vadd.f32 3.0, %v793_v30  ;;  %v618_v51 = vsub.f32 0.0, %v554_v26 }
  0xd2   :  { %v1752_v40 = vpop.eup %1751  ;;  %v1320_v41 = vmul.f32 %v1750_v24, %v1192_v12  ;;  %v873_v37 = vmul.f32 %v1748_v6, %v809_v31  ;;  %v1161_v42 = vmul.f32 %v1097_v9, %v2193_v60  ;;  %v1129_v48 = vadd.f32 3.0, %v809_v31 }
  0xd3   :  { %1757 = vrcp.f32 %v1033_v35  ;;  %v985_v43 = vadd.f32 %v921_v34, %v857_v38  ;;  %v825_v23 = vmul.f32 2.0, %v1752_v40  ;;  %v1177_v28 = vmul.f32 %v1113_v18, %v2202_v16  ;;  %v492_v35 = vpop.f32.mrf.mxu3 }
  0xd4   :  { %v1384_v44 = vpack.c.bf16 %v1320_v41, %v1320_v41  ;;  %v1001_v45 = vadd.f32 %v937_v20, %v873_v37  ;;  %v953_v55 = vmul.f32 6.0, %v1752_v40  ;;  %1759 = vpow2.f32 %v687_v36 }
  0xd5   :  { %v1754_v49 = vpop.eup %1753  ;;  %v1049_v53 = vadd.f32 5.0, %v985_v43  ;;  %v889_v54 = vmul.f32 %v1752_v40, %v825_v23  ;;  %v719_v58 = vmul.f32 1.442695, %v618_v51  ;;  %v570_v59 = vmax.f32 %v2254_v32, -30.0 }
  0xd6   :  { %v1756_v57 = vpop.eup %1755  ;;  %1449 = vst.msk [vmem:[%s2673_s3 + $0x8c] sm:$0xf] %vm1413_vm1, %v1384_v44  ;;  %v1336_v60 = vmul.f32 %v1754_v49, %v1208_v22  ;;  %v1065_v56 = vadd.f32 5.0, %v1001_v45  ;;  %v1145_v50 = vadd.f32 3.0, %v825_v23  ;;  %v2268_v12 = vadd.f32 %v2095_v33, %v372_v62 }
  0xd7   :  { %1761 = vrcp.f32 %v1049_v53  ;;  %v1017_v16 = vadd.f32 %v953_v55, %v889_v54  ;;  %v778_v61 = vmul.f32 2.0, %v1756_v57  ;;  %v906_v1 = vmul.f32 6.0, %v1756_v57 }
  0xd8   :  { %v1400_v0 = vpack.c.bf16 %v1336_v60, %v1336_v60  ;;  %1763 = vrcp.f32 %v1065_v56  ;;  %v634_v2 = vsub.f32 0.0, %v570_v59  ;;  %v2271_v47 = vadd.f32 %v2095_v33, %v412_v63 }
  0xd9   :  { %v1758_v5 = vpop.eup %1757  ;;  %v1081_v7 = vadd.f32 5.0, %v1017_v16  ;;  %v842_v8 = vmul.f32 %v1756_v57, %v778_v61  ;;  %v1098_v46 = vadd.f32 3.0, %v778_v61  ;;  %1765 = vpow2.f32 %v719_v58  ;;  %v414_v16 = vpop.f32.mrf.mxu1 }
  0xda   :  { %1465 = vst.msk [vmem:[%s2673_s3 + $0xcc] sm:$0xf] %vm1413_vm1, %v1400_v0  ;;  %v1289_v10 = vmul.f32 %v1758_v5, %v1161_v42  ;;  %v751_v11 = vmul.f32 1.442695, %v634_v2  ;;  %v1760_v13 = vpop.eup %1759  ;;  %v1193_v15 = vmul.f32 %v1129_v48, %v2209_v21  ;;  %v2275_v17 = vadd.f32 %v2095_v33, %v452_v3 }
  0xdb   :  { %1767 = vrcp.f32 %v1081_v7  ;;  %v970_v14 = vadd.f32 %v906_v1, %v842_v8  ;;  %v1209_v22 = vmul.f32 %v1145_v50, %v2214_v29  ;;  %v794_v25 = vmul.f32 2.0, %v1760_v13 }
  0xdc   :  { %v1353_v19 = vpack.c.bf16 %v1289_v10, %v1289_v10  ;;  %1769 = vpow2.f32 %v751_v11  ;;  %v1162_v27 = vmul.f32 %v1098_v46, %v2223_v39  ;;  %v523_v9 = vmax.f32 %v2268_v12, -30.0  ;;  %v454_v46 = vpop.f32.mrf.mxu2 }
  0xdd   :  { %v1762_v26 = vpop.eup %1761  ;;  %v1034_v6 = vadd.f32 5.0, %v970_v14  ;;  %v539_v30 = vmax.f32 %v2271_v47, -30.0  ;;  %v858_v31 = vmul.f32 %v1760_v13, %v794_v25  ;;  %v922_v24 = vmul.f32 6.0, %v1760_v13 }
  0xde   :  { %v1764_v34 = vpop.eup %1763  ;;  %1418 = vst.msk [vmem:[%s2673_s3 + $0x10] sm:$0xf] %vm1413_vm1, %v1353_v19  ;;  %v1305_v21 = vmul.f32 %v1762_v26, %v1177_v28  ;;  %v555_v29 = vmax.f32 %v2275_v17, -30.0  ;;  %v587_v39 = vsub.f32 0.0, %v523_v9  ;;  %v1114_v37 = vadd.f32 3.0, %v794_v25  ;;  %v374_v28 = vpop.f32.mrf.mxu0 }
  0xdf   :  { %v1766_v38 = vpop.eup %1765  ;;  %v1321_v18 = vmul.f32 %v1764_v34, %v1193_v15  ;;  %1771 = vrcp.f32 %v1034_v6  ;;  %v603_v36 = vsub.f32 0.0, %v539_v30  ;;  %v986_v41 = vadd.f32 %v922_v24, %v858_v31 }
  0xe0   :  { %v1369_v40 = vpack.c.bf16 %v1305_v21, %v1305_v21  ;;  %v810_v20 = vmul.f32 2.0, %v1766_v38  ;;  %v657_v43 = vmul.f32 1.442695, %v587_v39  ;;  %v2287_v44 = vadd.f32 %v2095_v33, %v492_v35 }
  0xe1   :  { %v1768_v51 = vpop.eup %1767  ;;  %v1385_v42 = vpack.c.bf16 %v1321_v18, %v1321_v18  ;;  %v689_v23 = vmul.f32 1.442695, %v603_v36  ;;  %v1050_v49 = vadd.f32 5.0, %v986_v41  ;;  %v938_v54 = vmul.f32 6.0, %v1766_v38 }
  0xe2   :  { %v1770_v45 = vpop.eup %1769  ;;  %1434 = vst.msk [vmem:[%s2673_s3 + $0x50] sm:$0xf] %vm1413_vm1, %v1369_v40  ;;  %v1337_v48 = vmul.f32 %v1768_v51, %v1209_v22  ;;  %v874_v53 = vmul.f32 %v1766_v38, %v810_v20  ;;  %v1130_v55 = vadd.f32 3.0, %v810_v20  ;;  %1773 = vpow2.f32 %v657_v43 }
  0xe3   :  { %1450 = vst.msk [vmem:[%s2673_s3 + $0x90] sm:$0xf] %vm1413_vm1, %v1385_v42  ;;  %v826_v57 = vmul.f32 2.0, %v1770_v45  ;;  %v619_v60 = vsub.f32 0.0, %v555_v29  ;;  %1775 = vrcp.f32 %v1050_v49  ;;  %v954_v59 = vmul.f32 6.0, %v1770_v45 }
  0xe4   :  { %v1401_v56 = vpack.c.bf16 %v1337_v48, %v1337_v48  ;;  %v1002_v58 = vadd.f32 %v938_v54, %v874_v53  ;;  %1777 = vpow2.f32 %v689_v23  ;;  %v571_v2 = vmax.f32 %v2287_v44, -30.0 }
  0xe5   :  { %v1772_v50 = vpop.eup %1771  ;;  %v890_v61 = vmul.f32 %v1770_v45, %v826_v57  ;;  %v1146_v62 = vadd.f32 3.0, %v826_v57  ;;  %v721_v63 = vmul.f32 1.442695, %v619_v60  ;;  %v2303_v3 = vadd.f32 %v2095_v33, %v374_v28 }
  0xe6   :  { %1466 = vst.msk [vmem:[%s2673_s3 + $0xd0] sm:$0xf] %vm1413_vm1, %v1401_v56  ;;  %v1290_v0 = vmul.f32 %v1772_v50, %v1162_v27  ;;  %v1066_v1 = vadd.f32 5.0, %v1002_v58  ;;  %v1178_v5 = vmul.f32 %v1114_v37, %v2231_v52  ;;  %v2307_v8 = vadd.f32 %v2095_v33, %v414_v16  ;;  %v494_v52 = vpop.f32.mrf.mxu3  ;;  %v377_v31 = vpop.f32.mrf.mxu0 }
  0xe7   :  { %v1018_v7 = vadd.f32 %v954_v59, %v890_v61  ;;  %1779 = vpow2.f32 %v721_v63  ;;  %v635_v11 = vsub.f32 0.0, %v571_v2  ;;  %v524_v13 = vmax.f32 %v2303_v3, -30.0  ;;  %v417_v2 = vpop.f32.mrf.mxu1 }
  0xe8   :  { %v1354_v10 = vpack.c.bf16 %v1290_v0, %v1290_v0  ;;  %1781 = vrcp.f32 %v1066_v1  ;;  %v1774_v15 = vpop.eup %1773  ;;  %v1194_v14 = vmul.f32 %v1130_v55, %v2244_v4  ;;  %v1210_v22 = vmul.f32 %v1146_v62, %v2254_v32 }
  0xe9   :  { %v1082_v19 = vadd.f32 5.0, %v1018_v7  ;;  %v540_v25 = vmax.f32 %v2307_v8, -30.0  ;;  %v1776_v26 = vpop.eup %1775  ;;  %v779_v6 = vmul.f32 2.0, %v1774_v15  ;;  %v907_v27 = vmul.f32 6.0, %v1774_v15 }
  0xea   :  { %1419 = vst.msk [vmem:[%s2673_s3 + $0x14] sm:$0xf] %vm1413_vm1, %v1354_v10  ;;  %v753_v9 = vmul.f32 1.442695, %v635_v11  ;;  %v2318_v30 = vadd.f32 %v2095_v33, %v454_v46  ;;  %v1778_v34 = vpop.eup %1777  ;;  %v1306_v4 = vmul.f32 %v1776_v26, %v1178_v5  ;;  %v588_v21 = vsub.f32 0.0, %v524_v13 }
  0xeb   :  { %1783 = vrcp.f32 %v1082_v19  ;;  %v604_v32 = vsub.f32 0.0, %v540_v25  ;;  %v843_v24 = vmul.f32 %v1774_v15, %v779_v6  ;;  %v795_v29 = vmul.f32 2.0, %v1778_v34 }
  0xec   :  { %v923_v35 = vmul.f32 6.0, %v1778_v34  ;;  %v2321_v38 = vadd.f32 %v2095_v33, %v494_v52  ;;  %v1370_v39 = vpack.c.bf16 %v1306_v4, %v1306_v4  ;;  %1785 = vpow2.f32 %v753_v9 }
  0xed   :  { %v1780_v18 = vpop.eup %1779  ;;  %v659_v36 = vmul.f32 1.442695, %v588_v21  ;;  %v691_v40 = vmul.f32 1.442695, %v604_v32  ;;  %v971_v37 = vadd.f32 %v907_v27, %v843_v24  ;;  %v1099_v20 = vadd.f32 3.0, %v779_v6 }
  0xee   :  { %v1782_v41 = vpop.eup %1781  ;;  %v859_v51 = vmul.f32 %v1778_v34, %v795_v29  ;;  %v2324_v42 = vadd.f32 %v2095_v33, %v377_v31  ;;  %1435 = vst.msk [vmem:[%s2673_s3 + $0x54] sm:$0xf] %vm1413_vm1, %v1370_v39  ;;  %v1115_v23 = vadd.f32 3.0, %v795_v29  ;;  %v811_v28 = vmul.f32 2.0, %v1780_v18  ;;  %v457_v29 = vpop.f32.mrf.mxu2 }
  0xef   :  { %v1322_v43 = vmul.f32 %v1782_v41, %v1194_v14  ;;  %1787 = vpow2.f32 %v659_v36  ;;  %v1035_v45 = vadd.f32 5.0, %v971_v37  ;;  %v939_v49 = vmul.f32 6.0, %v1780_v18  ;;  %v379_v41 = vpop.f32.mrf.mxu0 }
  0xf0   :  { %v987_v48 = vadd.f32 %v923_v35, %v859_v51  ;;  %1789 = vpow2.f32 %v691_v40  ;;  %v875_v55 = vmul.f32 %v1780_v18, %v811_v28  ;;  %v1131_v57 = vadd.f32 3.0, %v811_v28  ;;  %v497_v35 = vpop.f32.mrf.mxu3 }
  0xf1   :  { %v1784_v53 = vpop.eup %1783  ;;  %v1386_v54 = vpack.c.bf16 %v1322_v43, %v1322_v43  ;;  %v556_v33 = vmax.f32 %v2318_v30, -30.0  ;;  %1791 = vrcp.f32 %v1035_v45  ;;  %v572_v58 = vmax.f32 %v2321_v38, -30.0 }
  0xf2   :  { %v1338_v60 = vmul.f32 %v1784_v53, %v1210_v22  ;;  %v1051_v56 = vadd.f32 5.0, %v987_v48  ;;  %v1786_v59 = vpop.eup %1785  ;;  %v1163_v16 = vmul.f32 %v1099_v20, %v2268_v12  ;;  %v1003_v50 = vadd.f32 %v939_v49, %v875_v55  ;;  %v419_v55 = vpop.f32.mrf.mxu1 }
  0xf3   :  { %1451 = vst.msk [vmem:[%s2673_s3 + $0x94] sm:$0xf] %vm1413_vm1, %v1386_v54  ;;  %v620_v61 = vsub.f32 0.0, %v556_v33  ;;  %v525_v62 = vmax.f32 %v2324_v42, -30.0  ;;  %v1179_v0 = vmul.f32 %v1115_v23, %v2271_v47  ;;  %v827_v1 = vmul.f32 2.0, %v1786_v59 }
  0xf4   :  { %v1402_v63 = vpack.c.bf16 %v1338_v60, %v1338_v60  ;;  %1793 = vrcp.f32 %v1051_v56  ;;  %v1067_v7 = vadd.f32 5.0, %v1003_v50  ;;  %v1195_v46 = vmul.f32 %v1131_v57, %v2275_v17 }
  0xf5   :  { %v1788_v5 = vpop.eup %1787  ;;  %v723_v10 = vmul.f32 1.442695, %v620_v61  ;;  %v636_v11 = vsub.f32 0.0, %v572_v58  ;;  %v891_v12 = vmul.f32 %v1786_v59, %v827_v1  ;;  %v955_v15 = vmul.f32 6.0, %v1786_v59 }
  0xf6   :  { %v1790_v13 = vpop.eup %1789  ;;  %1467 = vst.msk [vmem:[%s2673_s3 + $0xd4] sm:$0xf] %vm1413_vm1, %v1402_v63  ;;  %v1147_v14 = vadd.f32 3.0, %v827_v1  ;;  %v780_v19 = vmul.f32 2.0, %v1788_v5  ;;  %1795 = vrcp.f32 %v1067_v7  ;;  %v589_v25 = vsub.f32 0.0, %v525_v62 }
  0xf7   :  { %v796_v47 = vmul.f32 2.0, %v1790_v13  ;;  %v755_v22 = vmul.f32 1.442695, %v636_v11  ;;  %v1792_v52 = vpop.eup %1791  ;;  %v1019_v26 = vadd.f32 %v955_v15, %v891_v12  ;;  %v908_v17 = vmul.f32 6.0, %v1788_v5 }
  0xf8   :  { %v844_v6 = vmul.f32 %v1788_v5, %v780_v19  ;;  %v924_v27 = vmul.f32 6.0, %v1790_v13  ;;  %v1291_v9 = vmul.f32 %v1792_v52, %v1163_v16  ;;  %v1211_v34 = vmul.f32 %v1147_v14, %v2287_v44  ;;  %v2348_v44 = vld [vmem:[%s2672_s2] ss:$0 sm:$0xff] }
  0xf9   :  { %v860_v4 = vmul.f32 %v1790_v13, %v796_v47  ;;  %1797 = vpow2.f32 %v723_v10  ;;  %v1083_v32 = vadd.f32 5.0, %v1019_v26  ;;  %v1100_v24 = vadd.f32 3.0, %v780_v19 }
  0xfa   :  { %v1794_v21 = vpop.eup %1793  ;;  %v972_v31 = vadd.f32 %v908_v17, %v844_v6  ;;  %1799 = vpow2.f32 %v755_v22  ;;  %v1355_v18 = vpack.c.bf16 %v1291_v9, %v1291_v9  ;;  %v1116_v40 = vadd.f32 3.0, %v796_v47 }
  0xfb   :  { %v1307_v39 = vmul.f32 %v1794_v21, %v1179_v0  ;;  %v988_v36 = vadd.f32 %v924_v27, %v860_v4  ;;  %1801 = vrcp.f32 %v1083_v32  ;;  %v661_v20 = vmul.f32 1.442695, %v589_v25  ;;  %v459_v4 = vpop.f32.mrf.mxu2 }
  0xfc   :  { %v1036_v37 = vadd.f32 5.0, %v972_v31  ;;  %v2351_v51 = vadd.f32 %v2348_v44, %v417_v2  ;;  %v1796_v43 = vpop.eup %1795  ;;  %1420 = vst.msk [vmem:[%s2673_s3 + $0x18] sm:$0xf] %vm1413_vm1, %v1355_v18  ;;  %v2358_v45 = vadd.f32 %v2348_v44, %v457_v29  ;;  %v2361_v48 = vadd.f32 %v2348_v44, %v497_v35  ;;  %v382_v29 = vpop.f32.mrf.mxu0 }
  0xfd   :  { %v1371_v23 = vpack.c.bf16 %v1307_v39, %v1307_v39  ;;  %v1052_v28 = vadd.f32 5.0, %v988_v36  ;;  %v1323_v49 = vmul.f32 %v1796_v43, %v1195_v46  ;;  %v2365_v54 = vadd.f32 %v2348_v44, %v379_v41 }
  0xfe   :  { %1803 = vrcp.f32 %v1036_v37  ;;  %v541_v53 = vmax.f32 %v2351_v51, -30.0  ;;  %v1164_v33 = vmul.f32 %v1100_v24, %v2303_v3  ;;  %v557_v60 = vmax.f32 %v2358_v45, -30.0  ;;  %v499_v24 = vpop.f32.mrf.mxu3 }
  0xff   :  { %v1798_v57 = vpop.eup %1797  ;;  %1436 = vst.msk [vmem:[%s2673_s3 + $0x58] sm:$0xf] %vm1413_vm1, %v1371_v23  ;;  %1805 = vrcp.f32 %v1052_v28  ;;  %v573_v56 = vmax.f32 %v2361_v48, -30.0  ;;  %v1387_v59 = vpack.c.bf16 %v1323_v49, %v1323_v49  ;;  %v1180_v16 = vmul.f32 %v1116_v40, %v2307_v8 }
 0x100   :  { %v1800_v58 = vpop.eup %1799  ;;  %v812_v50 = vmul.f32 2.0, %v1798_v57  ;;  %1807 = vpow2.f32 %v661_v20  ;;  %v605_v62 = vsub.f32 0.0, %v541_v53  ;;  %v621_v63 = vsub.f32 0.0, %v557_v60 }
 0x101   :  { %v828_v61 = vmul.f32 2.0, %v1800_v58  ;;  %v2376_v0 = vadd.f32 %v2348_v44, %v419_v55  ;;  %v1802_v1 = vpop.eup %1801  ;;  %1452 = vst.msk [vmem:[%s2673_s3 + $0x98] sm:$0xf] %vm1413_vm1, %v1387_v59  ;;  %v940_v2 = vmul.f32 6.0, %v1798_v57  ;;  %v637_v5 = vsub.f32 0.0, %v573_v56  ;;  %v422_v59 = vpop.f32.mrf.mxu1 }
 0x102   :  { %v876_v3 = vmul.f32 %v1798_v57, %v812_v50  ;;  %v526_v7 = vmax.f32 %v2365_v54, -30.0  ;;  %v1339_v8 = vmul.f32 %v1802_v1, %v1211_v34  ;;  %v956_v10 = vmul.f32 6.0, %v1800_v58 }
 0x103   :  { %v892_v46 = vmul.f32 %v1800_v58, %v828_v61  ;;  %v693_v11 = vmul.f32 1.442695, %v605_v62  ;;  %v1132_v15 = vadd.f32 3.0, %v812_v50  ;;  %v1148_v14 = vadd.f32 3.0, %v828_v61 }
 0x104   :  { %v1804_v13 = vpop.eup %1803  ;;  %v1004_v12 = vadd.f32 %v940_v2, %v876_v3  ;;  %v725_v19 = vmul.f32 1.442695, %v621_v63  ;;  %v1403_v22 = vpack.c.bf16 %v1339_v8, %v1339_v8  ;;  %v757_v26 = vmul.f32 1.442695, %v637_v5 }
 0x105   :  { %v1806_v47 = vpop.eup %1805  ;;  %v1292_v25 = vmul.f32 %v1804_v13, %v1164_v33  ;;  %v1020_v52 = vadd.f32 %v956_v10, %v892_v46  ;;  %1809 = vpow2.f32 %v693_v11  ;;  %v590_v9 = vsub.f32 0.0, %v526_v7 }
 0x106   :  { %v1808_v6 = vpop.eup %1807  ;;  %v1308_v17 = vmul.f32 %v1806_v47, %v1180_v16  ;;  %v1068_v27 = vadd.f32 5.0, %v1004_v12  ;;  %1468 = vst.msk [vmem:[%s2673_s3 + $0xd8] sm:$0xf] %vm1413_vm1, %v1403_v22  ;;  %v542_v39 = vmax.f32 %v2376_v0, -30.0  ;;  %v1196_v36 = vmul.f32 %v1132_v15, %v2318_v30 }
 0x107   :  { %v1356_v34 = vpack.c.bf16 %v1292_v25, %v1292_v25  ;;  %v1084_v21 = vadd.f32 5.0, %v1020_v52  ;;  %v781_v32 = vmul.f32 2.0, %v1808_v6  ;;  %v909_v31 = vmul.f32 6.0, %v1808_v6 }
 0x108   :  { %v1372_v35 = vpack.c.bf16 %v1308_v17, %v1308_v17  ;;  %1811 = vrcp.f32 %v1068_v27  ;;  %v663_v18 = vmul.f32 1.442695, %v590_v9  ;;  %v2394_v41 = vadd.f32 %v2348_v44, %v459_v4 }
 0x109   :  { %1421 = vst.msk [vmem:[%s2673_s3 + $0x1c] sm:$0xf] %vm1413_vm1, %v1356_v34  ;;  %1813 = vrcp.f32 %v1084_v21  ;;  %v845_v40 = vmul.f32 %v1808_v6, %v781_v32  ;;  %v606_v37 = vsub.f32 0.0, %v542_v39  ;;  %v2401_v20 = vadd.f32 %v2348_v44, %v499_v24 }
 0x10a   :  { %1437 = vst.msk [vmem:[%s2673_s3 + $0x5c] sm:$0xf] %vm1413_vm1, %v1372_v35  ;;  %1815 = vpow2.f32 %v725_v19  ;;  %v2404_v43 = vadd.f32 %v2348_v44, %v382_v29  ;;  %v1101_v30 = vadd.f32 3.0, %v781_v32  ;;  %v558_v28 = vmax.f32 %v2394_v41, -30.0 }
 0x10b   :  { %v973_v23 = vadd.f32 %v909_v31, %v845_v40  ;;  %1817 = vpow2.f32 %v757_v26  ;;  %v1810_v49 = vpop.eup %1809  ;;  %v695_v53 = vmul.f32 1.442695, %v606_v37  ;;  %v574_v55 = vmax.f32 %v2401_v20, -30.0 }
 0x10c   :  { %1819 = vpow2.f32 %v663_v18  ;;  %v527_v57 = vmax.f32 %v2404_v43, -30.0  ;;  %v797_v60 = vmul.f32 2.0, %v1810_v49  ;;  %v925_v56 = vmul.f32 6.0, %v1810_v49 }
 0x10d   :  { %v1037_v33 = vadd.f32 5.0, %v973_v23  ;;  %v622_v58 = vsub.f32 0.0, %v558_v28  ;;  %v1212_v50 = vmul.f32 %v1148_v14, %v2321_v38  ;;  %1821 = vpow2.f32 %v695_v53  ;;  %v462_v23 = vpop.f32.mrf.mxu2 }
 0x10e   :  { %v1812_v16 = vpop.eup %1811  ;;  %v638_v61 = vsub.f32 0.0, %v574_v55  ;;  %v591_v62 = vsub.f32 0.0, %v527_v57  ;;  %v1165_v3 = vmul.f32 %v1101_v30, %v2324_v42  ;;  %v861_v2 = vmul.f32 %v1810_v49, %v797_v60  ;;  %v502_v30 = vpop.f32.mrf.mxu3 }
 0x10f   :  { %v1814_v63 = vpop.eup %1813  ;;  %v1324_v1 = vmul.f32 %v1812_v16, %v1196_v36  ;;  %1823 = vrcp.f32 %v1037_v33  ;;  %v1117_v8 = vadd.f32 3.0, %v797_v60  ;;  %v727_v46 = vmul.f32 1.442695, %v622_v58 }
 0x110   :  { %v1816_v5 = vpop.eup %1815  ;;  %v1340_v7 = vmul.f32 %v1814_v63, %v1212_v50  ;;  %v2412_v10 = vadd.f32 %v2348_v44, %v422_v59  ;;  %v989_v12 = vadd.f32 %v925_v56, %v861_v2  ;;  %v759_v15 = vmul.f32 1.442695, %v638_v61 }
 0x111   :  { %v1818_v11 = vpop.eup %1817  ;;  %v1388_v13 = vpack.c.bf16 %v1324_v1, %v1324_v1  ;;  %v813_v38 = vmul.f32 2.0, %v1816_v5  ;;  %v941_v47 = vmul.f32 6.0, %v1816_v5  ;;  %v665_v25 = vmul.f32 1.442695, %v591_v62 }
 0x112   :  { %v1820_v14 = vpop.eup %1819  ;;  %v1404_v19 = vpack.c.bf16 %v1340_v7, %v1340_v7  ;;  %v829_v22 = vmul.f32 2.0, %v1818_v11  ;;  %v1053_v42 = vadd.f32 5.0, %v989_v12  ;;  %v1181_v27 = vmul.f32 %v1117_v8, %v2351_v51  ;;  %v384_v7 = vpop.f32.mrf.mxu0 }
 0x113   :  { %1453 = vst.msk [vmem:[%s2673_s3 + $0x9c] sm:$0xf] %vm1413_vm1, %v1388_v13  ;;  %v877_v52 = vmul.f32 %v1816_v5, %v813_v38  ;;  %v1133_v26 = vadd.f32 3.0, %v813_v38  ;;  %v782_v6 = vmul.f32 2.0, %v1820_v14  ;;  %v1822_v17 = vpop.eup %1821  ;;  %v957_v4 = vmul.f32 6.0, %v1818_v11 }
 0x114   :  { %1469 = vst.msk [vmem:[%s2673_s3 + $0xdc] sm:$0xf] %vm1413_vm1, %v1404_v19  ;;  %v893_v9 = vmul.f32 %v1818_v11, %v829_v22  ;;  %1825 = vpow2.f32 %v727_v46  ;;  %v910_v31 = vmul.f32 6.0, %v1820_v14  ;;  %v1149_v18 = vadd.f32 3.0, %v829_v22 }
 0x115   :  { %v1824_v34 = vpop.eup %1823  ;;  %1827 = vrcp.f32 %v1053_v42  ;;  %v1005_v21 = vadd.f32 %v941_v47, %v877_v52  ;;  %v846_v32 = vmul.f32 %v1820_v14, %v782_v6  ;;  %v1197_v29 = vmul.f32 %v1133_v26, %v2358_v45 }
 0x116   :  { %v1293_v24 = vmul.f32 %v1824_v34, %v1165_v3  ;;  %v1021_v35 = vadd.f32 %v957_v4, %v893_v9  ;;  %v1102_v40 = vadd.f32 3.0, %v782_v6  ;;  %v798_v37 = vmul.f32 2.0, %v1822_v17  ;;  %v424_v34 = vpop.f32.mrf.mxu1 }
 0x117   :  { %v1069_v39 = vadd.f32 5.0, %v1005_v21  ;;  %v974_v36 = vadd.f32 %v910_v31, %v846_v32  ;;  %v926_v49 = vmul.f32 6.0, %v1822_v17  ;;  %1829 = vpow2.f32 %v759_v15 }
 0x118   :  { %v1357_v51 = vpack.c.bf16 %v1293_v24, %v1293_v24  ;;  %v1085_v28 = vadd.f32 5.0, %v1021_v35  ;;  %v862_v55 = vmul.f32 %v1822_v17, %v798_v37  ;;  %v1118_v57 = vadd.f32 3.0, %v798_v37  ;;  %v464_v24 = vpop.f32.mrf.mxu2 }
 0x119   :  { %1831 = vrcp.f32 %v1069_v39  ;;  %v1038_v53 = vadd.f32 5.0, %v974_v36  ;;  %v543_v45 = vmax.f32 %v2412_v10, -30.0  ;;  %v2430_v60 = vadd.f32 %v2348_v44, %v462_v23 }
 0x11a   :  { %v1826_v33 = vpop.eup %1825  ;;  %1422 = vst.msk [vmem:[%s2673_s3 + $0x20] sm:$0xf] %vm1413_vm1, %v1357_v51  ;;  %1833 = vrcp.f32 %v1085_v28  ;;  %v2433_v56 = vadd.f32 %v2348_v44, %v502_v30  ;;  %v1213_v59 = vmul.f32 %v1149_v18, %v2361_v48  ;;  %v990_v16 = vadd.f32 %v926_v49, %v862_v55 }
 0x11b   :  { %v1828_v58 = vpop.eup %1827  ;;  %1835 = vrcp.f32 %v1038_v53  ;;  %v814_v50 = vmul.f32 2.0, %v1826_v33  ;;  %v1166_v62 = vmul.f32 %v1102_v40, %v2365_v54  ;;  %v607_v63 = vsub.f32 0.0, %v543_v45 }
 0x11c   :  { %v1309_v61 = vmul.f32 %v1828_v58, %v1181_v27  ;;  %1837 = vpow2.f32 %v665_v25  ;;  %v1054_v1 = vadd.f32 5.0, %v990_v16  ;;  %v942_v2 = vmul.f32 6.0, %v1826_v33  ;;  %v504_v16 = vpop.f32.mrf.mxu3 }
 0x11d   :  { %v878_v3 = vmul.f32 %v1826_v33, %v814_v50  ;;  %v559_v5 = vmax.f32 %v2430_v60, -30.0  ;;  %v1830_v8 = vpop.eup %1829  ;;  %v1182_v11 = vmul.f32 %v1118_v57, %v2376_v0  ;;  %v697_v13 = vmul.f32 1.442695, %v607_v63 }
 0x11e   :  { %v1373_v46 = vpack.c.bf16 %v1309_v61, %v1309_v61  ;;  %v575_v48 = vmax.f32 %v2433_v56, -30.0  ;;  %1839 = vrcp.f32 %v1054_v1  ;;  %v1134_v15 = vadd.f32 3.0, %v814_v50 }
 0x11f   :  { %v1832_v12 = vpop.eup %1831  ;;  %v1006_v38 = vadd.f32 %v942_v2, %v878_v3  ;;  %v830_v54 = vmul.f32 2.0, %v1830_v8  ;;  %1841 = vpow2.f32 %v697_v13  ;;  %v623_v47 = vsub.f32 0.0, %v559_v5  ;;  %v387_v13 = vpop.f32.mrf.mxu0 }
 0x120   :  { %v1834_v14 = vpop.eup %1833  ;;  %1438 = vst.msk [vmem:[%s2673_s3 + $0x60] sm:$0xf] %vm1413_vm1, %v1373_v46  ;;  %v1325_v19 = vmul.f32 %v1832_v12, %v1197_v29  ;;  %v2445_v22 = vadd.f32 %v2348_v44, %v384_v7  ;;  %v958_v26 = vmul.f32 6.0, %v1830_v8  ;;  %v639_v4 = vsub.f32 0.0, %v575_v48 }
 0x121   :  { %v1836_v0 = vpop.eup %1835  ;;  %v1341_v25 = vmul.f32 %v1834_v14, %v1213_v59  ;;  %v1070_v42 = vadd.f32 5.0, %v1006_v38  ;;  %v894_v52 = vmul.f32 %v1830_v8, %v830_v54  ;;  %v729_v9 = vmul.f32 1.442695, %v623_v47 }
 0x122   :  { %v1838_v6 = vpop.eup %1837  ;;  %v1389_v17 = vpack.c.bf16 %v1325_v19, %v1325_v19  ;;  %v1294_v27 = vmul.f32 %v1836_v0, %v1166_v62  ;;  %v1150_v31 = vadd.f32 3.0, %v830_v54  ;;  %v761_v40 = vmul.f32 1.442695, %v639_v4 }
 0x123   :  { %v1405_v21 = vpack.c.bf16 %v1341_v25, %v1341_v25  ;;  %1843 = vrcp.f32 %v1070_v42  ;;  %v1022_v32 = vadd.f32 %v958_v26, %v894_v52  ;;  %v783_v35 = vmul.f32 2.0, %v1838_v6 }
 0x124   :  { %1454 = vst.msk [vmem:[%s2673_s3 + $0xa0] sm:$0xf] %vm1413_vm1, %v1389_v17  ;;  %v1358_v29 = vpack.c.bf16 %v1294_v27, %v1294_v27  ;;  %v911_v18 = vmul.f32 6.0, %v1838_v6  ;;  %1845 = vpow2.f32 %v729_v9  ;;  %v1840_v39 = vpop.eup %1839  ;;  %v528_v37 = vmax.f32 %v2445_v22, -30.0  ;;  %v427_v17 = vpop.f32.mrf.mxu1 }
 0x125   :  { %1470 = vst.msk [vmem:[%s2673_s3 + $0xe0] sm:$0xf] %vm1413_vm1, %v1405_v21  ;;  %v1086_v36 = vadd.f32 5.0, %v1022_v32  ;;  %v2457_v23 = vadd.f32 %v2348_v44, %v424_v34  ;;  %v1842_v30 = vpop.eup %1841  ;;  %v1310_v51 = vmul.f32 %v1840_v39, %v1182_v11  ;;  %v847_v28 = vmul.f32 %v1838_v6, %v783_v35  ;;  %v467_v27 = vpop.f32.mrf.mxu2 }
 0x126   :  { %1423 = vst.msk [vmem:[%s2673_s3 + $0x24] sm:$0xf] %vm1413_vm1, %v1358_v29  ;;  %v1103_v49 = vadd.f32 3.0, %v783_v35  ;;  %v2464_v53 = vadd.f32 %v2348_v44, %v464_v24  ;;  %v799_v55 = vmul.f32 2.0, %v1842_v30  ;;  %v927_v57 = vmul.f32 6.0, %v1842_v30 }
 0x127   :  { %1847 = vrcp.f32 %v1086_v36  ;;  %v592_v33 = vsub.f32 0.0, %v528_v37  ;;  %v1374_v45 = vpack.c.bf16 %v1310_v51, %v1310_v51  ;;  %v1198_v58 = vmul.f32 %v1134_v15, %v2394_v41 }
 0x128   :  { %v975_v59 = vadd.f32 %v911_v18, %v847_v28  ;;  %1849 = vpow2.f32 %v761_v40  ;;  %v1214_v61 = vmul.f32 %v1150_v31, %v2401_v20  ;;  %v863_v62 = vmul.f32 %v1842_v30, %v799_v55 }
 0x129   :  { %v1844_v50 = vpop.eup %1843  ;;  %v667_v63 = vmul.f32 1.442695, %v592_v33  ;;  %v544_v1 = vmax.f32 %v2457_v23, -30.0  ;;  %1439 = vst.msk [vmem:[%s2673_s3 + $0x64] sm:$0xf] %vm1413_vm1, %v1374_v45  ;;  %v1167_v41 = vmul.f32 %v1103_v49, %v2404_v43  ;;  %v560_v7 = vmax.f32 %v2464_v53, -30.0 }
 0x12a   :  { %v1846_v3 = vpop.eup %1845  ;;  %v1326_v2 = vmul.f32 %v1844_v50, %v1198_v58  ;;  %v1039_v5 = vadd.f32 5.0, %v975_v59  ;;  %v991_v8 = vadd.f32 %v927_v57, %v863_v62  ;;  %v1119_v46 = vadd.f32 3.0, %v799_v55 }
 0x12b   :  { %v815_v11 = vmul.f32 2.0, %v1846_v3  ;;  %v2476_v20 = vadd.f32 %v2348_v44, %v504_v16  ;;  %v608_v12 = vsub.f32 0.0, %v544_v1  ;;  %v624_v38 = vsub.f32 0.0, %v560_v7 }
 0x12c   :  { %v1390_v48 = vpack.c.bf16 %v1326_v2, %v1326_v2  ;;  %1851 = vrcp.f32 %v1039_v5  ;;  %v1055_v54 = vadd.f32 5.0, %v991_v8  ;;  %v943_v19 = vmul.f32 6.0, %v1846_v3 }
 0x12d   :  { %v1848_v15 = vpop.eup %1847  ;;  %v879_v14 = vmul.f32 %v1846_v3, %v815_v11  ;;  %1853 = vpow2.f32 %v667_v63  ;;  %v699_v0 = vmul.f32 1.442695, %v608_v12  ;;  %v731_v25 = vmul.f32 1.442695, %v624_v38 }
 0x12e   :  { %v1850_v47 = vpop.eup %1849  ;;  %1455 = vst.msk [vmem:[%s2673_s3 + $0xa4] sm:$0xf] %vm1413_vm1, %v1390_v48  ;;  %v1342_v43 = vmul.f32 %v1848_v15, %v1214_v61  ;;  %v2483_v42 = vadd.f32 %v2348_v44, %v387_v13  ;;  %1855 = vrcp.f32 %v1055_v54  ;;  %v1135_v26 = vadd.f32 3.0, %v815_v11  ;;  %v507_v15 = vpop.f32.mrf.mxu3 }
 0x12f   :  { %v1007_v52 = vadd.f32 %v943_v19, %v879_v14  ;;  %v831_v6 = vmul.f32 2.0, %v1850_v47  ;;  %v1183_v4 = vmul.f32 %v1119_v46, %v2412_v10  ;;  %1857 = vpow2.f32 %v699_v0 }
 0x130   :  { %v1406_v9 = vpack.c.bf16 %v1342_v43, %v1342_v43  ;;  %v576_v34 = vmax.f32 %v2476_v20, -30.0  ;;  %v959_v31 = vmul.f32 6.0, %v1850_v47  ;;  %1859 = vpow2.f32 %v731_v25 }
 0x131   :  { %v1071_v21 = vadd.f32 5.0, %v1007_v52  ;;  %v895_v32 = vmul.f32 %v1850_v47, %v831_v6  ;;  %v529_v35 = vmax.f32 %v2483_v42, -30.0  ;;  %v2493_v18 = vadd.f32 %v2348_v44, %v427_v17  ;;  %v389_v52 = vpop.f32.mrf.mxu0 }
 0x132   :  { %v1852_v24 = vpop.eup %1851  ;;  %1471 = vst.msk [vmem:[%s2673_s3 + $0xe4] sm:$0xf] %vm1413_vm1, %v1406_v9  ;;  %v640_v29 = vsub.f32 0.0, %v576_v34  ;;  %v2496_v10 = vadd.f32 %v2348_v44, %v467_v27  ;;  %v1199_v40 = vmul.f32 %v1135_v26, %v2430_v60  ;;  %v1151_v30 = vadd.f32 3.0, %v831_v6 }
 0x133   :  { %v1854_v39 = vpop.eup %1853  ;;  %v1295_v36 = vmul.f32 %v1852_v24, %v1167_v41  ;;  %1861 = vrcp.f32 %v1071_v21  ;;  %v1023_v37 = vadd.f32 %v959_v31, %v895_v32  ;;  %v593_v49 = vsub.f32 0.0, %v529_v35 }
 0x134   :  { %v784_v51 = vmul.f32 2.0, %v1854_v39  ;;  %v763_v28 = vmul.f32 1.442695, %v640_v29  ;;  %v1856_v55 = vpop.eup %1855  ;;  %v912_v45 = vmul.f32 6.0, %v1854_v39  ;;  %v545_v58 = vmax.f32 %v2493_v18, -30.0 }
 0x135   :  { %v1359_v57 = vpack.c.bf16 %v1295_v36, %v1295_v36  ;;  %v1087_v33 = vadd.f32 5.0, %v1023_v37  ;;  %v1858_v59 = vpop.eup %1857  ;;  %v1311_v16 = vmul.f32 %v1856_v55, %v1183_v4  ;;  %v561_v61 = vmax.f32 %v2496_v10, -30.0  ;;  %v429_v36 = vpop.f32.mrf.mxu1 }
 0x136   :  { %v848_v50 = vmul.f32 %v1854_v39, %v784_v51  ;;  %1863 = vpow2.f32 %v763_v28  ;;  %v1860_v62 = vpop.eup %1859  ;;  %v1104_v60 = vadd.f32 3.0, %v784_v51  ;;  %v800_v63 = vmul.f32 2.0, %v1858_v59  ;;  %v469_v51 = vpop.f32.mrf.mxu2 }
 0x137   :  { %1424 = vst.msk [vmem:[%s2673_s3 + $0x28] sm:$0xf] %vm1413_vm1, %v1359_v57  ;;  %1865 = vrcp.f32 %v1087_v33  ;;  %v669_v1 = vmul.f32 1.442695, %v593_v49  ;;  %v1375_v3 = vpack.c.bf16 %v1311_v16, %v1311_v16  ;;  %v1215_v2 = vmul.f32 %v1151_v30, %v2433_v56 }
 0x138   :  { %v976_v5 = vadd.f32 %v912_v45, %v848_v50  ;;  %v816_v41 = vmul.f32 2.0, %v1860_v62  ;;  %v864_v8 = vmul.f32 %v1858_v59, %v800_v63  ;;  %v928_v46 = vmul.f32 6.0, %v1858_v59 }
 0x139   :  { %v1862_v7 = vpop.eup %1861  ;;  %v1120_v11 = vadd.f32 3.0, %v800_v63  ;;  %1867 = vpow2.f32 %v669_v1  ;;  %1440 = vst.msk [vmem:[%s2673_s3 + $0x68] sm:$0xf] %vm1413_vm1, %v1375_v3  ;;  %v944_v38 = vmul.f32 6.0, %v1860_v62  ;;  %v1168_v54 = vmul.f32 %v1104_v60, %v2445_v22 }
 0x13a   :  { %v1327_v13 = vmul.f32 %v1862_v7, %v1199_v40  ;;  %v1040_v48 = vadd.f32 5.0, %v976_v5  ;;  %v880_v12 = vmul.f32 %v1860_v62, %v816_v41  ;;  %v992_v56 = vadd.f32 %v928_v46, %v864_v8  ;;  %v509_v62 = vpop.f32.mrf.mxu3 }
 0x13b   :  { %v609_v14 = vsub.f32 0.0, %v545_v58  ;;  %v625_v19 = vsub.f32 0.0, %v561_v61  ;;  %v1136_v25 = vadd.f32 3.0, %v816_v41  ;;  %v1184_v17 = vmul.f32 %v1120_v11, %v2457_v23 }
 0x13c   :  { %v1864_v47 = vpop.eup %1863  ;;  %v1391_v43 = vpack.c.bf16 %v1327_v13, %v1327_v13  ;;  %1869 = vrcp.f32 %v1040_v48  ;;  %v1008_v0 = vadd.f32 %v944_v38, %v880_v12  ;;  %v1056_v6 = vadd.f32 5.0, %v992_v56 }
 0x13d   :  { %v1866_v26 = vpop.eup %1865  ;;  %v832_v27 = vmul.f32 2.0, %v1864_v47  ;;  %v701_v9 = vmul.f32 1.442695, %v609_v14  ;;  %v733_v34 = vmul.f32 1.442695, %v625_v19  ;;  %v2517_v21 = vadd.f32 %v2348_v44, %v507_v15 }
 0x13e   :  { %1456 = vst.msk [vmem:[%s2673_s3 + $0xa8] sm:$0xf] %vm1413_vm1, %v1391_v43  ;;  %v1343_v22 = vmul.f32 %v1866_v26, %v1215_v2  ;;  %v1072_v4 = vadd.f32 5.0, %v1008_v0  ;;  %1871 = vrcp.f32 %v1056_v6  ;;  %v960_v24 = vmul.f32 6.0, %v1864_v47 }
 0x13f   :  { %v1868_v32 = vpop.eup %1867  ;;  %v896_v31 = vmul.f32 %v1864_v47, %v832_v27  ;;  %v2520_v29 = vadd.f32 %v2348_v44, %v389_v52  ;;  %v1200_v40 = vmul.f32 %v1136_v25, %v2464_v53  ;;  %v577_v30 = vmax.f32 %v2517_v21, -30.0  ;;  %v392_v52 = vpop.f32.mrf.mxu0 }
 0x140   :  { %v1407_v23 = vpack.c.bf16 %v1343_v22, %v1343_v22  ;;  %1873 = vrcp.f32 %v1072_v4  ;;  %v785_v35 = vmul.f32 2.0, %v1868_v32  ;;  %v913_v39 = vmul.f32 6.0, %v1868_v32 }
 0x141   :  { %v1024_v37 = vadd.f32 %v960_v24, %v896_v31  ;;  %1875 = vpow2.f32 %v701_v9  ;;  %v1152_v49 = vadd.f32 3.0, %v832_v27  ;;  %v530_v57 = vmax.f32 %v2520_v29, -30.0 }
 0x142   :  { %v1870_v28 = vpop.eup %1869  ;;  %1472 = vst.msk [vmem:[%s2673_s3 + $0xe8] sm:$0xf] %vm1413_vm1, %v1407_v23  ;;  %v849_v55 = vmul.f32 %v1868_v32, %v785_v35  ;;  %1877 = vpow2.f32 %v733_v34  ;;  %v641_v58 = vsub.f32 0.0, %v577_v30  ;;  %v2530_v53 = vadd.f32 %v2348_v44, %v429_v36 }
 0x143   :  { %v1296_v33 = vmul.f32 %v1870_v28, %v1168_v54  ;;  %v1088_v45 = vadd.f32 5.0, %v1024_v37  ;;  %v1105_v16 = vadd.f32 3.0, %v785_v35  ;;  %v594_v50 = vsub.f32 0.0, %v530_v57 }
 0x144   :  { %v977_v59 = vadd.f32 %v913_v39, %v849_v55  ;;  %v2533_v61 = vadd.f32 %v2348_v44, %v469_v51  ;;  %v1872_v60 = vpop.eup %1871  ;;  %v765_v1 = vmul.f32 1.442695, %v641_v58  ;;  %v546_v3 = vmax.f32 %v2530_v53, -30.0 }
 0x145   :  { %v1360_v63 = vpack.c.bf16 %v1296_v33, %v1296_v33  ;;  %1879 = vrcp.f32 %v1088_v45  ;;  %v1312_v5 = vmul.f32 %v1872_v60, %v1184_v17  ;;  %v671_v7 = vmul.f32 1.442695, %v594_v50  ;;  %v432_v60 = vpop.f32.mrf.mxu1 }
 0x146   :  { %v1874_v2 = vpop.eup %1873  ;;  %v1041_v41 = vadd.f32 5.0, %v977_v59  ;;  %v562_v8 = vmax.f32 %v2533_v61, -30.0  ;;  %1881 = vpow2.f32 %v765_v1  ;;  %v610_v13 = vsub.f32 0.0, %v546_v3 }
 0x147   :  { %v1876_v46 = vpop.eup %1875  ;;  %1425 = vst.msk [vmem:[%s2673_s3 + $0x2c] sm:$0xf] %vm1413_vm1, %v1360_v63  ;;  %v1328_v11 = vmul.f32 %v1874_v2, %v1200_v40  ;;  %v2542_v48 = vadd.f32 %v2348_v44, %v509_v62  ;;  %v1376_v38 = vpack.c.bf16 %v1312_v5, %v1312_v5  ;;  %v1216_v14 = vmul.f32 %v1152_v49, %v2476_v20  ;;  %v472_v63 = vpop.f32.mrf.mxu2 }
 0x148   :  { %v1878_v12 = vpop.eup %1877  ;;  %1883 = vrcp.f32 %v1041_v41  ;;  %v801_v15 = vmul.f32 2.0, %v1876_v46  ;;  %v929_v54 = vmul.f32 6.0, %v1876_v46  ;;  %v1169_v47 = vmul.f32 %v1105_v16, %v2483_v42 }
 0x149   :  { %v1392_v56 = vpack.c.bf16 %v1328_v11, %v1328_v11  ;;  %v817_v19 = vmul.f32 2.0, %v1878_v12  ;;  %1885 = vpow2.f32 %v671_v7  ;;  %1441 = vst.msk [vmem:[%s2673_s3 + $0x6c] sm:$0xf] %vm1413_vm1, %v1376_v38  ;;  %v703_v0 = vmul.f32 1.442695, %v610_v13 }
 0x14a   :  { %v865_v43 = vmul.f32 %v1876_v46, %v801_v15  ;;  %v626_v25 = vsub.f32 0.0, %v562_v8  ;;  %v1121_v20 = vadd.f32 3.0, %v801_v15  ;;  %v945_v17 = vmul.f32 6.0, %v1878_v12 }
 0x14b   :  { %v1880_v26 = vpop.eup %1879  ;;  %1457 = vst.msk [vmem:[%s2673_s3 + $0xac] sm:$0xf] %vm1413_vm1, %v1392_v56  ;;  %v881_v6 = vmul.f32 %v1878_v12, %v817_v19  ;;  %v578_v27 = vmax.f32 %v2542_v48, -30.0  ;;  %v1137_v4 = vadd.f32 3.0, %v817_v19  ;;  %1887 = vpow2.f32 %v703_v0 }
 0x14c   :  { %v1344_v9 = vmul.f32 %v1880_v26, %v1216_v14  ;;  %v993_v22 = vadd.f32 %v929_v54, %v865_v43  ;;  %v1882_v42 = vpop.eup %1881  ;;  %v735_v32 = vmul.f32 1.442695, %v626_v25  ;;  %v2556_v24 = vadd.f32 %v2348_v44, %v392_v52 }
 0x14d   :  { %v1009_v34 = vadd.f32 %v945_v17, %v881_v6  ;;  %v642_v31 = vsub.f32 0.0, %v578_v27  ;;  %v833_v36 = vmul.f32 2.0, %v1882_v42  ;;  %v961_v40 = vmul.f32 6.0, %v1882_v42 }
 0x14e   :  { %v1884_v23 = vpop.eup %1883  ;;  %v1408_v35 = vpack.c.bf16 %v1344_v9, %v1344_v9  ;;  %v1057_v39 = vadd.f32 5.0, %v993_v22  ;;  %1889 = vpow2.f32 %v735_v32  ;;  %v531_v45 = vmax.f32 %v2556_v24, -30.0 }
 0x14f   :  { %v1886_v37 = vpop.eup %1885  ;;  %v1297_v30 = vmul.f32 %v1884_v23, %v1169_v47  ;;  %v1073_v51 = vadd.f32 5.0, %v1009_v34  ;;  %v767_v28 = vmul.f32 1.442695, %v642_v31  ;;  %v897_v49 = vmul.f32 %v1882_v42, %v833_v36  ;;  %v512_v47 = vpop.f32.mrf.mxu3 }
 0x150   :  { %1473 = vst.msk [vmem:[%s2673_s3 + $0xec] sm:$0xf] %vm1413_vm1, %v1408_v35  ;;  %1891 = vrcp.f32 %v1057_v39  ;;  %v1153_v55 = vadd.f32 3.0, %v833_v36  ;;  %v786_v57 = vmul.f32 2.0, %v1886_v37  ;;  %v1185_v59 = vmul.f32 %v1121_v20, %v2493_v18  ;;  %v394_v42 = vpop.f32.mrf.mxu0 }
 0x151   :  { %v1361_v33 = vpack.c.bf16 %v1297_v30, %v1297_v30  ;;  %1893 = vrcp.f32 %v1073_v51  ;;  %v1888_v58 = vpop.eup %1887  ;;  %v1025_v16 = vadd.f32 %v961_v40, %v897_v49  ;;  %v914_v62 = vmul.f32 6.0, %v1886_v37 }
 0x152   :  { %v850_v50 = vmul.f32 %v1886_v37, %v786_v57  ;;  %v1201_v1 = vmul.f32 %v1137_v4, %v2496_v10  ;;  %v802_v3 = vmul.f32 2.0, %v1888_v58  ;;  %1895 = vpow2.f32 %v767_v28 }
 0x153   :  { %1426 = vst.msk [vmem:[%s2673_s3 + $0x30] sm:$0xf] %vm1413_vm1, %v1361_v33  ;;  %v595_v2 = vsub.f32 0.0, %v531_v45  ;;  %v1089_v5 = vadd.f32 5.0, %v1025_v16  ;;  %v1217_v41 = vmul.f32 %v1153_v55, %v2517_v21  ;;  %v930_v18 = vmul.f32 6.0, %v1888_v58  ;;  %v434_v33 = vpop.f32.mrf.mxu1 }
 0x154   :  { %v978_v7 = vadd.f32 %v914_v62, %v850_v50  ;;  %v1890_v8 = vpop.eup %1889  ;;  %v866_v46 = vmul.f32 %v1888_v58, %v802_v3  ;;  %v2571_v13 = vadd.f32 %v2348_v44, %v432_v60  ;;  %v2574_v12 = vadd.f32 %v2348_v44, %v472_v63  ;;  %v474_v60 = vpop.f32.mrf.mxu2 }
 0x155   :  { %v673_v11 = vmul.f32 1.442695, %v595_v2  ;;  %1897 = vrcp.f32 %v1089_v5  ;;  %v1106_v15 = vadd.f32 3.0, %v786_v57  ;;  %v818_v54 = vmul.f32 2.0, %v1890_v8  ;;  %v1940_v2 = vld [vmem:[%s2672_s2] ss:$0 sm:$0xff] }
 0x156   :  { %v1892_v38 = vpop.eup %1891  ;;  %v1042_v10 = vadd.f32 5.0, %v978_v7  ;;  %v994_v19 = vadd.f32 %v930_v18, %v866_v46  ;;  %v1122_v21 = vadd.f32 3.0, %v802_v3  ;;  %v946_v25 = vmul.f32 6.0, %v1890_v8 }
 0x157   :  { %v1894_v56 = vpop.eup %1893  ;;  %v1313_v14 = vmul.f32 %v1892_v38, %v1185_v59  ;;  %1899 = vpow2.f32 %v673_v11  ;;  %v882_v0 = vmul.f32 %v1890_v8, %v818_v54  ;;  %v547_v6 = vmax.f32 %v2571_v13, -30.0 }
 0x158   :  { %v1329_v43 = vmul.f32 %v1894_v56, %v1201_v1  ;;  %1901 = vrcp.f32 %v1042_v10  ;;  %v1896_v52 = vpop.eup %1895  ;;  %v1058_v20 = vadd.f32 5.0, %v994_v19  ;;  %v563_v17 = vmax.f32 %v2574_v12, -30.0 }
 0x159   :  { %v1377_v26 = vpack.c.bf16 %v1313_v14, %v1313_v14  ;;  %v1170_v9 = vmul.f32 %v1106_v15, %v2520_v29  ;;  %v1010_v22 = vadd.f32 %v946_v25, %v882_v0  ;;  %v834_v4 = vmul.f32 2.0, %v1896_v52 }
 0x15a   :  { %v1393_v27 = vpack.c.bf16 %v1329_v43, %v1329_v43  ;;  %v1186_v34 = vmul.f32 %v1122_v21, %v2530_v53  ;;  %1903 = vrcp.f32 %v1058_v20  ;;  %v611_v32 = vsub.f32 0.0, %v547_v6 }
 0x15b   :  { %1442 = vst.msk [vmem:[%s2673_s3 + $0x70] sm:$0xf] %vm1413_vm1, %v1377_v26  ;;  %v627_v31 = vsub.f32 0.0, %v563_v17  ;;  %v1898_v23 = vpop.eup %1897  ;;  %v1074_v29 = vadd.f32 5.0, %v1010_v22  ;;  %v898_v35 = vmul.f32 %v1896_v52, %v834_v4  ;;  %v962_v39 = vmul.f32 6.0, %v1896_v52 }
 0x15c   :  { %1458 = vst.msk [vmem:[%s2673_s3 + $0xb0] sm:$0xf] %vm1413_vm1, %v1393_v27  ;;  %v2589_v36 = vadd.f32 %v2348_v44, %v512_v47  ;;  %v1345_v37 = vmul.f32 %v1898_v23, %v1217_v41  ;;  %v705_v30 = vmul.f32 1.442695, %v611_v32  ;;  %v2592_v53 = vadd.f32 %v2348_v44, %v394_v42  ;;  %v514_v41 = vpop.f32.mrf.mxu3 }
 0x15d   :  { %v1900_v40 = vpop.eup %1899  ;;  %v737_v51 = vmul.f32 1.442695, %v627_v31  ;;  %v1138_v49 = vadd.f32 3.0, %v818_v54  ;;  %1905 = vrcp.f32 %v1074_v29  ;;  %v1026_v55 = vadd.f32 %v962_v39, %v898_v35 }
 0x15e   :  { %v1902_v28 = vpop.eup %1901  ;;  %v787_v57 = vmul.f32 2.0, %v1900_v40  ;;  %v1409_v45 = vpack.c.bf16 %v1345_v37, %v1345_v37  ;;  %v915_v59 = vmul.f32 6.0, %v1900_v40  ;;  %1907 = vpow2.f32 %v705_v30 }
 0x15f   :  { %v1298_v58 = vmul.f32 %v1902_v28, %v1170_v9  ;;  %v1090_v16 = vadd.f32 5.0, %v1026_v55  ;;  %v1154_v50 = vadd.f32 3.0, %v834_v4  ;;  %1909 = vpow2.f32 %v737_v51 }
 0x160   :  { %v851_v62 = vmul.f32 %v1900_v40, %v787_v57  ;;  %v1904_v63 = vpop.eup %1903  ;;  %1474 = vst.msk [vmem:[%s2673_s3 + $0xf0] sm:$0xf] %vm1413_vm1, %v1409_v45  ;;  %v579_v1 = vmax.f32 %v2589_v36, -30.0  ;;  %v532_v3 = vmax.f32 %v2592_v53, -30.0  ;;  %v2603_v5 = vadd.f32 %v1940_v2, %v434_v33 }
 0x161   :  { %v1362_v44 = vpack.c.bf16 %v1298_v58, %v1298_v58  ;;  %v1314_v7 = vmul.f32 %v1904_v63, %v1186_v34  ;;  %v1202_v18 = vmul.f32 %v1138_v49, %v2533_v61  ;;  %1911 = vrcp.f32 %v1090_v16 }
 0x162   :  { %v979_v8 = vadd.f32 %v915_v59, %v851_v62  ;;  %v643_v46 = vsub.f32 0.0, %v579_v1  ;;  %v596_v11 = vsub.f32 0.0, %v532_v3  ;;  %v548_v38 = vmax.f32 %v2603_v5, -30.0 }
 0x163   :  { %1427 = vst.msk [vmem:[%s2673_s3 + $0x34] sm:$0xf] %vm1413_vm1, %v1362_v44  ;;  %v2611_v10 = vadd.f32 %v1940_v2, %v474_v60  ;;  %v1906_v15 = vpop.eup %1905  ;;  %v1378_v54 = vpack.c.bf16 %v1314_v7, %v1314_v7  ;;  %v1218_v56 = vmul.f32 %v1154_v50, %v2542_v48  ;;  %v2614_v19 = vadd.f32 %v1940_v2, %v514_v41 }
 0x164   :  { %v1043_v14 = vadd.f32 5.0, %v979_v8  ;;  %v1908_v61 = vpop.eup %1907  ;;  %v1330_v21 = vmul.f32 %v1906_v15, %v1202_v18  ;;  %v769_v47 = vmul.f32 1.442695, %v643_v46  ;;  %v675_v43 = vmul.f32 1.442695, %v596_v11 }
 0x165   :  { %v612_v0 = vsub.f32 0.0, %v548_v38  ;;  %v1910_v25 = vpop.eup %1909  ;;  %1443 = vst.msk [vmem:[%s2673_s3 + $0x74] sm:$0xf] %vm1413_vm1, %v1378_v54  ;;  %v803_v52 = vmul.f32 2.0, %v1908_v61  ;;  %v931_v26 = vmul.f32 6.0, %v1908_v61  ;;  %v564_v20 = vmax.f32 %v2611_v10, -30.0 }
 0x166   :  { %1913 = vrcp.f32 %v1043_v14  ;;  %v1394_v48 = vpack.c.bf16 %v1330_v21, %v1330_v21  ;;  %v1107_v6 = vadd.f32 3.0, %v787_v57  ;;  %v819_v17 = vmul.f32 2.0, %v1910_v25 }
 0x167   :  { %1915 = vpow2.f32 %v769_v47  ;;  %v1912_v27 = vpop.eup %1911  ;;  %v867_v9 = vmul.f32 %v1908_v61, %v803_v52  ;;  %v707_v22 = vmul.f32 1.442695, %v612_v0  ;;  %v947_v34 = vmul.f32 6.0, %v1910_v25 }
 0x168   :  { %1917 = vpow2.f32 %v675_v43  ;;  %1459 = vst.msk [vmem:[%s2673_s3 + $0xb4] sm:$0xf] %vm1413_vm1, %v1394_v48  ;;  %v1346_v4 = vmul.f32 %v1912_v27, %v1218_v56  ;;  %v883_v42 = vmul.f32 %v1910_v25, %v819_v17  ;;  %v628_v32 = vsub.f32 0.0, %v564_v20 }
 0x169   :  { %v995_v31 = vadd.f32 %v931_v26, %v867_v9  ;;  %1919 = vpow2.f32 %v707_v22  ;;  %v580_v23 = vmax.f32 %v2614_v19, -30.0  ;;  %v1171_v35 = vmul.f32 %v1107_v6, %v2556_v24 }
 0x16a   :  { %v1410_v29 = vpack.c.bf16 %v1346_v4, %v1346_v4  ;;  %v1011_v39 = vadd.f32 %v947_v34, %v883_v42  ;;  %v739_v40 = vmul.f32 1.442695, %v628_v32  ;;  %v1123_v24 = vadd.f32 3.0, %v803_v52 }
 0x16b   :  { %v1059_v30 = vadd.f32 5.0, %v995_v31  ;;  %v644_v51 = vsub.f32 0.0, %v580_v23  ;;  %v1139_v50 = vadd.f32 3.0, %v819_v17 }
 0x16c   :  { %v1914_v37 = vpop.eup %1913  ;;  %1475 = vst.msk [vmem:[%s2673_s3 + $0xf4] sm:$0xf] %vm1413_vm1, %v1410_v29  ;;  %v1075_v55 = vadd.f32 5.0, %v1011_v39  ;;  %1921 = vpow2.f32 %v739_v40  ;;  %v1187_v41 = vmul.f32 %v1123_v24, %v2571_v13 }
 0x16d   :  { %v1916_v28 = vpop.eup %1915  ;;  %v1299_v49 = vmul.f32 %v1914_v37, %v1171_v35  ;;  %1923 = vrcp.f32 %v1059_v30  ;;  %v771_v45 = vmul.f32 1.442695, %v644_v51  ;;  %v1203_v11 = vmul.f32 %v1139_v50, %v2574_v12 }
 0x16e   :  { %v1918_v57 = vpop.eup %1917  ;;  %v835_v33 = vmul.f32 2.0, %v1916_v28  ;;  %1925 = vrcp.f32 %v1075_v55  ;;  %v963_v60 = vmul.f32 6.0, %v1916_v28 }
 0x16f   :  { %v1363_v58 = vpack.c.bf16 %v1299_v49, %v1299_v49  ;;  %v788_v59 = vmul.f32 2.0, %v1918_v57  ;;  %v1920_v16 = vpop.eup %1919  ;;  %1927 = vpow2.f32 %v771_v45  ;;  %v916_v44 = vmul.f32 6.0, %v1918_v57 }
 0x170   :  { %v899_v62 = vmul.f32 %v1916_v28, %v835_v33  ;;  %v804_v1 = vmul.f32 2.0, %v1920_v16  ;;  %v932_v8 = vmul.f32 6.0, %v1920_v16  ;;  %v1155_v14 = vadd.f32 3.0, %v835_v33 }
 0x171   :  { %1428 = vst.msk [vmem:[%s2673_s3 + $0x38] sm:$0xf] %vm1413_vm1, %v1363_v58  ;;  %v852_v63 = vmul.f32 %v1918_v57, %v788_v59  ;;  %v1108_v48 = vadd.f32 3.0, %v788_v59 }
 0x172   :  { %v1027_v3 = vadd.f32 %v963_v60, %v899_v62  ;;  %v1922_v2 = vpop.eup %1921  ;;  %v868_v18 = vmul.f32 %v1920_v16, %v804_v1  ;;  %v1124_v27 = vadd.f32 3.0, %v804_v1  ;;  %v1219_v22 = vmul.f32 %v1155_v14, %v2589_v36 }
 0x173   :  { %v980_v7 = vadd.f32 %v916_v44, %v852_v63  ;;  %v1924_v46 = vpop.eup %1923  ;;  %v820_v15 = vmul.f32 2.0, %v1922_v2  ;;  %v948_v25 = vmul.f32 6.0, %v1922_v2  ;;  %v1172_v34 = vmul.f32 %v1108_v48, %v2592_v53 }
 0x174   :  { %v1091_v38 = vadd.f32 5.0, %v1027_v3  ;;  %v1926_v54 = vpop.eup %1925  ;;  %v1315_v56 = vmul.f32 %v1924_v46, %v1187_v41  ;;  %v996_v21 = vadd.f32 %v932_v8, %v868_v18  ;;  %v1188_v39 = vmul.f32 %v1124_v27, %v2603_v5 }
 0x175   :  { %v1044_v61 = vadd.f32 5.0, %v980_v7  ;;  %v1928_v47 = vpop.eup %1927  ;;  %v1331_v43 = vmul.f32 %v1926_v54, %v1203_v11  ;;  %v884_v0 = vmul.f32 %v1922_v2, %v820_v15  ;;  %v1140_v23 = vadd.f32 3.0, %v820_v15 }
 0x176   :  { %1929 = vrcp.f32 %v1091_v38  ;;  %v1379_v52 = vpack.c.bf16 %v1315_v56, %v1315_v56  ;;  %v1060_v13 = vadd.f32 5.0, %v996_v21  ;;  %v836_v26 = vmul.f32 2.0, %v1928_v47 }
 0x177   :  { %1931 = vrcp.f32 %v1044_v61  ;;  %v1395_v20 = vpack.c.bf16 %v1331_v43, %v1331_v43  ;;  %v1012_v6 = vadd.f32 %v948_v25, %v884_v0  ;;  %v964_v17 = vmul.f32 6.0, %v1928_v47 }
 0x178   :  { %1444 = vst.msk [vmem:[%s2673_s3 + $0x78] sm:$0xf] %vm1413_vm1, %v1379_v52  ;;  %1933 = vrcp.f32 %v1060_v13  ;;  %v900_v12 = vmul.f32 %v1928_v47, %v836_v26  ;;  %v1156_v28 = vadd.f32 3.0, %v836_v26  ;;  %v1204_v36 = vmul.f32 %v1140_v23, %v2611_v10 }
 0x179   :  { %1460 = vst.msk [vmem:[%s2673_s3 + $0xb8] sm:$0xf] %vm1413_vm1, %v1395_v20  ;;  %v1076_v9 = vadd.f32 5.0, %v1012_v6 }
 0x17a   :  { %v1028_v4 = vadd.f32 %v964_v17, %v900_v12  ;;  %v1220_v55 = vmul.f32 %v1156_v28, %v2614_v19 }
 0x17b   :  { %1935 = vrcp.f32 %v1076_v9 }
 0x17c   :  { %v1930_v42 = vpop.eup %1929  ;;  %v1092_v29 = vadd.f32 5.0, %v1028_v4 }
 0x17d   :  { %v1932_v32 = vpop.eup %1931  ;;  %v1347_v31 = vmul.f32 %v1930_v42, %v1219_v22 }
 0x17e   :  { %v1300_v35 = vmul.f32 %v1932_v32, %v1172_v34  ;;  %v1934_v40 = vpop.eup %1933  ;;  %1937 = vrcp.f32 %v1092_v29 }
 0x17f   :  { %v1411_v37 = vpack.c.bf16 %v1347_v31, %v1347_v31  ;;  %v1316_v51 = vmul.f32 %v1934_v40, %v1188_v39 }
 0x180   :  { %v1364_v30 = vpack.c.bf16 %v1300_v35, %v1300_v35 }
 0x181   :  { %1476 = vst.msk [vmem:[%s2673_s3 + $0xf8] sm:$0xf] %vm1413_vm1, %v1411_v37  ;;  %v1936_v53 = vpop.eup %1935  ;;  %v1380_v5 = vpack.c.bf16 %v1316_v51, %v1316_v51 }
 0x182   :  { %1429 = vst.msk [vmem:[%s2673_s3 + $0x3c] sm:$0xf] %vm1413_vm1, %v1364_v30  ;;  %v1332_v49 = vmul.f32 %v1936_v53, %v1204_v36 }
 0x183   :  { %1445 = vst.msk [vmem:[%s2673_s3 + $0x7c] sm:$0xf] %vm1413_vm1, %v1380_v5 }
 0x184   :  { %v1938_v57 = vpop.eup %1937  ;;  %v1396_v33 = vpack.c.bf16 %v1332_v49, %v1332_v49 }
 0x185   :  { %v1348_v45 = vmul.f32 %v1938_v57, %v1220_v55 }
 0x186   :  { %1461 = vst.msk [vmem:[%s2673_s3 + $0xbc] sm:$0xf] %vm1413_vm1, %v1396_v33 }
 0x187   :  { %v1412_v10 = vpack.c.bf16 %v1348_v45, %v1348_v45 }
 0x189   :  { %1477 = vst.msk [vmem:[%s2673_s3 + $0xfc] sm:$0xf] %vm1413_vm1, %v1412_v10 }

// kernel: bottleneck_smish_forward.5
= control target key start
LH: loop header
LB: loop body
LE: loop exit
PB: predicated region body
PF: predicated region fallthrough
CT: control target
= control target key end

     0   :  { %vm242_vm0 = vcmask 1043456   ;;  %vm217_vm1 = vcmask 64512   ;;  %vm103_vm2 = vcmask 130048   ;;  %s978_s0 = inlined_call_operand.vmem [shape: bf16[128,8], index: 0, kind: input, shape index: {}]   ;;  %s979_s1 = inlined_call_operand.vmem [shape: bf16[8,32], index: 1, kind: input, shape index: {}]   ;;  %s980_s2 = inlined_call_operand.vmem [shape: bf16[128,16], index: 2, kind: input, shape index: {}]   ;;  %s981_s3 = inlined_call_operand.vmem [shape: bf16[16,32], index: 3, kind: input, shape index: {}]   ;;  %s982_s4 = inlined_call_operand.vmem [shape: f32[1,32], index: 4, kind: input, shape index: {}]   ;;  %s983_s5 = inlined_call_operand.hbm [shape: bf16[128,32], index: 5, kind: output, shape index: {}]  }
   0x1   :  { %v38_v0 = vld [vmem:[%s979_s1] sm:$0xf] }
   0x2   :  { %v674_v1 = vld [vmem:[%s981_s3] sm:$0xff]  ;;  %v244_v2 = vsel %vm242_vm0, %v38_v0, 0 }
   0x3   :  { %v658_v3 = vld [vmem:[%s978_s0] sm:$0xff]  ;;  %253 = vmatpush.bf16.msra.mxu1 %v244_v2  ;;  %676 = vmatpush.bf16.msra.mxu3 %v244_v2 }
   0x4   :  { %v662_v4 = vld [vmem:[%s978_s0 + $0x20] sm:$0xff]  ;;  %135 = vmatpush.bf16.msra.mxu0 %v674_v1  ;;  %675 = vmatpush.bf16.msra.mxu2 %v674_v1 }
   0x5   :  { %v666_v5 = vld [vmem:[%s980_s2] sm:$0xff] }
   0x6   :  { %v670_v6 = vld [vmem:[%s980_s2 + $0x20] sm:$0xff]  ;;  %650 = vmatmul.msk.bf16.vlgmr.msra.gmra.mxu1 %vm217_vm1, %v658_v3  ;;  %654 = vmatmul.msk.bf16.vlgmr.msra.gmra.mxu3 %vm217_vm1, %v662_v4 }
   0x7   :  { %10 = vsyncpa [#allocation3], 0  ;;  %610 = vmatmul.msk.bf16.vlgmr.msra.gmra.mxu0 %vm103_vm2, %v666_v5  ;;  %614 = vmatmul.msk.bf16.vlgmr.msra.gmra.mxu2 %vm103_vm2, %v670_v6  ;;  %v659_v7 = vld [vmem:[%s978_s0 + $0x8] sm:$0xff]  ;;  %v660_v11 = vld [vmem:[%s978_s0 + $0x10] sm:$0xff]  ;;  %vm539_vm3 = vcmask 257024   ;;  %s562_s3 = sshll.u32 %s983_s5, 4  ;;  %s563_s3 = int_to_ptr.hbm [resolvable:$true] %s562_s3 }
   0x8   :  { %v663_v8 = vld [vmem:[%s978_s0 + $0x28] sm:$0xff]  ;;  %v664_v12 = vld [vmem:[%s978_s0 + $0x30] sm:$0xff]  ;;  %v661_v15 = vld [vmem:[%s978_s0 + $0x18] sm:$0xff]  ;;  %s772_s29 = smov 64   ;;  %s773_s30 = smov 4  }
   0x9   :  { %v667_v9 = vld [vmem:[%s980_s2 + $0x8] sm:$0xff]  ;;  %v668_v13 = vld [vmem:[%s980_s2 + $0x10] sm:$0xff]  ;;  %v665_v16 = vld [vmem:[%s978_s0 + $0x38] sm:$0xff]  ;;  %s771_s0 = smov [#allocation2]  }
   0xa   :  { %v671_v10 = vld [vmem:[%s980_s2 + $0x28] sm:$0xff]  ;;  %v672_v14 = vld [vmem:[%s980_s2 + $0x30] sm:$0xff]  ;;  %v669_v17 = vld [vmem:[%s980_s2 + $0x18] sm:$0xff] }
   0xb   :  { %v673_v18 = vld [vmem:[%s980_s2 + $0x38] sm:$0xff]  ;;  %v877_v20 = vld [vmem:[%s982_s4] ss:$0 sm:$0xff]  ;;  %s560_s2 = sshll.u32 %s771_s0, 4  ;;  %s561_s2 = int_to_ptr.vmem [resolvable:$true] %s560_s2 }
  0x16   :  { %651 = vmatmul.msk.bf16.gmra.mxu1 %vm217_vm1, %v659_v7  ;;  %655 = vmatmul.msk.bf16.gmra.mxu3 %vm217_vm1, %v663_v8 }
  0x17   :  { %611 = vmatmul.msk.bf16.gmra.mxu0 %vm103_vm2, %v667_v9  ;;  %615 = vmatmul.msk.bf16.gmra.mxu2 %vm103_vm2, %v671_v10 }
  0x26   :  { %652 = vmatmul.msk.bf16.gmra.mxu1 %vm217_vm1, %v660_v11  ;;  %656 = vmatmul.msk.bf16.gmra.mxu3 %vm217_vm1, %v664_v12 }
  0x27   :  { %612 = vmatmul.msk.bf16.gmra.mxu0 %vm103_vm2, %v668_v13  ;;  %616 = vmatmul.msk.bf16.gmra.mxu2 %vm103_vm2, %v672_v14 }
  0x36   :  { %653 = vmatmul.msk.bf16.gmra.mxu1 %vm217_vm1, %v661_v15  ;;  %657 = vmatmul.msk.bf16.gmra.mxu3 %vm217_vm1, %v665_v16 }
  0x37   :  { %613 = vmatmul.msk.bf16.gmra.mxu0 %vm103_vm2, %v669_v17  ;;  %617 = vmatmul.msk.bf16.gmra.mxu2 %vm103_vm2, %v673_v18 }
  0x83   :  { %v255_v19 = vpop.f32.mrf.mxu1 }
  0x84   :  { %v137_v21 = vpop.f32.mrf.mxu0 }
  0x85   :  { %v256_v22 = vadd.f32 %v255_v19, %v137_v21 }
  0x87   :  { %v880_v23 = vadd.f32 %v877_v20, %v256_v22 }
  0x89   :  { %v315_v24 = vmax.f32 %v880_v23, -30.0  ;;  %v275_v25 = vpop.f32.mrf.mxu3 }
  0x8a   :  { %v157_v26 = vpop.f32.mrf.mxu2 }
  0x8b   :  { %v331_v27 = vsub.f32 0.0, %v315_v24  ;;  %v276_v28 = vadd.f32 %v275_v25, %v157_v26  ;;  %v257_v29 = vpop.f32.mrf.mxu1 }
  0x8c   :  { %v139_v30 = vpop.f32.mrf.mxu0 }
  0x8d   :  { %v347_v31 = vmul.f32 1.442695, %v331_v27  ;;  %v884_v32 = vadd.f32 %v877_v20, %v276_v28  ;;  %v258_v33 = vadd.f32 %v257_v29, %v139_v30 }
  0x8f   :  { %681 = vpow2.f32 %v347_v31  ;;  %v323_v34 = vmax.f32 %v884_v32, -30.0  ;;  %v888_v35 = vadd.f32 %v877_v20, %v258_v33 }
  0x91   :  { %v339_v36 = vsub.f32 0.0, %v323_v34  ;;  %v316_v37 = vmax.f32 %v888_v35, -30.0  ;;  %v277_v38 = vpop.f32.mrf.mxu3 }
  0x92   :  { %v159_v39 = vpop.f32.mrf.mxu2 }
  0x93   :  { %v363_v40 = vmul.f32 1.442695, %v339_v36  ;;  %v332_v41 = vsub.f32 0.0, %v316_v37  ;;  %v278_v42 = vadd.f32 %v277_v38, %v159_v39  ;;  %v260_v43 = vpop.f32.mrf.mxu1 }
  0x94   :  { %v142_v44 = vpop.f32.mrf.mxu0 }
  0x95   :  { %v682_v45 = vpop.eup %681  ;;  %683 = vpow2.f32 %v363_v40  ;;  %v349_v46 = vmul.f32 1.442695, %v332_v41  ;;  %v892_v47 = vadd.f32 %v877_v20, %v278_v42  ;;  %v261_v48 = vadd.f32 %v260_v43, %v142_v44 }
  0x96   :  { %v379_v49 = vmul.f32 2.0, %v682_v45  ;;  %v411_v50 = vmul.f32 6.0, %v682_v45 }
  0x97   :  { %685 = vpow2.f32 %v349_v46  ;;  %v324_v51 = vmax.f32 %v892_v47, -30.0  ;;  %v896_v52 = vadd.f32 %v877_v20, %v261_v48 }
  0x98   :  { %v395_v53 = vmul.f32 %v682_v45, %v379_v49  ;;  %v459_v1 = vadd.f32 3.0, %v379_v49 }
  0x99   :  { %v340_v54 = vsub.f32 0.0, %v324_v51  ;;  %v317_v55 = vmax.f32 %v896_v52, -30.0  ;;  %v280_v56 = vpop.f32.mrf.mxu3 }
  0x9a   :  { %v427_v57 = vadd.f32 %v411_v50, %v395_v53  ;;  %v162_v58 = vpop.f32.mrf.mxu2  ;;  %v475_v19 = vmul.f32 %v459_v1, %v880_v23 }
  0x9b   :  { %v684_v59 = vpop.eup %683  ;;  %v365_v60 = vmul.f32 1.442695, %v340_v54  ;;  %v333_v61 = vsub.f32 0.0, %v317_v55  ;;  %v281_v62 = vadd.f32 %v280_v56, %v162_v58  ;;  %v262_v63 = vpop.f32.mrf.mxu1 }
  0x9c   :  { %v443_v0 = vadd.f32 5.0, %v427_v57  ;;  %v387_v2 = vmul.f32 2.0, %v684_v59  ;;  %v144_v3 = vpop.f32.mrf.mxu0  ;;  %v419_v9 = vmul.f32 6.0, %v684_v59 }
  0x9d   :  { %v686_v4 = vpop.eup %685  ;;  %687 = vpow2.f32 %v365_v60  ;;  %v351_v5 = vmul.f32 1.442695, %v333_v61  ;;  %v900_v6 = vadd.f32 %v877_v20, %v281_v62  ;;  %v263_v7 = vadd.f32 %v262_v63, %v144_v3 }
  0x9e   :  { %689 = vrcp.f32 %v443_v0  ;;  %v403_v8 = vmul.f32 %v684_v59, %v387_v2  ;;  %v380_v10 = vmul.f32 2.0, %v686_v4  ;;  %v412_v15 = vmul.f32 6.0, %v686_v4 }
  0x9f   :  { %691 = vpow2.f32 %v351_v5  ;;  %v325_v11 = vmax.f32 %v900_v6, -30.0  ;;  %v904_v12 = vadd.f32 %v877_v20, %v263_v7  ;;  %v467_v26 = vadd.f32 3.0, %v387_v2 }
  0xa0   :  { %v435_v13 = vadd.f32 %v419_v9, %v403_v8  ;;  %v396_v14 = vmul.f32 %v686_v4, %v380_v10  ;;  %v460_v34 = vadd.f32 3.0, %v380_v10 }
  0xa1   :  { %v341_v16 = vsub.f32 0.0, %v325_v11  ;;  %v318_v17 = vmax.f32 %v904_v12, -30.0  ;;  %v282_v18 = vpop.f32.mrf.mxu3  ;;  %v483_v50 = vmul.f32 %v467_v26, %v884_v32 }
  0xa2   :  { %v451_v21 = vadd.f32 5.0, %v435_v13  ;;  %v428_v22 = vadd.f32 %v412_v15, %v396_v14  ;;  %v164_v24 = vpop.f32.mrf.mxu2  ;;  %v476_v56 = vmul.f32 %v460_v34, %v888_v35 }
  0xa3   :  { %v688_v25 = vpop.eup %687  ;;  %v367_v27 = vmul.f32 1.442695, %v341_v16  ;;  %v334_v28 = vsub.f32 0.0, %v318_v17  ;;  %v283_v29 = vadd.f32 %v282_v18, %v164_v24  ;;  %v265_v30 = vpop.f32.mrf.mxu1 }
  0xa4   :  { %v690_v31 = vpop.eup %689  ;;  %693 = vrcp.f32 %v451_v21  ;;  %v444_v33 = vadd.f32 5.0, %v428_v22  ;;  %v388_v36 = vmul.f32 2.0, %v688_v25  ;;  %v147_v37 = vpop.f32.mrf.mxu0  ;;  %v420_v42 = vmul.f32 6.0, %v688_v25 }
  0xa5   :  { %v692_v38 = vpop.eup %691  ;;  %v507_v39 = vmul.f32 %v690_v31, %v475_v19  ;;  %695 = vpow2.f32 %v367_v27  ;;  %v353_v23 = vmul.f32 1.442695, %v334_v28  ;;  %v909_v40 = vadd.f32 %v877_v20, %v283_v29 }
  0xa6   :  { %697 = vrcp.f32 %v444_v33  ;;  %v404_v41 = vmul.f32 %v688_v25, %v388_v36  ;;  %v381_v43 = vmul.f32 2.0, %v692_v38  ;;  %v413_v45 = vmul.f32 6.0, %v692_v38 }
  0xa7   :  { %v523_v44 = vpack.c.bf16 %v507_v39, %v507_v39  ;;  %699 = vpow2.f32 %v353_v23  ;;  %v326_v46 = vmax.f32 %v909_v40, -30.0  ;;  %v266_v53 = vadd.f32 %v265_v30, %v147_v37 }
  0xa8   :  { %v436_v48 = vadd.f32 %v420_v42, %v404_v41  ;;  %v397_v49 = vmul.f32 %v692_v38, %v381_v43  ;;  %v468_v58 = vadd.f32 3.0, %v388_v36  ;;  %v461_v4 = vadd.f32 3.0, %v381_v43 }
  0xa9   :  { %540 = vst.msk [vmem:[#allocation2] sm:$0xf] %vm539_vm3, %v523_v44  ;;  %v342_v51 = vsub.f32 0.0, %v326_v46  ;;  %v285_v54 = vpop.f32.mrf.mxu3  ;;  %v916_v0 = vadd.f32 %v877_v20, %v266_v53 }
  0xaa   :  { %v694_v55 = vpop.eup %693  ;;  %v452_v57 = vadd.f32 5.0, %v436_v48  ;;  %v429_v59 = vadd.f32 %v413_v45, %v397_v49  ;;  %v167_v60 = vpop.f32.mrf.mxu2  ;;  %v484_v22 = vmul.f32 %v468_v58, %v892_v47  ;;  %v477_v29 = vmul.f32 %v461_v4, %v896_v52 }
  0xab   :  { %v696_v61 = vpop.eup %695  ;;  %v515_v62 = vmul.f32 %v694_v55, %v483_v50  ;;  %v369_v63 = vmul.f32 1.442695, %v342_v51  ;;  %v286_v1 = vadd.f32 %v285_v54, %v167_v60  ;;  %v267_v2 = vpop.f32.mrf.mxu1  ;;  %v319_v10 = vmax.f32 %v916_v0, -30.0 }
  0xac   :  { %v698_v3 = vpop.eup %697  ;;  %701 = vrcp.f32 %v452_v57  ;;  %v445_v32 = vadd.f32 5.0, %v429_v59  ;;  %v389_v5 = vmul.f32 2.0, %v696_v61  ;;  %v149_v7 = vpop.f32.mrf.mxu0  ;;  %v421_v13 = vmul.f32 6.0, %v696_v61 }
  0xad   :  { %v700_v8 = vpop.eup %699  ;;  %v531_v35 = vpack.c.bf16 %v515_v62, %v515_v62  ;;  %v508_v9 = vmul.f32 %v698_v3, %v476_v56  ;;  %703 = vpow2.f32 %v369_v63  ;;  %v335_v16 = vsub.f32 0.0, %v319_v10 }
  0xae   :  { %705 = vrcp.f32 %v445_v32  ;;  %v405_v11 = vmul.f32 %v696_v61, %v389_v5  ;;  %v382_v14 = vmul.f32 2.0, %v700_v8  ;;  %v921_v17 = vadd.f32 %v877_v20, %v286_v1 }
  0xaf   :  { %548 = vst.msk [vmem:[#allocation2 + $0x20] sm:$0xf] %vm539_vm3, %v531_v35  ;;  %v524_v15 = vpack.c.bf16 %v508_v9, %v508_v9  ;;  %v414_v21 = vmul.f32 6.0, %v700_v8  ;;  %v355_v24 = vmul.f32 1.442695, %v335_v16  ;;  %v268_v26 = vadd.f32 %v267_v2, %v149_v7 }
  0xb0   :  { %v437_v18 = vadd.f32 %v421_v13, %v405_v11  ;;  %v398_v19 = vmul.f32 %v700_v8, %v382_v14  ;;  %v327_v25 = vmax.f32 %v921_v17, -30.0  ;;  %v469_v31 = vadd.f32 3.0, %v389_v5 }
  0xb1   :  { %541 = vst.msk [vmem:[#allocation2 + $0x4] sm:$0xf] %vm539_vm3, %v524_v15  ;;  %v287_v27 = vpop.f32.mrf.mxu3  ;;  %707 = vpow2.f32 %v355_v24  ;;  %v928_v39 = vadd.f32 %v877_v20, %v268_v26  ;;  %v462_v42 = vadd.f32 3.0, %v382_v14 }
  0xb2   :  { %v702_v28 = vpop.eup %701  ;;  %v453_v30 = vadd.f32 5.0, %v437_v18  ;;  %v430_v33 = vadd.f32 %v414_v21, %v398_v19  ;;  %v169_v34 = vpop.f32.mrf.mxu2  ;;  %v343_v38 = vsub.f32 0.0, %v327_v25  ;;  %v485_v59 = vmul.f32 %v469_v31, %v900_v6 }
  0xb3   :  { %v704_v36 = vpop.eup %703  ;;  %v516_v37 = vmul.f32 %v702_v28, %v484_v22  ;;  %v270_v47 = vpop.f32.mrf.mxu1  ;;  %v320_v48 = vmax.f32 %v928_v39, -30.0  ;;  %v288_v51 = vadd.f32 %v287_v27, %v169_v34  ;;  %v478_v60 = vmul.f32 %v462_v42, %v904_v12 }
  0xb4   :  { %v706_v23 = vpop.eup %705  ;;  %709 = vrcp.f32 %v453_v30  ;;  %v446_v41 = vadd.f32 5.0, %v430_v33  ;;  %v390_v43 = vmul.f32 2.0, %v704_v36  ;;  %v152_v44 = vpop.f32.mrf.mxu0  ;;  %v371_v46 = vmul.f32 1.442695, %v343_v38 }
  0xb5   :  { %v532_v45 = vpack.c.bf16 %v516_v37, %v516_v37  ;;  %v509_v52 = vmul.f32 %v706_v23, %v477_v29  ;;  %v422_v50 = vmul.f32 6.0, %v704_v36  ;;  %v336_v54 = vsub.f32 0.0, %v320_v48 }
  0xb6   :  { %711 = vrcp.f32 %v446_v41  ;;  %v406_v49 = vmul.f32 %v704_v36, %v390_v43  ;;  %v271_v55 = vadd.f32 %v270_v47, %v152_v44  ;;  %v933_v57 = vadd.f32 %v877_v20, %v288_v51 }
  0xb7   :  { %549 = vst.msk [vmem:[#allocation2 + $0x24] sm:$0xf] %vm539_vm3, %v532_v45  ;;  %v525_v53 = vpack.c.bf16 %v509_v52, %v509_v52  ;;  %713 = vpow2.f32 %v371_v46  ;;  %v708_v58 = vpop.eup %707  ;;  %v357_v61 = vmul.f32 1.442695, %v336_v54  ;;  %v470_v9 = vadd.f32 3.0, %v390_v43 }
  0xb8   :  { %v438_v56 = vadd.f32 %v422_v50, %v406_v49  ;;  %v939_v62 = vadd.f32 %v877_v20, %v271_v55  ;;  %v383_v3 = vmul.f32 2.0, %v708_v58  ;;  %v415_v32 = vmul.f32 6.0, %v708_v58 }
  0xb9   :  { %542 = vst.msk [vmem:[#allocation2 + $0x8] sm:$0xf] %vm539_vm3, %v525_v53  ;;  %v290_v63 = vpop.f32.mrf.mxu3  ;;  %v328_v4 = vmax.f32 %v933_v57, -30.0  ;;  %715 = vpow2.f32 %v357_v61  ;;  %v486_v34 = vmul.f32 %v470_v9, %v909_v40 }
  0xba   :  { %v710_v1 = vpop.eup %709  ;;  %v454_v2 = vadd.f32 5.0, %v438_v56  ;;  %v172_v5 = vpop.f32.mrf.mxu2  ;;  %v321_v8 = vmax.f32 %v939_v62, -30.0  ;;  %v399_v12 = vmul.f32 %v708_v58, %v383_v3  ;;  %v463_v43 = vadd.f32 3.0, %v383_v3 }
  0xbb   :  { %v517_v7 = vmul.f32 %v710_v1, %v485_v59  ;;  %v291_v35 = vadd.f32 %v290_v63, %v172_v5  ;;  %v344_v10 = vsub.f32 0.0, %v328_v4  ;;  %v272_v11 = vpop.f32.mrf.mxu1 }
  0xbc   :  { %v712_v6 = vpop.eup %711  ;;  %717 = vrcp.f32 %v454_v2  ;;  %v154_v13 = vpop.f32.mrf.mxu0  ;;  %v337_v18 = vsub.f32 0.0, %v321_v8  ;;  %v431_v21 = vadd.f32 %v415_v32, %v399_v12  ;;  %v479_v56 = vmul.f32 %v463_v43, %v916_v0 }
  0xbd   :  { %v714_v14 = vpop.eup %713  ;;  %v533_v15 = vpack.c.bf16 %v517_v7, %v517_v7  ;;  %v510_v16 = vmul.f32 %v712_v6, %v478_v60  ;;  %v944_v19 = vadd.f32 %v877_v20, %v291_v35  ;;  %v373_v25 = vmul.f32 1.442695, %v344_v10 }
  0xbe   :  { %v391_v22 = vmul.f32 2.0, %v714_v14  ;;  %v359_v26 = vmul.f32 1.442695, %v337_v18  ;;  %v273_v27 = vadd.f32 %v272_v11, %v154_v13  ;;  %v447_v28 = vadd.f32 5.0, %v431_v21 }
  0xbf   :  { %550 = vst.msk [vmem:[#allocation2 + $0x28] sm:$0xf] %vm539_vm3, %v533_v15  ;;  %v526_v24 = vpack.c.bf16 %v510_v16, %v510_v16  ;;  %v423_v30 = vmul.f32 6.0, %v714_v14  ;;  %v329_v31 = vmax.f32 %v944_v19, -30.0  ;;  %v716_v33 = vpop.eup %715  ;;  %719 = vpow2.f32 %v373_v25 }
  0xc0   :  { %v407_v29 = vmul.f32 %v714_v14, %v391_v22  ;;  %v951_v36 = vadd.f32 %v877_v20, %v273_v27  ;;  %721 = vrcp.f32 %v447_v28  ;;  %v384_v47 = vmul.f32 2.0, %v716_v33 }
  0xc1   :  { %543 = vst.msk [vmem:[#allocation2 + $0xc] sm:$0xf] %vm539_vm3, %v526_v24  ;;  %v292_v23 = vpop.f32.mrf.mxu3  ;;  %723 = vpow2.f32 %v359_v26  ;;  %v345_v44 = vsub.f32 0.0, %v329_v31  ;;  %v416_v46 = vmul.f32 6.0, %v716_v33  ;;  %v471_v49 = vadd.f32 3.0, %v391_v22 }
  0xc2   :  { %v718_v37 = vpop.eup %717  ;;  %v439_v38 = vadd.f32 %v423_v30, %v407_v29  ;;  %v174_v41 = vpop.f32.mrf.mxu2  ;;  %v400_v52 = vmul.f32 %v716_v33, %v384_v47  ;;  %v322_v48 = vmax.f32 %v951_v36, -30.0  ;;  %v464_v32 = vadd.f32 3.0, %v384_v47 }
  0xc3   :  { %v518_v42 = vmul.f32 %v718_v37, %v486_v34  ;;  %v375_v50 = vmul.f32 1.442695, %v345_v44  ;;  %v293_v51 = vadd.f32 %v292_v23, %v174_v41  ;;  %v487_v3 = vmul.f32 %v471_v49, %v921_v17 }
  0xc4   :  { %v455_v45 = vadd.f32 5.0, %v439_v38  ;;  %v432_v53 = vadd.f32 %v416_v46, %v400_v52  ;;  %v338_v54 = vsub.f32 0.0, %v322_v48  ;;  %v480_v18 = vmul.f32 %v464_v32, %v928_v39 }
  0xc5   :  { %v534_v40 = vpack.c.bf16 %v518_v42, %v518_v42  ;;  %v720_v55 = vpop.eup %719  ;;  %v957_v58 = vadd.f32 %v877_v20, %v293_v51 }
  0xc6   :  { %725 = vrcp.f32 %v455_v45  ;;  %v722_v59 = vpop.eup %721  ;;  %v448_v60 = vadd.f32 5.0, %v432_v53  ;;  %v392_v61 = vmul.f32 2.0, %v720_v55  ;;  %v361_v63 = vmul.f32 1.442695, %v338_v54 }
  0xc7   :  { %551 = vst.msk [vmem:[#allocation2 + $0x2c] sm:$0xf] %vm539_vm3, %v534_v40  ;;  %727 = vpow2.f32 %v375_v50  ;;  %v724_v1 = vpop.eup %723  ;;  %v511_v2 = vmul.f32 %v722_v59, %v479_v56  ;;  %v330_v4 = vmax.f32 %v957_v58, -30.0  ;;  %v424_v7 = vmul.f32 6.0, %v720_v55 }
  0xc8   :  { %729 = vrcp.f32 %v448_v60  ;;  %v408_v5 = vmul.f32 %v720_v55, %v392_v61  ;;  %v385_v8 = vmul.f32 2.0, %v724_v1  ;;  %v417_v35 = vmul.f32 6.0, %v724_v1 }
  0xc9   :  { %v527_v0 = vpack.c.bf16 %v511_v2, %v511_v2  ;;  %731 = vpow2.f32 %v361_v63  ;;  %v346_v20 = vsub.f32 0.0, %v330_v4  ;;  %v472_v28 = vadd.f32 3.0, %v392_v61 }
  0xca   :  { %v440_v9 = vadd.f32 %v424_v7, %v408_v5  ;;  %v401_v12 = vmul.f32 %v724_v1, %v385_v8  ;;  %v465_v33 = vadd.f32 3.0, %v385_v8 }
  0xcb   :  { %544 = vst.msk [vmem:[#allocation2 + $0x10] sm:$0xf] %vm539_vm3, %v527_v0  ;;  %v377_v13 = vmul.f32 1.442695, %v346_v20  ;;  %v488_v47 = vmul.f32 %v472_v28, %v933_v57 }
  0xcc   :  { %v726_v6 = vpop.eup %725  ;;  %v456_v17 = vadd.f32 5.0, %v440_v9  ;;  %v433_v14 = vadd.f32 %v417_v35, %v401_v12  ;;  %v481_v44 = vmul.f32 %v465_v33, %v939_v62 }
  0xcd   :  { %v728_v10 = vpop.eup %727  ;;  %v519_v11 = vmul.f32 %v726_v6, %v487_v3  ;;  %733 = vpow2.f32 %v377_v13 }
  0xce   :  { %v393_v15 = vmul.f32 2.0, %v728_v10  ;;  %v730_v21 = vpop.eup %729  ;;  %735 = vrcp.f32 %v456_v17  ;;  %v449_v22 = vadd.f32 5.0, %v433_v14  ;;  %v425_v25 = vmul.f32 6.0, %v728_v10 }
  0xcf   :  { %v535_v16 = vpack.c.bf16 %v519_v11, %v519_v11  ;;  %v732_v26 = vpop.eup %731  ;;  %v512_v27 = vmul.f32 %v730_v21, %v480_v18 }
  0xd0   :  { %v409_v24 = vmul.f32 %v728_v10, %v393_v15  ;;  %737 = vrcp.f32 %v449_v22  ;;  %v386_v30 = vmul.f32 2.0, %v732_v26  ;;  %v418_v38 = vmul.f32 6.0, %v732_v26 }
  0xd1   :  { %552 = vst.msk [vmem:[#allocation2 + $0x30] sm:$0xf] %vm539_vm3, %v535_v16  ;;  %v528_v31 = vpack.c.bf16 %v512_v27, %v512_v27  ;;  %v473_v45 = vadd.f32 3.0, %v393_v15 }
  0xd2   :  { %v441_v29 = vadd.f32 %v425_v25, %v409_v24  ;;  %v402_v37 = vmul.f32 %v732_v26, %v386_v30  ;;  %v466_v54 = vadd.f32 3.0, %v386_v30 }
  0xd3   :  { %v734_v39 = vpop.eup %733  ;;  %545 = vst.msk [vmem:[#allocation2 + $0x14] sm:$0xf] %vm539_vm3, %v528_v31  ;;  %v489_v57 = vmul.f32 %v473_v45, %v944_v19 }
  0xd4   :  { %v457_v34 = vadd.f32 5.0, %v441_v29  ;;  %v736_v23 = vpop.eup %735  ;;  %v434_v41 = vadd.f32 %v418_v38, %v402_v37  ;;  %v394_v42 = vmul.f32 2.0, %v734_v39  ;;  %v426_v40 = vmul.f32 6.0, %v734_v39 }
  0xd5   :  { %v520_v43 = vmul.f32 %v736_v23, %v488_v47  ;;  %v482_v60 = vmul.f32 %v466_v54, %v951_v36 }
  0xd6   :  { %739 = vrcp.f32 %v457_v34  ;;  %v738_v52 = vpop.eup %737  ;;  %v450_v46 = vadd.f32 5.0, %v434_v41  ;;  %v410_v48 = vmul.f32 %v734_v39, %v394_v42  ;;  %v474_v61 = vadd.f32 3.0, %v394_v42 }
  0xd7   :  { %v536_v49 = vpack.c.bf16 %v520_v43, %v520_v43  ;;  %v513_v50 = vmul.f32 %v738_v52, %v481_v44 }
  0xd8   :  { %741 = vrcp.f32 %v450_v46  ;;  %v442_v51 = vadd.f32 %v426_v40, %v410_v48  ;;  %v490_v3 = vmul.f32 %v474_v61, %v957_v58 }
  0xd9   :  { %553 = vst.msk [vmem:[#allocation2 + $0x34] sm:$0xf] %vm539_vm3, %v536_v49  ;;  %v529_v53 = vpack.c.bf16 %v513_v50, %v513_v50 }
  0xda   :  { %v458_v56 = vadd.f32 5.0, %v442_v51 }
  0xdb   :  { %546 = vst.msk [vmem:[#allocation2 + $0x18] sm:$0xf] %vm539_vm3, %v529_v53 }
  0xdc   :  { %v740_v55 = vpop.eup %739  ;;  %743 = vrcp.f32 %v458_v56 }
  0xdd   :  { %v521_v62 = vmul.f32 %v740_v55, %v489_v57 }
  0xde   :  { %v742_v63 = vpop.eup %741 }
  0xdf   :  { %v537_v59 = vpack.c.bf16 %v521_v62, %v521_v62  ;;  %v514_v1 = vmul.f32 %v742_v63, %v482_v60 }
  0xe1   :  { %554 = vst.msk [vmem:[#allocation2 + $0x38] sm:$0xf] %vm539_vm3, %v537_v59  ;;  %v530_v2 = vpack.c.bf16 %v514_v1, %v514_v1 }
  0xe2   :  { %v744_v19 = vpop.eup %743 }
  0xe3   :  { %547 = vst.msk [vmem:[#allocation2 + $0x1c] sm:$0xf] %vm539_vm3, %v530_v2  ;;  %v522_v32 = vmul.f32 %v744_v19, %v490_v3 }
  0xe5   :  { %v538_v36 = vpack.c.bf16 %v522_v32, %v522_v32 }
  0xe7   :  { %555 = vst.msk [vmem:[#allocation2 + $0x3c] sm:$0xf] %vm539_vm3, %v538_v36 }
  0xe8   :  { %568 = dma.vmem_to_hbm [thread:$0]  %s561_s2, 1024, %s563_s3, [#allocation3], %s772_s29, %s772_s29, %s773_s30  }
  0xe9   :  { %769 = dma.done.wait [#allocation3], 1024  }
  0xea   :  { %770 = vsyncadd [#allocation3], 4294966272 }
  0xeb   :  { %573 = vsyncpa [#allocation3], 1 }

// kernel: bottleneck_smish_forward.4
= control target key start
LH: loop header
LB: loop body
LE: loop exit
PB: predicated region body
PF: predicated region fallthrough
CT: control target
= control target key end

     0   :  { %s1745_s12 = smov 0   ;;  %s2107_s0 = inlined_call_operand.vmem [shape: bf16[8,9,9,8], index: 0, kind: input, shape index: {}]   ;;  %s2108_s1 = inlined_call_operand.vmem [shape: bf16[3,24,8], index: 1, kind: input, shape index: {}]   ;;  %s2109_s2 = inlined_call_operand.vmem [shape: f32[1,8], index: 2, kind: input, shape index: {}]   ;;  %s2110_s3 = inlined_call_operand.vmem [shape: bf16[2,64,8], index: 3, kind: output, shape index: {}]  }
   0x1 LB: > { %s1751_s13 = sadd.s32 4294967295, %s1723_s12   ;;  %p1430_p0 = scmp.ge.s32.totalorder %s1723_s12, 1  ;;  %s1723_s12 = sphi %s1745_s12, %s13_s12  }
   0x2   : > { %p139_p1 = scmp.lt.s32.totalorder %s1723_s12, 3 }
   0x4   : > { %p140_p2 = pnand %p1430_p0, %p139_p1 }
   0x5   : > { %s1431_s16 = sshll.u32 (!%p140_p2), %s1751_s13, 2  ;;  %p171_p4 = scmp.lt.s32.totalorder (!%p140_p2), %s1751_s13, 1 }
   0x6   : > { %143 = sbr.rel (%p140_p2) target bundleno = 329 (0x149), region = 32  ;;  %p165_p3 = scmp.lt.s32.totalorder (!%p140_p2), %s1431_s16, 7 }
   0xb   : > { %v195_v0 = vld [vmem:[%s2108_s1 + $0x4] sm:$0xf]  ;;  %vm229_vm0 = vcmask 1043456   ;;  %v457_v2 = vld [vmem:[%s2108_s1 + $0x8] sm:$0xf]  ;;  %s2114_s16 = smov (!%p165_p3, %s1431_s16), 7 }
   0xc   : > { %v231_v1 = vsel %vm229_vm0, %v195_v0, 0  ;;  %v1495_v3 = vld [vmem:[%s2108_s1 + $0xc] sm:$0xf]  ;;  %v483_v4 = vsel %vm229_vm0, %v457_v2, 0  ;;  %v185_v6 = vld [vmem:[%s2108_s1] sm:$0xf] }
   0xd   : > { %1672 = vmatpush.bf16.msra.mxu1 %v231_v1  ;;  %1673 = vmatpush.bf16.msra.mxu2 %v231_v1  ;;  %v566_v5 = vsel %vm229_vm0, %v1495_v3, 0  ;;  %v1524_v7 = vld [vmem:[%s2108_s1 + $0x10] sm:$0xf]  ;;  %v295_v8 = vsel %vm229_vm0, %v185_v6, 0  ;;  %s1675_s25 = smul.u32 72, %s2114_s16  ;;  %vm216_vm1 = vcmask 64512  }
   0xe   : > { %1674 = vmatpush.bf16.msra.mxu3 %v231_v1  ;;  %240 = vmatpush.bf16.msra.mxu0 %v231_v1  ;;  %v648_v9 = vsel %vm229_vm0, %v1524_v7, 0  ;;  %v1574_v10 = vld [vmem:[%s2108_s1 + $0x18] sm:$0xf]  ;;  %v1603_v11 = vld [vmem:[%s2108_s1 + $0x1c] sm:$0xf]  ;;  %s2116_s13 = smov (!%p171_p4, %s1751_s13), 1 }
   0xf   : > { %s1782_s30 = scalar_lea.vmem %s2107_s0, %s1675_s25  ;;  %v1561_v12 = vld [vmem:[%s2108_s1 + $0x14] sm:$0xf]  ;;  %v1640_v13 = vld [vmem:[%s2108_s1 + $0x20] sm:$0xf]  ;;  %v924_v25 = vsel %vm229_vm0, %v1574_v10, 0  ;;  %v1006_v26 = vsel %vm229_vm0, %v1603_v11, 0 }
  0x10   : > { %v1449_v14 = vld [vmem:[%s1782_s30 + $0x58] sm:$0xf]  ;;  %v1653_v15 = vld [vmem:[%s1782_s30 + $0x5c] sm:$0xf0]  ;;  %v1453_v16 = vld [vmem:[%s1782_s30 + $0x68] sm:$0xf] }
  0x11   : > { %492 = vmatpush.bf16.msrb.mxu2 %v483_v4  ;;  %304 = vmatpush.bf16.msrb.mxu1 %v295_v8  ;;  %v1450_v17 = vor.u32 %v1653_v15, %v1449_v14  ;;  %v1654_v18 = vld [vmem:[%s1782_s30 + $0x6c] sm:$0xf0]  ;;  %v1457_v19 = vld [vmem:[%s1782_s30 + $0x78] sm:$0xf]  ;;  %v1655_v20 = vld [vmem:[%s1782_s30 + $0x7c] sm:$0xf0] }
  0x12   : > { %575 = vmatpush.bf16.msrb.mxu3 %v566_v5  ;;  %657 = vmatpush.bf16.msrb.mxu0 %v648_v9  ;;  %v1454_v21 = vor.u32 %v1654_v18, %v1453_v16  ;;  %v1458_v22 = vor.u32 %v1655_v20, %v1457_v19  ;;  %v1445_v23 = vld [vmem:[%s1782_s30 + $0x48] sm:$0xf]  ;;  %v1652_v24 = vld [vmem:[%s1782_s30 + $0x4c] sm:$0xf0]  ;;  %v326_v28 = vld [vmem:[%s1782_s30] sm:$0xf] }
  0x13   : > { %1460 = vmatmul.msk.bf16.vlgmr.msra.gmra.mxu1 %vm216_vm1, %v1450_v17  ;;  %v1446_v27 = vor.u32 %v1652_v24, %v1445_v23  ;;  %v327_v29 = vld [vmem:[%s1782_s30 + $0x4] sm:$0x1]  ;;  %v841_v30 = vsel %vm229_vm0, %v1561_v12, 0  ;;  %v1199_v31 = vsel %vm229_vm0, %v1640_v13, 0  ;;  %v328_v32 = vld [vmem:[%s1782_s30 + $0x8] sm:$0xf] }
  0x14   : > { %1461 = vmatmul.msk.bf16.vlgmr.msra.gmra.mxu2 %vm216_vm1, %v1454_v21  ;;  %1462 = vmatmul.msk.bf16.vlgmr.msra.gmra.mxu3 %vm216_vm1, %v1458_v22  ;;  %v329_v33 = vld [vmem:[%s1782_s30 + $0xc] sm:$0x1]  ;;  %v346_v34 = vshrl.u32 %v326_v28, 16  ;;  %v349_v35 = vshll.u32 %v326_v28, 16  ;;  %v355_v36 = vshll.u32 %v327_v29, 16  ;;  %v360_v37 = vshrl.u32 %v328_v32, 16 }
  0x15   : > { %1459 = vmatmul.msk.bf16.vlgmr.msra.gmra.mxu0 %vm216_vm1, %v1446_v27  ;;  %v363_v38 = vshll.u32 %v328_v32, 16  ;;  %v369_v39 = vshll.u32 %v329_v33, 16  ;;  %933 = vmatpush.bf16.msra.mxu2 %v924_v25  ;;  %vm342_vm2 = vsmask.f32 3328  ;;  %vm343_vm3 = vsmask.f32 7440 }
  0x16   : > { %v348_v40 = vrot.slane %v346_v34, 4  ;;  %v351_v41 = vrot.slane %v349_v35, 5  ;;  %1015 = vmatpush.bf16.msra.mxu3 %v1006_v26  ;;  %850 = vmatpush.bf16.msra.mxu1 %v841_v30  ;;  %v362_v42 = vrot.slane %v360_v37, 4  ;;  %v357_v45 = vrot.slane %v355_v36, 5  ;;  %v330_v46 = vld [vmem:[%s1782_s30 + $0x10] sm:$0xf]  ;;  %vm1814_vm4 = vmor %vm342_vm2, %vm343_vm3 }
  0x17   : > { %v365_v43 = vrot.slane %v363_v38, 5  ;;  %1208 = vmatpush.bf16.msra.mxu0 %v1199_v31  ;;  %v371_v49 = vrot.slane %v369_v39, 5  ;;  %v332_v50 = vld [vmem:[%s1782_s30 + $0x18] sm:$0xf]  ;;  %v1465_v51 = vld [vmem:[%s1782_s30] sm:$0xf] }
  0x18   : > { %v352_v44 = vor.u32 %v351_v41, %v348_v40  ;;  %v374_v53 = vshrl.u32 %v330_v46, 16  ;;  %v377_v54 = vshll.u32 %v330_v46, 16  ;;  %v1648_v55 = vld [vmem:[%s1782_s30 + $0x4] sm:$0xf0]  ;;  %v388_v57 = vshrl.u32 %v332_v50, 16  ;;  %s1647_s14 = sshll.u32 %s2116_s13, 5 }
  0x19   : > { %v366_v48 = vor.u32 %v365_v43, %v362_v42  ;;  %v391_v58 = vshll.u32 %v332_v50, 16  ;;  %v1498_v60 = vld [vmem:[%s1782_s30 + $0x90] sm:$0xf]  ;;  %v1656_v61 = vld [vmem:[%s1782_s30 + $0x94] sm:$0xf0]  ;;  %v1466_v9 = vor.u32 %v1648_v55, %v1465_v51  ;;  %s2064_s17 = scalar_lea.vmem %s2110_s3, %s1647_s14  ;;  %vm1362_vm5 = vcmask 60416  }
  0x1a   : > { %v353_v52 = vrot.slane %v352_v44, 4  ;;  %v376_v62 = vrot.slane %v374_v53, 4  ;;  %v379_v63 = vrot.slane %v377_v54, 5  ;;  %v1527_v2 = vld [vmem:[%s1782_s30 + $0xd8] sm:$0xf]  ;;  %v390_v4 = vrot.slane %v388_v57, 4 }
  0x1b   : > { %v367_v56 = vrot.slane %v366_v48, 4  ;;  %v1660_v3 = vld [vmem:[%s1782_s30 + $0xdc] sm:$0xf0]  ;;  %v393_v5 = vrot.slane %v391_v58, 5  ;;  %v331_v7 = vld [vmem:[%s1782_s30 + $0x14] sm:$0x1]  ;;  %v1499_v11 = vor.u32 %v1656_v61, %v1498_v60 }
  0x1c   : > { %v358_v59 = vsel %vm1814_vm4, %v353_v52, %v357_v45  ;;  %v333_v8 = vld [vmem:[%s1782_s30 + $0x1c] sm:$0x1]  ;;  %v1528_v12 = vor.u32 %v1660_v3, %v1527_v2  ;;  %v380_v13 = vor.u32 %v379_v63, %v376_v62  ;;  %v383_v14 = vshll.u32 %v331_v7, 16  ;;  %v334_v21 = vld [vmem:[%s1782_s30 + $0x20] sm:$0xf] }
  0x1d   : > { %v372_v0 = vsel %vm1814_vm4, %v367_v56, %v371_v49  ;;  %v458_v1 = vunpack.c.l.b16 %v358_v59  ;;  %v394_v15 = vor.u32 %v393_v5, %v390_v4  ;;  %v397_v16 = vshll.u32 %v333_v8, 16  ;;  %v336_v22 = vld [vmem:[%s1782_s30 + $0x28] sm:$0xf]  ;;  %v1469_v29 = vld [vmem:[%s1782_s30 + $0x10] sm:$0xf] }
  0x1e   : > { %v459_v6 = vunpack.c.l.b16 %v372_v0  ;;  %v381_v17 = vrot.slane %v380_v13, 4  ;;  %v385_v18 = vrot.slane %v383_v14, 5  ;;  %v402_v23 = vshrl.u32 %v334_v21, 16  ;;  %v1649_v30 = vld [vmem:[%s1782_s30 + $0x14] sm:$0xf0] }
  0x1f   : > { %v395_v19 = vrot.slane %v394_v15, 4  ;;  %v399_v20 = vrot.slane %v397_v16, 5  ;;  %v405_v24 = vshll.u32 %v334_v21, 16  ;;  %v416_v27 = vshrl.u32 %v336_v22, 16  ;;  %v1502_v33 = vld [vmem:[%s1782_s30 + $0xa0] sm:$0xf] }
  0x20   : > { %v466_v10 = vpack.c.b16 %v459_v6, %v458_v1  ;;  %v386_v25 = vsel %vm1814_vm4, %v381_v17, %v385_v18  ;;  %v419_v28 = vshll.u32 %v336_v22, 16  ;;  %v1657_v34 = vld [vmem:[%s1782_s30 + $0xa4] sm:$0xf0]  ;;  %v1661_v36 = vld [vmem:[%s1782_s30 + $0xec] sm:$0xf0]  ;;  %v404_v37 = vrot.slane %v402_v23, 4 }
  0x21   : > { %v400_v26 = vsel %vm1814_vm4, %v395_v19, %v399_v20  ;;  %v460_v31 = vunpack.c.l.b16 %v386_v25  ;;  %v1531_v35 = vld [vmem:[%s1782_s30 + $0xe8] sm:$0xf]  ;;  %v407_v38 = vrot.slane %v405_v24, 5  ;;  %v418_v39 = vrot.slane %v416_v27, 4  ;;  %v335_v41 = vld [vmem:[%s1782_s30 + $0x24] sm:$0x1] }
  0x22   : > { %v461_v32 = vunpack.c.l.b16 %v400_v26  ;;  %v421_v40 = vrot.slane %v419_v28, 5  ;;  %v337_v42 = vld [vmem:[%s1782_s30 + $0x2c] sm:$0x1]  ;;  %v1470_v43 = vor.u32 %v1649_v30, %v1469_v29  ;;  %v1503_v45 = vor.u32 %v1657_v34, %v1502_v33  ;;  %v338_v52 = vld [vmem:[%s1782_s30 + $0x30] sm:$0xf] }
  0x23   : > { %1479 = vmatmul.msk.bf16.vlgmr.msrb.gmra.mxu1 %vm216_vm1, %v1466_v9  ;;  %v1532_v46 = vor.u32 %v1661_v36, %v1531_v35  ;;  %v408_v48 = vor.u32 %v407_v38, %v404_v37  ;;  %v411_v49 = vshll.u32 %v335_v41, 16  ;;  %v425_v51 = vshll.u32 %v337_v42, 16  ;;  %v340_v53 = vld [vmem:[%s1782_s30 + $0x38] sm:$0xf]  ;;  %v339_v4 = vld [vmem:[%s1782_s30 + $0x34] sm:$0x1] }
  0x24   : > { %1483 = vmatmul.msk.bf16.vlgmr.msrb.gmra.mxu2 %vm216_vm1, %v466_v10  ;;  %1512 = vmatmul.msk.bf16.vlgmr.msrb.gmra.mxu3 %vm216_vm1, %v1499_v11  ;;  %v467_v44 = vpack.c.b16 %v461_v32, %v460_v31  ;;  %v422_v50 = vor.u32 %v421_v40, %v418_v39  ;;  %v430_v58 = vshrl.u32 %v338_v52, 16  ;;  %v433_v59 = vshll.u32 %v338_v52, 16  ;;  %v341_v5 = vld [vmem:[%s1782_s30 + $0x3c] sm:$0x1]  ;;  %v1473_v6 = vld [vmem:[%s1782_s30 + $0x20] sm:$0xf] }
  0x25   : > { %1541 = vmatmul.msk.bf16.vlgmr.msrb.gmra.mxu0 %vm216_vm1, %v1528_v12  ;;  %v409_v54 = vrot.slane %v408_v48, 4  ;;  %v413_v55 = vrot.slane %v411_v49, 5  ;;  %v427_v57 = vrot.slane %v425_v51, 5  ;;  %v444_v60 = vshrl.u32 %v340_v53, 16  ;;  %v1650_v7 = vld [vmem:[%s1782_s30 + $0x24] sm:$0xf0] }
  0x26   : > { %v423_v56 = vrot.slane %v422_v50, 4  ;;  %v447_v61 = vshll.u32 %v340_v53, 16  ;;  %v432_v0 = vrot.slane %v430_v58, 4  ;;  %v435_v1 = vrot.slane %v433_v59, 5  ;;  %v1506_v10 = vld [vmem:[%s1782_s30 + $0xb0] sm:$0xf] }
  0x27   : > { %v414_v62 = vsel %vm1814_vm4, %v409_v54, %v413_v55  ;;  %v446_v2 = vrot.slane %v444_v60, 4  ;;  %v1658_v11 = vld [vmem:[%s1782_s30 + $0xb4] sm:$0xf0]  ;;  %v1662_v13 = vld [vmem:[%s1782_s30 + $0xfc] sm:$0xf0]  ;;  %v439_v15 = vshll.u32 %v339_v4, 16  ;;  %v1474_v18 = vor.u32 %v1650_v7, %v1473_v6 }
  0x28   : > { %v428_v63 = vsel %vm1814_vm4, %v423_v56, %v427_v57  ;;  %v449_v3 = vrot.slane %v447_v61, 5  ;;  %v462_v8 = vunpack.c.l.b16 %v414_v62  ;;  %v1535_v12 = vld [vmem:[%s1782_s30 + $0xf8] sm:$0xf]  ;;  %v436_v14 = vor.u32 %v435_v1, %v432_v0  ;;  %v1545_v26 = vld [vmem:[%s1782_s30 + $0x90] sm:$0xf] }
  0x29   : > { %v463_v9 = vunpack.c.l.b16 %v428_v63  ;;  %v453_v17 = vshll.u32 %v341_v5, 16  ;;  %v1507_v20 = vor.u32 %v1658_v11, %v1506_v10  ;;  %v1536_v21 = vor.u32 %v1662_v13, %v1535_v12  ;;  %v1547_v27 = vld [vmem:[%s1782_s30 + $0x98] sm:$0xf]  ;;  %v1624_v28 = vld [vmem:[%s1782_s30 + $0x8] sm:$0xf] }
  0x2a   : > { %v450_v16 = vor.u32 %v449_v3, %v446_v2  ;;  %v437_v22 = vrot.slane %v436_v14, 4  ;;  %v441_v23 = vrot.slane %v439_v15, 5  ;;  %v1626_v29 = vld [vmem:[%s1782_s30 + $0x10] sm:$0xf]  ;;  %v704_v32 = vshrl.u32 %v1545_v26, 16 }
  0x2b   : > { %v468_v19 = vpack.c.b16 %v463_v9, %v462_v8  ;;  %v455_v25 = vrot.slane %v453_v17, 5  ;;  %v707_v33 = vshll.u32 %v1545_v26, 16  ;;  %v718_v34 = vshrl.u32 %v1547_v27, 16  ;;  %v1477_v40 = vld [vmem:[%s1782_s30 + $0x30] sm:$0xf] }
  0x2c   : > { %v451_v24 = vrot.slane %v450_v16, 4  ;;  %v442_v30 = vsel %vm1814_vm4, %v437_v22, %v441_v23  ;;  %v721_v35 = vshll.u32 %v1547_v27, 16  ;;  %v1062_v36 = vshrl.u32 %v1624_v28, 16  ;;  %v1651_v41 = vld [vmem:[%s1782_s30 + $0x34] sm:$0xf0] }
  0x2d   : > { %v1065_v37 = vshll.u32 %v1624_v28, 16  ;;  %v1076_v38 = vshrl.u32 %v1626_v29, 16  ;;  %v1079_v39 = vshll.u32 %v1626_v29, 16  ;;  %v464_v42 = vunpack.c.l.b16 %v442_v30  ;;  %v1548_v52 = vld [vmem:[%s1782_s30 + $0x9c] sm:$0x1] }
  0x2e   : > { %v456_v31 = vsel %vm1814_vm4, %v451_v24, %v455_v25  ;;  %v706_v48 = vrot.slane %v704_v32, 4  ;;  %v709_v49 = vrot.slane %v707_v33, 5  ;;  %v720_v50 = vrot.slane %v718_v34, 4  ;;  %v1625_v57 = vld [vmem:[%s1782_s30 + $0xc] sm:$0x1] }
  0x2f   : > { %v723_v51 = vrot.slane %v721_v35, 5  ;;  %v1064_v53 = vrot.slane %v1062_v36, 4  ;;  %v1067_v54 = vrot.slane %v1065_v37, 5  ;;  %v1078_v55 = vrot.slane %v1076_v38, 4  ;;  %v1627_v58 = vld [vmem:[%s1782_s30 + $0x14] sm:$0x1] }
  0x30   : > { %v1081_v56 = vrot.slane %v1079_v39, 5  ;;  %v1478_v59 = vor.u32 %v1651_v41, %v1477_v40  ;;  %v1539_v62 = vld [vmem:[%s1782_s30 + $0x108] sm:$0xf]  ;;  %v1663_v63 = vld [vmem:[%s1782_s30 + $0x10c] sm:$0xf0]  ;;  %v710_v0 = vor.u32 %v709_v49, %v706_v48  ;;  %v727_v3 = vshll.u32 %v1548_v52, 16 }
  0x31   : > { %v724_v2 = vor.u32 %v723_v51, %v720_v50  ;;  %v1068_v4 = vor.u32 %v1067_v54, %v1064_v53  ;;  %v1071_v5 = vshll.u32 %v1625_v57, 16  ;;  %v1085_v7 = vshll.u32 %v1627_v58, 16  ;;  %v1549_v9 = vld [vmem:[%s1782_s30 + $0xa0] sm:$0xf]  ;;  %v1551_v10 = vld [vmem:[%s1782_s30 + $0xa8] sm:$0xf] }
  0x32   : > { %v1082_v6 = vor.u32 %v1081_v56, %v1078_v55  ;;  %v1540_v8 = vor.u32 %v1663_v63, %v1539_v62  ;;  %v711_v11 = vrot.slane %v710_v0, 4  ;;  %v729_v14 = vrot.slane %v727_v3, 5  ;;  %v1628_v23 = vld [vmem:[%s1782_s30 + $0x18] sm:$0xf]  ;;  %v1630_v24 = vld [vmem:[%s1782_s30 + $0x20] sm:$0xf] }
  0x33   : > { %1480 = vmatmul.msk.bf16.gmra.mxu1 %vm216_vm1, %v1470_v43  ;;  %v465_v43 = vunpack.c.l.b16 %v456_v31  ;;  %v725_v13 = vrot.slane %v724_v2, 4  ;;  %v1069_v15 = vrot.slane %v1068_v4, 4  ;;  %v1073_v16 = vrot.slane %v1071_v5, 5  ;;  %v1550_v29 = vld [vmem:[%s1782_s30 + $0xa4] sm:$0x1] }
  0x34   : > { %1484 = vmatmul.msk.bf16.gmra.mxu2 %vm216_vm1, %v467_v44  ;;  %1513 = vmatmul.msk.bf16.gmra.mxu3 %vm216_vm1, %v1503_v45  ;;  %v1510_v44 = vld [vmem:[%s1782_s30 + $0xc0] sm:$0xf]  ;;  %v1659_v45 = vld [vmem:[%s1782_s30 + $0xc4] sm:$0xf0]  ;;  %v1083_v17 = vrot.slane %v1082_v6, 4  ;;  %v749_v22 = vshll.u32 %v1551_v10, 16 }
  0x35   : > { %1542 = vmatmul.msk.bf16.gmra.mxu0 %vm216_vm1, %v1532_v46  ;;  %v1546_v46 = vld [vmem:[%s1782_s30 + $0x94] sm:$0x1]  ;;  %v469_v60 = vpack.c.b16 %v465_v43, %v464_v42  ;;  %v1511_v61 = vor.u32 %v1659_v45, %v1510_v44  ;;  %v730_v26 = vsel %vm1814_vm4, %v725_v13, %v729_v14  ;;  %v1074_v27 = vsel %vm1814_vm4, %v1069_v15, %v1073_v16  ;;  %v1552_v34 = vld [vmem:[%s1782_s30 + $0xac] sm:$0x1]  ;;  %v1577_v41 = vld [vmem:[%s1782_s30 + $0x8] sm:$0xf] }
  0x36   : > { %v713_v1 = vshll.u32 %v1546_v46, 16  ;;  %v751_v33 = vrot.slane %v749_v22, 5  ;;  %v1090_v35 = vshrl.u32 %v1628_v23, 16  ;;  %v1093_v36 = vshll.u32 %v1628_v23, 16  ;;  %v1664_v42 = vld [vmem:[%s1782_s30 + $0xc] sm:$0xf0] }
  0x37   : > { %v1104_v37 = vshrl.u32 %v1630_v24, 16  ;;  %v1107_v38 = vshll.u32 %v1630_v24, 16  ;;  %v817_v40 = vunpack.c.l.b16 %v730_v26  ;;  %v1174_v43 = vunpack.c.l.b16 %v1074_v27  ;;  %v1606_v45 = vld [vmem:[%s1782_s30 + $0x50] sm:$0xf]  ;;  %v1668_v46 = vld [vmem:[%s1782_s30 + $0x54] sm:$0xf0] }
  0x38   : > { %v715_v12 = vrot.slane %v713_v1, 5  ;;  %v741_v49 = vshll.u32 %v1550_v29, 16  ;;  %v755_v51 = vshll.u32 %v1552_v34, 16  ;;  %v1092_v52 = vrot.slane %v1090_v35, 4  ;;  %v1629_v57 = vld [vmem:[%s1782_s30 + $0x1c] sm:$0x1] }
  0x39   : > { %v1095_v53 = vrot.slane %v1093_v36, 5  ;;  %v1106_v54 = vrot.slane %v1104_v37, 4  ;;  %v1109_v55 = vrot.slane %v1107_v38, 5  ;;  %v1631_v58 = vld [vmem:[%s1782_s30 + $0x24] sm:$0x1]  ;;  %v1099_v3 = vshll.u32 %v1629_v57, 16 }
  0x3a   : > { %v716_v25 = vsel %vm1814_vm4, %v711_v11, %v715_v12  ;;  %v743_v63 = vrot.slane %v741_v49, 5  ;;  %v757_v1 = vrot.slane %v755_v51, 5  ;;  %v1113_v5 = vshll.u32 %v1631_v58, 16  ;;  %v1553_v6 = vld [vmem:[%s1782_s30 + $0xb0] sm:$0xf] }
  0x3b   : > { %v816_v39 = vunpack.c.l.b16 %v716_v25  ;;  %v1096_v2 = vor.u32 %v1095_v53, %v1092_v52  ;;  %v1110_v4 = vor.u32 %v1109_v55, %v1106_v54  ;;  %v1101_v12 = vrot.slane %v1099_v3, 5  ;;  %v1634_v15 = vld [vmem:[%s1782_s30 + $0x30] sm:$0xf]  ;;  %v1665_v29 = vld [vmem:[%s1782_s30 + $0x1c] sm:$0xf0] }
  0x3c   : > { %v1115_v14 = vrot.slane %v1113_v5, 5  ;;  %v760_v16 = vshrl.u32 %v1553_v6, 16  ;;  %v1132_v22 = vshrl.u32 %v1634_v15, 16  ;;  %v1135_v23 = vshll.u32 %v1634_v15, 16  ;;  %v1554_v35 = vld [vmem:[%s1782_s30 + $0xb4] sm:$0x1] }
  0x3d   : > { %v824_v56 = vpack.c.b16 %v817_v40, %v816_v39  ;;  %v1097_v11 = vrot.slane %v1096_v2, 4  ;;  %v1111_v13 = vrot.slane %v1110_v4, 4  ;;  %v1556_v36 = vld [vmem:[%s1782_s30 + $0xbc] sm:$0x1]  ;;  %v1669_v39 = vld [vmem:[%s1782_s30 + $0x64] sm:$0xf0] }
  0x3e   : > { %v769_v49 = vshll.u32 %v1554_v35, 16  ;;  %v783_v51 = vshll.u32 %v1556_v36, 16  ;;  %v1557_v3 = vld [vmem:[%s1782_s30 + $0xc0] sm:$0xf]  ;;  %v1559_v4 = vld [vmem:[%s1782_s30 + $0xc8] sm:$0xf] }
  0x3f   : > { %v1102_v26 = vsel %vm1814_vm4, %v1097_v11, %v1101_v12  ;;  %v1116_v27 = vsel %vm1814_vm4, %v1111_v13, %v1115_v14  ;;  %v802_v11 = vshrl.u32 %v1559_v4, 16  ;;  %v805_v12 = vshll.u32 %v1559_v4, 16  ;;  %v1618_v4 = vld [vmem:[%s1782_s30 + $0x80] sm:$0xf] }
  0x40   : > { %v1176_v40 = vunpack.c.l.b16 %v1102_v26 }
  0x43   : > { %1481 = vmatmul.msk.bf16.gmra.mxu1 %vm216_vm1, %v1474_v18  ;;  %v1087_v18 = vrot.slane %v1085_v7, 5  ;;  %v1555_v7 = vld [vmem:[%s1782_s30 + $0xb8] sm:$0xf] }
  0x44   : > { %1485 = vmatmul.msk.bf16.gmra.mxu2 %vm216_vm1, %v468_v19  ;;  %1514 = vmatmul.msk.bf16.gmra.mxu3 %vm216_vm1, %v1507_v20  ;;  %v732_v19 = vshrl.u32 %v1549_v9, 16  ;;  %v735_v20 = vshll.u32 %v1549_v9, 16 }
  0x45   : > { %1543 = vmatmul.msk.bf16.gmra.mxu0 %vm216_vm1, %v1536_v21  ;;  %v746_v21 = vshrl.u32 %v1551_v10, 16  ;;  %v1088_v28 = vsel %vm1814_vm4, %v1083_v17, %v1087_v18  ;;  %v1632_v10 = vld [vmem:[%s1782_s30 + $0x28] sm:$0xf]  ;;  %v763_v17 = vshll.u32 %v1553_v6, 16  ;;  %v774_v18 = vshrl.u32 %v1555_v7, 16 }
  0x46   : > { %v734_v30 = vrot.slane %v732_v19, 4  ;;  %v737_v31 = vrot.slane %v735_v20, 5  ;;  %v1175_v44 = vunpack.c.l.b16 %v1088_v28  ;;  %v777_v19 = vshll.u32 %v1555_v7, 16  ;;  %v1581_v28 = vld [vmem:[%s1782_s30 + $0x18] sm:$0xf] }
  0x47   : > { %v748_v32 = vrot.slane %v746_v21, 4  ;;  %v1118_v20 = vshrl.u32 %v1632_v10, 16  ;;  %v1121_v21 = vshll.u32 %v1632_v10, 16  ;;  %v1582_v52 = vor.u32 %v1665_v29, %v1581_v28  ;;  %v1636_v7 = vld [vmem:[%s1782_s30 + $0x38] sm:$0xf] }
  0x48   : > { %v738_v48 = vor.u32 %v737_v31, %v734_v30  ;;  %v1610_v30 = vld [vmem:[%s1782_s30 + $0x60] sm:$0xf]  ;;  %v762_v31 = vrot.slane %v760_v16, 4  ;;  %v779_v34 = vrot.slane %v777_v19, 5  ;;  %v791_v10 = vshll.u32 %v1557_v3, 16 }
  0x49   : > { %v752_v50 = vor.u32 %v751_v33, %v748_v32  ;;  %v765_v32 = vrot.slane %v763_v17, 5  ;;  %v776_v33 = vrot.slane %v774_v18, 4  ;;  %v1120_v37 = vrot.slane %v1118_v20, 4 }
  0x4a   : > { %v739_v62 = vrot.slane %v738_v48, 4  ;;  %v1123_v38 = vrot.slane %v1121_v21, 5  ;;  %v1611_v53 = vor.u32 %v1669_v39, %v1610_v30  ;;  %v1146_v15 = vshrl.u32 %v1636_v7, 16  ;;  %v1585_v21 = vld [vmem:[%s1782_s30 + $0x28] sm:$0xf] }
  0x4b   : > { %v753_v0 = vrot.slane %v752_v50, 4  ;;  %v766_v48 = vor.u32 %v765_v32, %v762_v31  ;;  %v780_v50 = vor.u32 %v779_v34, %v776_v33  ;;  %v1149_v16 = vshll.u32 %v1636_v7, 16  ;;  %v1558_v31 = vld [vmem:[%s1782_s30 + $0xc4] sm:$0x1]  ;;  %v1560_v32 = vld [vmem:[%s1782_s30 + $0xcc] sm:$0x1] }
  0x4c   : > { %v1124_v54 = vor.u32 %v1123_v38, %v1120_v37  ;;  %v793_v26 = vrot.slane %v791_v10, 5  ;;  %v807_v28 = vrot.slane %v805_v12, 5  ;;  %v1148_v33 = vrot.slane %v1146_v15, 4 }
  0x4d   : > { %v758_v9 = vsel %vm1814_vm4, %v753_v0, %v757_v1  ;;  %v1151_v34 = vrot.slane %v1149_v16, 5 }
  0x4e   : > { %v819_v25 = vunpack.c.l.b16 %v758_v9  ;;  %v788_v9 = vshrl.u32 %v1557_v3, 16  ;;  %v1667_v3 = vld [vmem:[%s1782_s30 + $0x3c] sm:$0xf0] }
  0x53   : > { %1482 = vmatmul.msk.bf16.gmra.mxu1 %vm216_vm1, %v1478_v59  ;;  %v1578_v59 = vor.u32 %v1664_v42, %v1577_v41  ;;  %v1177_v41 = vunpack.c.l.b16 %v1116_v27  ;;  %v1633_v42 = vld [vmem:[%s1782_s30 + $0x2c] sm:$0x1]  ;;  %v804_v27 = vrot.slane %v802_v11, 4 }
  0x54   : > { %1486 = vmatmul.msk.bf16.gmra.mxu2 %vm216_vm1, %v469_v60  ;;  %1515 = vmatmul.msk.bf16.gmra.mxu3 %vm216_vm1, %v1511_v61  ;;  %v1607_v60 = vor.u32 %v1668_v46, %v1606_v45  ;;  %v1182_v61 = vpack.c.b16 %v1175_v44, %v1174_v43  ;;  %v1134_v43 = vrot.slane %v1132_v22, 4  ;;  %v1137_v44 = vrot.slane %v1135_v23, 5  ;;  %v1635_v46 = vld [vmem:[%s1782_s30 + $0x34] sm:$0x1]  ;;  %v1666_v22 = vld [vmem:[%s1782_s30 + $0x2c] sm:$0xf0] }
  0x55   : > { %1544 = vmatmul.msk.bf16.gmra.mxu0 %vm216_vm1, %v1540_v8  ;;  %v744_v8 = vsel %vm1814_vm4, %v739_v62, %v743_v63  ;;  %v1127_v55 = vshll.u32 %v1633_v42, 16  ;;  %v1141_v58 = vshll.u32 %v1635_v46, 16  ;;  %v785_v62 = vrot.slane %v783_v51, 5  ;;  %v1614_v23 = vld [vmem:[%s1782_s30 + $0x70] sm:$0xf] }
  0x56   : > { %v818_v24 = vunpack.c.l.b16 %v744_v8  ;;  %v1138_v57 = vor.u32 %v1137_v44, %v1134_v43  ;;  %v1125_v63 = vrot.slane %v1124_v54, 4  ;;  %v1638_v8 = vld [vmem:[%s1782_s30 + $0x40] sm:$0xf]  ;;  %v1586_v38 = vor.u32 %v1666_v22, %v1585_v21 }
  0x57   : > { %v1129_v0 = vrot.slane %v1127_v55, 5  ;;  %v1143_v2 = vrot.slane %v1141_v58, 5  ;;  %v1160_v17 = vshrl.u32 %v1638_v8, 16  ;;  %v1163_v18 = vshll.u32 %v1638_v8, 16 }
  0x58   : > { %v825_v45 = vpack.c.b16 %v819_v25, %v818_v24  ;;  %v1139_v1 = vrot.slane %v1138_v57, 4  ;;  %v1670_v24 = vld [vmem:[%s1782_s30 + $0x74] sm:$0xf0]  ;;  %v790_v25 = vrot.slane %v788_v9, 4  ;;  %v797_v43 = vshll.u32 %v1558_v31, 16 }
  0x59   : > { %v1130_v13 = vsel %vm1814_vm4, %v1125_v63, %v1129_v0  ;;  %v1162_v35 = vrot.slane %v1160_v17, 4  ;;  %v1165_v36 = vrot.slane %v1163_v18, 5  ;;  %v1615_v39 = vor.u32 %v1670_v24, %v1614_v23 }
  0x5a   : > { %v1144_v14 = vsel %vm1814_vm4, %v1139_v1, %v1143_v2  ;;  %v1178_v29 = vunpack.c.l.b16 %v1130_v13  ;;  %v794_v42 = vor.u32 %v793_v26, %v790_v25  ;;  %v808_v44 = vor.u32 %v807_v28, %v804_v27  ;;  %v1589_v2 = vld [vmem:[%s1782_s30 + $0x38] sm:$0xf] }
  0x5b   : > { %v1179_v30 = vunpack.c.l.b16 %v1144_v14  ;;  %v1590_v10 = vor.u32 %v1667_v3, %v1589_v2 }
  0x5c   : > { %v809_v54 = vrot.slane %v808_v44, 4 }
  0x5d   : > { %v1184_v46 = vpack.c.b16 %v1179_v30, %v1178_v29 }
  0x63   : > { %1562 = vmatmul.msk.bf16.vlgmr.msra.gmra.mxu1 %vm216_vm1, %v824_v56  ;;  %v1183_v56 = vpack.c.b16 %v1177_v41, %v1176_v40  ;;  %v1637_v40 = vld [vmem:[%s1782_s30 + $0x3c] sm:$0x1]  ;;  %v1639_v41 = vld [vmem:[%s1782_s30 + $0x44] sm:$0x1] }
  0x64   : > { %1591 = vmatmul.msk.bf16.vlgmr.msra.gmra.mxu2 %vm216_vm1, %v1578_v59  ;;  %1620 = vmatmul.msk.bf16.vlgmr.msra.gmra.mxu3 %vm216_vm1, %v1607_v60  ;;  %v767_v59 = vrot.slane %v766_v48, 4  ;;  %v771_v60 = vrot.slane %v769_v49, 5  ;;  %v1152_v48 = vor.u32 %v1151_v34, %v1148_v33  ;;  %v1155_v49 = vshll.u32 %v1637_v40, 16 }
  0x65   : > { %1641 = vmatmul.msk.bf16.vlgmr.msra.gmra.mxu0 %vm216_vm1, %v1182_v61  ;;  %v781_v61 = vrot.slane %v780_v50, 4  ;;  %v1166_v50 = vor.u32 %v1165_v36, %v1162_v35  ;;  %v1169_v51 = vshll.u32 %v1639_v41, 16 }
  0x66   : > { %v772_v5 = vsel %vm1814_vm4, %v767_v59, %v771_v60  ;;  %v1157_v57 = vrot.slane %v1155_v49, 5 }
  0x67   : > { %v786_v6 = vsel %vm1814_vm4, %v781_v61, %v785_v62  ;;  %v820_v19 = vunpack.c.l.b16 %v772_v5  ;;  %v1167_v58 = vrot.slane %v1166_v50, 4  ;;  %v1171_v59 = vrot.slane %v1169_v51, 5  ;;  %v1671_v5 = vld [vmem:[%s1782_s30 + $0x84] sm:$0xf0] }
  0x68   : > { %v821_v20 = vunpack.c.l.b16 %v786_v6  ;;  %v1619_v11 = vor.u32 %v1671_v5, %v1618_v4  ;;  %v2026_v4 = vld [vmem:[%s2109_s2] ss:$0 sm:$0xff] }
  0x69   : > { %v1172_v63 = vsel %vm1814_vm4, %v1167_v58, %v1171_v59 }
  0x6a   : > { %v826_v37 = vpack.c.b16 %v821_v20, %v820_v19  ;;  %v1181_v7 = vunpack.c.l.b16 %v1172_v63 }
  0x73   : > { %1563 = vmatmul.msk.bf16.gmra.mxu1 %vm216_vm1, %v825_v45  ;;  %v811_v45 = vshll.u32 %v1560_v32, 16 }
  0x74   : > { %1592 = vmatmul.msk.bf16.gmra.mxu2 %vm216_vm1, %v1582_v52  ;;  %1621 = vmatmul.msk.bf16.gmra.mxu3 %vm216_vm1, %v1611_v53  ;;  %v795_v52 = vrot.slane %v794_v42, 4  ;;  %v799_v53 = vrot.slane %v797_v43, 5 }
  0x75   : > { %1642 = vmatmul.msk.bf16.gmra.mxu0 %vm216_vm1, %v1183_v56  ;;  %v813_v55 = vrot.slane %v811_v45, 5  ;;  %v1153_v56 = vrot.slane %v1152_v48, 4 }
  0x76   : > { %v800_v60 = vsel %vm1814_vm4, %v795_v52, %v799_v53 }
  0x77   : > { %v814_v61 = vsel %vm1814_vm4, %v809_v54, %v813_v55  ;;  %v1158_v62 = vsel %vm1814_vm4, %v1153_v56, %v1157_v57  ;;  %v822_v0 = vunpack.c.l.b16 %v800_v60 }
  0x78   : > { %v823_v1 = vunpack.c.l.b16 %v814_v61  ;;  %v1180_v6 = vunpack.c.l.b16 %v1158_v62 }
  0x7a   : > { %v827_v8 = vpack.c.b16 %v823_v1, %v822_v0  ;;  %v1185_v12 = vpack.c.b16 %v1181_v7, %v1180_v6 }
  0x83   : > { %1564 = vmatmul.msk.bf16.gmra.mxu1 %vm216_vm1, %v826_v37 }
  0x84   : > { %1593 = vmatmul.msk.bf16.gmra.mxu2 %vm216_vm1, %v1586_v38  ;;  %1622 = vmatmul.msk.bf16.gmra.mxu3 %vm216_vm1, %v1615_v39 }
  0x85   : > { %1643 = vmatmul.msk.bf16.gmra.mxu0 %vm216_vm1, %v1184_v46 }
  0x90   : > { %v247_v9 = vpop.f32.mrf.mxu1 }
  0x92   : > { %v242_v13 = vpop.f32.mrf.mxu0 }
  0x93   : > { %1565 = vmatmul.msk.bf16.gmra.mxu1 %vm216_vm1, %v827_v8 }
  0x94   : > { %1594 = vmatmul.msk.bf16.gmra.mxu2 %vm216_vm1, %v1590_v10  ;;  %1623 = vmatmul.msk.bf16.gmra.mxu3 %vm216_vm1, %v1619_v11 }
  0x95   : > { %1644 = vmatmul.msk.bf16.gmra.mxu0 %vm216_vm1, %v1185_v12 }
  0x97   : > { %v1981_v47 = vpop.f32.mrf.mxu2  ;;  %v1983_v14 = vpop.f32.mrf.mxu3 }
  0x98   : > { %v1985_v15 = vpop.f32.mrf.mxu1 }
  0x9a   : > { %v244_v16 = vpop.f32.mrf.mxu0 }
  0x9f   : > { %v1987_v17 = vpop.f32.mrf.mxu2  ;;  %v1989_v18 = vpop.f32.mrf.mxu3 }
  0xa0   : > { %v306_v19 = vpop.f32.mrf.mxu1 }
  0xa1   : > { %v307_v49 = vadd.f32 %v306_v19, %v242_v13 }
  0xa2   : > { %v659_v20 = vpop.f32.mrf.mxu0 }
  0xa7   : > { %v494_v21 = vpop.f32.mrf.mxu2  ;;  %v577_v22 = vpop.f32.mrf.mxu3 }
  0xa8   : > { %v308_v23 = vpop.f32.mrf.mxu1  ;;  %v514_v51 = vadd.f32 %v494_v21, %v307_v49 }
  0xa9   : > { %v309_v56 = vadd.f32 %v308_v23, %v244_v16 }
  0xaa   : > { %v661_v24 = vpop.f32.mrf.mxu0  ;;  %v597_v54 = vadd.f32 %v577_v22, %v514_v51 }
  0xac   : > { %v679_v59 = vadd.f32 %v659_v20, %v597_v54 }
  0xaf   : > { %v496_v25 = vpop.f32.mrf.mxu2  ;;  %v579_v26 = vpop.f32.mrf.mxu3 }
  0xb0   : > { %v311_v27 = vpop.f32.mrf.mxu1  ;;  %v515_v58 = vadd.f32 %v496_v25, %v309_v56 }
  0xb1   : > { %v312_v2 = vadd.f32 %v311_v27, %v247_v9 }
  0xb2   : > { %v664_v28 = vpop.f32.mrf.mxu0  ;;  %v598_v63 = vadd.f32 %v579_v26, %v515_v58 }
  0xb4   : > { %v680_v8 = vadd.f32 %v661_v24, %v598_v63 }
  0xb7   : > { %v499_v29 = vpop.f32.mrf.mxu2  ;;  %v582_v30 = vpop.f32.mrf.mxu3 }
  0xb8   : > { %v313_v31 = vpop.f32.mrf.mxu1  ;;  %v516_v6 = vadd.f32 %v499_v29, %v312_v2 }
  0xb9   : > { %v314_v21 = vadd.f32 %v313_v31, %v1985_v15 }
  0xba   : > { %v1991_v32 = vpop.f32.mrf.mxu0  ;;  %v599_v16 = vadd.f32 %v582_v30, %v516_v6 }
  0xbc   : > { %v681_v24 = vadd.f32 %v664_v28, %v599_v16 }
  0xbf   : > { %v501_v33 = vpop.f32.mrf.mxu2  ;;  %v584_v34 = vpop.f32.mrf.mxu3 }
  0xc0   : > { %v316_v35 = vpop.f32.mrf.mxu1  ;;  %v517_v26 = vadd.f32 %v501_v33, %v314_v21 }
  0xc1   : > { %v317_v15 = vadd.f32 %v316_v35, %v1981_v47 }
  0xc2   : > { %v1993_v36 = vpop.f32.mrf.mxu0 }
  0xc7   : > { %v1995_v37 = vpop.f32.mrf.mxu2  ;;  %v1997_v38 = vpop.f32.mrf.mxu3 }
  0xc8   : > { %v1999_v39 = vpop.f32.mrf.mxu1  ;;  %v518_v28 = vadd.f32 %v1995_v37, %v317_v15 }
  0xca   : > { %v2001_v40 = vpop.f32.mrf.mxu0 }
  0xcf   : > { %v2003_v41 = vpop.f32.mrf.mxu2  ;;  %v2005_v42 = vpop.f32.mrf.mxu3 }
  0xd0   : > { %v2007_v43 = vpop.f32.mrf.mxu1 }
  0xd2   : > { %v2009_v44 = vpop.f32.mrf.mxu0 }
  0xd7   : > { %v2011_v45 = vpop.f32.mrf.mxu2  ;;  %v2013_v46 = vpop.f32.mrf.mxu3 }
  0xd8   : > { %v2015_v48 = vpop.f32.mrf.mxu1 }
  0xda   : > { %v2017_v50 = vpop.f32.mrf.mxu0 }
  0xdf   : > { %v2019_v52 = vpop.f32.mrf.mxu2  ;;  %v2021_v53 = vpop.f32.mrf.mxu3 }
  0xe0   : > { %v852_v55 = vpop.f32.mrf.mxu1 }
  0xe1   : > { %v872_v60 = vadd.f32 %v852_v55, %v679_v59  ;;  %v600_v55 = vadd.f32 %v584_v34, %v517_v26 }
  0xe2   : > { %v1210_v57 = vpop.f32.mrf.mxu0 }
  0xe3   : > { %v682_v63 = vadd.f32 %v1991_v32, %v600_v55  ;;  %v319_v32 = vadd.f32 %v1999_v39, %v1987_v17 }
  0xe7   : > { %v935_v61 = vpop.f32.mrf.mxu2  ;;  %v1017_v62 = vpop.f32.mrf.mxu3 }
  0xe8   : > { %v955_v0 = vadd.f32 %v935_v61, %v872_v60  ;;  %v854_v1 = vpop.f32.mrf.mxu1 }
  0xe9   : > { %v873_v11 = vadd.f32 %v854_v1, %v680_v8 }
  0xea   : > { %v1037_v3 = vadd.f32 %v1017_v62, %v955_v0  ;;  %v1212_v5 = vpop.f32.mrf.mxu0 }
  0xec   : > { %v1230_v7 = vadd.f32 %v1210_v57, %v1037_v3 }
  0xee   : > { %v2029_v10 = vadd.f32 %v2026_v4, %v1230_v7 }
  0xef   : > { %v937_v12 = vpop.f32.mrf.mxu2  ;;  %v1019_v13 = vpop.f32.mrf.mxu3 }
  0xf0   : > { %v1250_v19 = vmax.f32 %v2029_v10, -30.0  ;;  %v956_v9 = vadd.f32 %v937_v12, %v873_v11  ;;  %v857_v20 = vpop.f32.mrf.mxu1 }
  0xf1   : > { %v874_v51 = vadd.f32 %v857_v20, %v681_v24 }
  0xf2   : > { %v1258_v22 = vsub.f32 0.0, %v1250_v19  ;;  %v1038_v23 = vadd.f32 %v1019_v13, %v956_v9  ;;  %v1215_v25 = vpop.f32.mrf.mxu0  ;;  %v519_v19 = vadd.f32 %v2003_v41, %v319_v32 }
  0xf4   : > { %v1266_v27 = vmul.f32 1.442695, %v1258_v22  ;;  %v1231_v29 = vadd.f32 %v1212_v5, %v1038_v23  ;;  %v601_v5 = vadd.f32 %v1997_v38, %v518_v28  ;;  %v602_v41 = vadd.f32 %v2005_v42, %v519_v19 }
  0xf6   : > { %1685 = vpow2.f32 %v1266_v27  ;;  %v2034_v49 = vadd.f32 %v2026_v4, %v1231_v29  ;;  %v683_v38 = vadd.f32 %v1993_v36, %v601_v5  ;;  %v684_v28 = vadd.f32 %v2001_v40, %v602_v41 }
  0xf7   : > { %v940_v54 = vpop.f32.mrf.mxu2  ;;  %v1022_v30 = vpop.f32.mrf.mxu3 }
  0xf8   : > { %v1251_v56 = vmax.f32 %v2034_v49, -30.0  ;;  %v957_v57 = vadd.f32 %v940_v54, %v874_v51  ;;  %v859_v58 = vpop.f32.mrf.mxu1  ;;  %v322_v54 = vadd.f32 %v2007_v43, %v1983_v14 }
  0xf9   : > { %v875_v1 = vadd.f32 %v859_v58, %v682_v63 }
  0xfa   : > { %v1259_v31 = vsub.f32 0.0, %v1251_v56  ;;  %v1039_v59 = vadd.f32 %v1022_v30, %v957_v57  ;;  %v1217_v33 = vpop.f32.mrf.mxu0  ;;  %v520_v15 = vadd.f32 %v2011_v45, %v322_v54 }
  0xfc   : > { %v1686_v60 = vpop.eup %1685  ;;  %v1268_v61 = vmul.f32 1.442695, %v1259_v31  ;;  %v1232_v62 = vadd.f32 %v1215_v25, %v1039_v59  ;;  %v603_v63 = vadd.f32 %v2013_v46, %v520_v15 }
  0xfd   : > { %v1282_v0 = vmul.f32 2.0, %v1686_v60  ;;  %v1298_v3 = vmul.f32 6.0, %v1686_v60 }
  0xfe   : > { %1687 = vpow2.f32 %v1268_v61  ;;  %v2041_v34 = vadd.f32 %v2026_v4, %v1232_v62 }
  0xff   : > { %v1290_v2 = vmul.f32 %v1686_v60, %v1282_v0  ;;  %v942_v47 = vpop.f32.mrf.mxu2  ;;  %v1024_v35 = vpop.f32.mrf.mxu3  ;;  %v1322_v23 = vadd.f32 3.0, %v1282_v0 }
 0x100   : > { %v1252_v6 = vmax.f32 %v2041_v34, -30.0  ;;  %v958_v37 = vadd.f32 %v942_v47, %v875_v1  ;;  %v862_v7 = vpop.f32.mrf.mxu1 }
 0x101   : > { %v1306_v8 = vadd.f32 %v1298_v3, %v1290_v2  ;;  %v876_v17 = vadd.f32 %v862_v7, %v683_v38  ;;  %v1330_v55 = vmul.f32 %v1322_v23, %v2029_v10 }
 0x102   : > { %v1260_v11 = vsub.f32 0.0, %v1252_v6  ;;  %v1040_v12 = vadd.f32 %v1024_v35, %v958_v37  ;;  %v1220_v21 = vpop.f32.mrf.mxu0  ;;  %v324_v6 = vadd.f32 %v2015_v48, %v1989_v18 }
 0x103   : > { %v1314_v13 = vadd.f32 5.0, %v1306_v8 }
 0x104   : > { %v1688_v16 = vpop.eup %1687  ;;  %v1270_v9 = vmul.f32 1.442695, %v1260_v11  ;;  %v1233_v20 = vadd.f32 %v1217_v33, %v1040_v12  ;;  %v685_v11 = vadd.f32 %v2009_v44, %v603_v63 }
 0x105   : > { %1689 = vrcp.f32 %v1314_v13  ;;  %v1283_v22 = vmul.f32 2.0, %v1688_v16  ;;  %v1299_v26 = vmul.f32 6.0, %v1688_v16  ;;  %v521_v13 = vadd.f32 %v2019_v52, %v324_v6 }
 0x106   : > { %1691 = vpow2.f32 %v1270_v9  ;;  %v2052_v25 = vadd.f32 %v2026_v4, %v1233_v20 }
 0x107   : > { %v1291_v39 = vmul.f32 %v1688_v16, %v1283_v22  ;;  %v945_v27 = vpop.f32.mrf.mxu2  ;;  %v1027_v29 = vpop.f32.mrf.mxu3  ;;  %v1323_v14 = vadd.f32 3.0, %v1283_v22 }
 0x108   : > { %v1253_v24 = vmax.f32 %v2052_v25, -30.0  ;;  %v959_v51 = vadd.f32 %v945_v27, %v876_v17  ;;  %v864_v36 = vpop.f32.mrf.mxu1  ;;  %v604_v17 = vadd.f32 %v2021_v53, %v521_v13 }
 0x109   : > { %v1307_v30 = vadd.f32 %v1299_v26, %v1291_v39  ;;  %v877_v61 = vadd.f32 %v864_v36, %v684_v28  ;;  %v1331_v37 = vmul.f32 %v1323_v14, %v2034_v49 }
 0x10a   : > { %v1261_v56 = vsub.f32 0.0, %v1253_v24  ;;  %v1041_v57 = vadd.f32 %v1027_v29, %v959_v51  ;;  %v1222_v62 = vpop.f32.mrf.mxu0  ;;  %v686_v53 = vadd.f32 %v2017_v50, %v604_v17 }
 0x10b   : > { %v1690_v58 = vpop.eup %1689  ;;  %v1315_v31 = vadd.f32 5.0, %v1307_v30 }
 0x10c   : > { %v1692_v59 = vpop.eup %1691  ;;  %v1346_v33 = vmul.f32 %v1690_v58, %v1330_v55  ;;  %v1272_v42 = vmul.f32 1.442695, %v1261_v56  ;;  %v1234_v60 = vadd.f32 %v1220_v21, %v1041_v57 }
 0x10d   : > { %1693 = vrcp.f32 %v1315_v31  ;;  %v1284_v43 = vmul.f32 2.0, %v1692_v59  ;;  %v1300_v0 = vmul.f32 6.0, %v1692_v59 }
 0x10e   : > { %v1354_v10 = vpack.c.bf16 %v1346_v33, %v1346_v33  ;;  %1695 = vpow2.f32 %v1272_v42  ;;  %v2067_v45 = vadd.f32 %v2026_v4, %v1234_v60 }
 0x10f   : > { %v1292_v40 = vmul.f32 %v1692_v59, %v1284_v43  ;;  %v947_v1 = vpop.f32.mrf.mxu2  ;;  %v1029_v2 = vpop.f32.mrf.mxu3  ;;  %v1324_v20 = vadd.f32 3.0, %v1284_v43 }
 0x110   : > { %1363 = vst.msk [vmem:[%s2064_s17] sm:$0xf] %vm1362_vm5, %v1354_v10  ;;  %v1254_v3 = vmax.f32 %v2067_v45, -30.0  ;;  %v960_v47 = vadd.f32 %v947_v1, %v877_v61  ;;  %v867_v5 = vpop.f32.mrf.mxu1 }
 0x111   : > { %v1308_v35 = vadd.f32 %v1300_v0, %v1292_v40  ;;  %v878_v48 = vadd.f32 %v867_v5, %v685_v11  ;;  %v1332_v29 = vmul.f32 %v1324_v20, %v2041_v34 }
 0x112   : > { %v1262_v7 = vsub.f32 0.0, %v1254_v3  ;;  %v1042_v8 = vadd.f32 %v1029_v2, %v960_v47  ;;  %v1225_v27 = vpop.f32.mrf.mxu0 }
 0x113   : > { %v1694_v32 = vpop.eup %1693  ;;  %v1316_v46 = vadd.f32 5.0, %v1308_v35 }
 0x114   : > { %v1696_v12 = vpop.eup %1695  ;;  %v1347_v16 = vmul.f32 %v1694_v32, %v1331_v37  ;;  %v1274_v19 = vmul.f32 1.442695, %v1262_v7  ;;  %v1235_v9 = vadd.f32 %v1222_v62, %v1042_v8 }
 0x115   : > { %1697 = vrcp.f32 %v1316_v46  ;;  %v1285_v38 = vmul.f32 2.0, %v1696_v12  ;;  %v1301_v22 = vmul.f32 6.0, %v1696_v12 }
 0x116   : > { %v1355_v21 = vpack.c.bf16 %v1347_v16, %v1347_v16  ;;  %1699 = vpow2.f32 %v1274_v19  ;;  %v2079_v18 = vadd.f32 %v2026_v4, %v1235_v9 }
 0x117   : > { %v1293_v49 = vmul.f32 %v1696_v12, %v1285_v38  ;;  %v950_v23 = vpop.f32.mrf.mxu2  ;;  %v1032_v44 = vpop.f32.mrf.mxu3  ;;  %v1325_v58 = vadd.f32 3.0, %v1285_v38 }
 0x118   : > { %1364 = vst.msk [vmem:[%s2064_s17 + $0x4] sm:$0xf] %vm1362_vm5, %v1355_v21  ;;  %v1255_v52 = vmax.f32 %v2079_v18, -30.0  ;;  %v961_v39 = vadd.f32 %v950_v23, %v878_v48  ;;  %v869_v54 = vpop.f32.mrf.mxu1 }
 0x119   : > { %v1309_v26 = vadd.f32 %v1301_v22, %v1293_v49  ;;  %v879_v34 = vadd.f32 %v869_v54, %v686_v53  ;;  %v1333_v61 = vmul.f32 %v1325_v58, %v2052_v25 }
 0x11a   : > { %v1263_v41 = vsub.f32 0.0, %v1255_v52  ;;  %v1043_v24 = vadd.f32 %v1032_v44, %v961_v39  ;;  %v1227_v0 = vpop.f32.mrf.mxu0 }
 0x11b   : > { %v1698_v51 = vpop.eup %1697  ;;  %v1317_v36 = vadd.f32 5.0, %v1309_v26 }
 0x11c   : > { %v1700_v30 = vpop.eup %1699  ;;  %v1348_v55 = vmul.f32 %v1698_v51, %v1332_v29  ;;  %v1276_v56 = vmul.f32 1.442695, %v1263_v41  ;;  %v1236_v57 = vadd.f32 %v1225_v27, %v1043_v24 }
 0x11d   : > { %1701 = vrcp.f32 %v1317_v36  ;;  %v1286_v15 = vmul.f32 2.0, %v1700_v30  ;;  %v1302_v42 = vmul.f32 6.0, %v1700_v30 }
 0x11e   : > { %v1356_v31 = vpack.c.bf16 %v1348_v55, %v1348_v55  ;;  %1703 = vpow2.f32 %v1276_v56  ;;  %v1248_v59 = vadd.f32 %v2026_v4, %v1236_v57 }
 0x11f   : > { %v1294_v33 = vmul.f32 %v1700_v30, %v1286_v15  ;;  %v952_v60 = vpop.f32.mrf.mxu2  ;;  %v1034_v10 = vpop.f32.mrf.mxu3  ;;  %v1326_v6 = vadd.f32 3.0, %v1286_v15 }
 0x120   : > { %1365 = vst.msk [vmem:[%s2064_s17 + $0x8] sm:$0xf] %vm1362_vm5, %v1356_v31  ;;  %v1256_v28 = vmax.f32 %v1248_v59, -30.0  ;;  %v962_v14 = vadd.f32 %v952_v60, %v879_v34 }
 0x121   : > { %v1310_v43 = vadd.f32 %v1302_v42, %v1294_v33  ;;  %v1334_v46 = vmul.f32 %v1326_v6, %v2067_v45 }
 0x122   : > { %v1264_v50 = vsub.f32 0.0, %v1256_v28  ;;  %v1044_v62 = vadd.f32 %v1034_v10, %v962_v14 }
 0x123   : > { %v1702_v63 = vpop.eup %1701  ;;  %v1318_v40 = vadd.f32 5.0, %v1310_v43 }
 0x124   : > { %v1704_v1 = vpop.eup %1703  ;;  %v1349_v2 = vmul.f32 %v1702_v63, %v1333_v61  ;;  %v1278_v3 = vmul.f32 1.442695, %v1264_v50  ;;  %v1237_v47 = vadd.f32 %v1227_v0, %v1044_v62 }
 0x125   : > { %1705 = vrcp.f32 %v1318_v40  ;;  %v1287_v35 = vmul.f32 2.0, %v1704_v1  ;;  %v1303_v8 = vmul.f32 6.0, %v1704_v1 }
 0x126   : > { %v1357_v5 = vpack.c.bf16 %v1349_v2, %v1349_v2  ;;  %1707 = vpow2.f32 %v1278_v3  ;;  %v1249_v37 = vadd.f32 %v2026_v4, %v1237_v47 }
 0x127   : > { %v1295_v7 = vmul.f32 %v1704_v1, %v1287_v35  ;;  %v1327_v21 = vadd.f32 3.0, %v1287_v35 }
 0x128   : > { %1366 = vst.msk [vmem:[%s2064_s17 + $0xc] sm:$0xf] %vm1362_vm5, %v1357_v5  ;;  %v1257_v25 = vmax.f32 %v1249_v37, -30.0 }
 0x129   : > { %v1311_v32 = vadd.f32 %v1303_v8, %v1295_v7  ;;  %v1335_v22 = vmul.f32 %v1327_v21, %v2079_v18 }
 0x12a   : > { %v1265_v11 = vsub.f32 0.0, %v1257_v25 }
 0x12b   : > { %v1706_v12 = vpop.eup %1705  ;;  %v1319_v13 = vadd.f32 5.0, %v1311_v32 }
 0x12c   : > { %v1708_v16 = vpop.eup %1707  ;;  %v1350_v19 = vmul.f32 %v1706_v12, %v1334_v46  ;;  %v1280_v9 = vmul.f32 1.442695, %v1265_v11 }
 0x12d   : > { %1709 = vrcp.f32 %v1319_v13  ;;  %v1288_v20 = vmul.f32 2.0, %v1708_v16  ;;  %v1304_v48 = vmul.f32 6.0, %v1708_v16 }
 0x12e   : > { %v1358_v38 = vpack.c.bf16 %v1350_v19, %v1350_v19  ;;  %1711 = vpow2.f32 %v1280_v9 }
 0x12f   : > { %v1296_v4 = vmul.f32 %v1708_v16, %v1288_v20  ;;  %v1328_v26 = vadd.f32 3.0, %v1288_v20 }
 0x130   : > { %1367 = vst.msk [vmem:[%s2064_s17 + $0x10] sm:$0xf] %vm1362_vm5, %v1358_v38 }
 0x131   : > { %v1312_v49 = vadd.f32 %v1304_v48, %v1296_v4  ;;  %v1336_v24 = vmul.f32 %v1328_v26, %v1248_v59 }
 0x133   : > { %v1710_v45 = vpop.eup %1709  ;;  %v1320_v23 = vadd.f32 5.0, %v1312_v49 }
 0x134   : > { %v1712_v44 = vpop.eup %1711  ;;  %v1351_v17 = vmul.f32 %v1710_v45, %v1335_v22 }
 0x135   : > { %1713 = vrcp.f32 %v1320_v23  ;;  %v1289_v52 = vmul.f32 2.0, %v1712_v44  ;;  %v1305_v29 = vmul.f32 6.0, %v1712_v44 }
 0x136   : > { %v1359_v39 = vpack.c.bf16 %v1351_v17, %v1351_v17 }
 0x137   : > { %v1297_v27 = vmul.f32 %v1712_v44, %v1289_v52  ;;  %v1329_v30 = vadd.f32 3.0, %v1289_v52 }
 0x138   : > { %1368 = vst.msk [vmem:[%s2064_s17 + $0x14] sm:$0xf] %vm1362_vm5, %v1359_v39 }
 0x139   : > { %v1313_v41 = vadd.f32 %v1305_v29, %v1297_v27  ;;  %v1337_v55 = vmul.f32 %v1329_v30, %v1249_v37 }
 0x13b   : > { %v1714_v51 = vpop.eup %1713  ;;  %v1321_v36 = vadd.f32 5.0, %v1313_v41 }
 0x13c   : > { %v1352_v54 = vmul.f32 %v1714_v51, %v1336_v24 }
 0x13d   : > { %1715 = vrcp.f32 %v1321_v36 }
 0x13e   : > { %v1360_v18 = vpack.c.bf16 %v1352_v54, %v1352_v54 }
 0x140   : > { %1369 = vst.msk [vmem:[%s2064_s17 + $0x18] sm:$0xf] %vm1362_vm5, %v1360_v18 }
 0x143   : > { %v1716_v56 = vpop.eup %1715 }
 0x144   : > { %v1353_v57 = vmul.f32 %v1716_v56, %v1337_v55 }
 0x146   : > { %v1361_v53 = vpack.c.bf16 %v1353_v57, %v1353_v57 }
 0x148   : > { %1370 = vst.msk [vmem:[%s2064_s17 + $0x1c] sm:$0xf] %vm1362_vm5, %v1361_v53 }
 0x149 PF: > { %s13_s12 = sadd.s32 1, %s1723_s12  }
 0x14a   : > { %p10_p5 = scmp.ge.s32.totalorder %s13_s12, 4  }
 0x14c   :  { %12 = sbr.rel (!%p10_p5) target bundleno = 1 (0x1), region = 69 }

</bundles_post_ra>
